<compile_context>
chip_gen: v5e
topology: v5e:2x2
jax: 0.10.0
libtpu: 0.0.40
codegen_flags: <defaults>
</compile_context>

<pallas_src>
import functools

import jax
import jax.numpy as jnp
import numpy as np
from jax.experimental import pallas as pl
from jax.experimental.pallas import tpu as pltpu

NBIN_PAD = 128  # pad the bin axis to a full lane width (lane-dense output)
NSTATS = 8      # [count, sum(conf), sum(acc), 0, 0, 0, 0, 0] -> one sublane group


def _round_up(x, m):
    return ((x + m - 1) // m) * m


def _ece_kernel(logits_ref, labels_ref, out_ref,
                *, n_total, n_bins, tiles_per_core, tile_n):
    p = pl.program_id(0)   # "parallel" (core) axis
    t = pl.program_id(1)   # "arbitrary" (accumulation) axis

    @pl.when(t == 0)
    def _():
        out_ref[...] = jnp.zeros_like(out_ref)

    logits = logits_ref[...].astype(jnp.float32)            # (TN, C)
    labels = labels_ref[...]                                 # (TN, 1) int32
    tn, c = logits.shape

    # max softmax prob == 1 / sum(exp(logits - max_logit)); prediction = argmax.
    m = jnp.max(logits, axis=-1, keepdims=True)              # (TN, 1)
    sum_exp = jnp.sum(jnp.exp(logits - m), axis=-1, keepdims=True)
    conf = 1.0 / sum_exp                                      # (TN, 1) confidences

    cls_idx = jax.lax.broadcasted_iota(jnp.int32, (tn, c), 1)
    is_max = logits == m
    pred = jnp.min(jnp.where(is_max, cls_idx, c), axis=-1, keepdims=True)  # first max
    acc = (pred == labels).astype(jnp.float32)                # (TN, 1)

    # Single-compare bin membership: bin b covers (b/n_bins, (b+1)/n_bins].
    bin_id = jnp.clip(jnp.ceil(conf * n_bins).astype(jnp.int32) - 1,
                      0, n_bins - 1)                           # (TN, 1)
    lane = jax.lax.broadcasted_iota(jnp.int32, (tn, NBIN_PAD), 1)
    in_bin = (lane == bin_id).astype(jnp.float32)              # (TN, NBIN_PAD) 0/1

    # Padded-tail rows (global row index >= n_total) contribute nothing; fold
    # the validity into the small stats matrix instead of the big one-hot.
    row_base = (p * tiles_per_core + t) * tile_n
    row = jax.lax.broadcasted_iota(jnp.int32, (tn, 1), 0) + row_base
    valid = (row < n_total).astype(jnp.float32)                # (TN, 1)

    # Stats matrix: column 0 = valid, column 1 = conf*valid, column 2 = acc*valid.
    col = jax.lax.broadcasted_iota(jnp.int32, (tn, NSTATS), 1)
    stats = jnp.where(col == 0, valid,
            jnp.where(col == 1, conf * valid,
            jnp.where(col == 2, acc * valid, 0.0)))            # (TN, NSTATS)

    # One MXU contraction replaces three cross-sublane reductions:
    # partial[s, b] = sum_n stats[n, s] * in_bin[n, b]  ->  (NSTATS, NBIN_PAD)
    partial = jax.lax.dot_general(
        stats, in_bin,
        dimension_numbers=(((0,), (0,)), ((), ())),
        precision=jax.lax.Precision.HIGHEST,   # keep summed confidences f32-exact
        preferred_element_type=jnp.float32)

    out_ref[0] = out_ref[0] + partial


def ece_loss(logits, labels, n_bins=15, tile_n=1024, num_cores=2,
             vmem_limit_bytes=48 * 1024 * 1024):
    """Pallas ECE. logits: (N, C) float, labels: (N,) int. Returns shape (1,).

    tile_n:    rows per grid step (sweep 512-2048 for large N; auto-capped so
               the double-buffered tile fits VMEM for any C, padded so any N
               works).
    num_cores: outer "parallel" grid size; 2 exploits both TensorCores on v7x
               and is effectively free on 1-TC chips (v5e/v6e).
    """
    n, c = logits.shape

    # Cap the row tile so double-buffered inputs + the one-hot / stats
    # intermediates comfortably fit VMEM even for very large class counts.
    vmem_budget = 24 * 1024 * 1024
    tn_cap = max(8, (vmem_budget // (8 * (c + NBIN_PAD + NSTATS))) // 8 * 8)
    tn = int(min(min(tile_n, tn_cap), _round_up(max(n, 1), 8)))
    tn = max(8, _round_up(tn, 8))

    n_tiles = -(-n // tn)
    p = max(1, min(num_cores, n_tiles))
    tiles_per_core = -(-n_tiles // p)
    n_pad = p * tiles_per_core * tn

    logits_f = logits.astype(jnp.float32)
    labels2 = labels.reshape(n, 1).astype(jnp.int32)
    if n_pad != n:
        logits_f = jnp.pad(logits_f, ((0, n_pad - n), (0, 0)))
        labels2 = jnp.pad(labels2, ((0, n_pad - n), (0, 0)), constant_values=-1)

    kernel = functools.partial(_ece_kernel, n_total=n, n_bins=n_bins,
                               tiles_per_core=tiles_per_core, tile_n=tn)

    parts = pl.pallas_call(
        kernel,
        out_shape=jax.ShapeDtypeStruct((p, NSTATS, NBIN_PAD), jnp.float32),
        grid_spec=pltpu.PrefetchScalarGridSpec(
            num_scalar_prefetch=0,
            grid=(p, tiles_per_core),
            in_specs=[
                pl.BlockSpec((tn, c), lambda pi, ti: (pi * tiles_per_core + ti, 0)),
                pl.BlockSpec((tn, 1), lambda pi, ti: (pi * tiles_per_core + ti, 0)),
            ],
            out_specs=pl.BlockSpec((1, NSTATS, NBIN_PAD),
                                   lambda pi, ti: (pi, 0, 0)),
        ),
        compiler_params=pltpu.CompilerParams(
            dimension_semantics=("parallel", "arbitrary"),
            vmem_limit_bytes=vmem_limit_bytes),
    )(logits_f, labels2)

    # Tiny final reduction in JAX: sum per-core partials, then bins.
    stats = jnp.sum(parts, axis=0)            # (NSTATS, NBIN_PAD)
    cnt, csum, asum = stats[0], stats[1], stats[2]
    ece = jnp.sum(jnp.where(cnt > 0.0, jnp.abs(csum - asum), 0.0)) / float(n)
    return ece.reshape(1)


def _ece_reference(logits, labels, n_bins=15):
    """Pure-JAX reference mirroring the PyTorch module."""
    probs = jax.nn.softmax(logits, axis=1)
    conf = jnp.max(probs, axis=1)
    pred = jnp.argmax(probs, axis=1)
    acc = (pred == labels).astype(jnp.float32)
    bounds = np.linspace(0.0, 1.0, n_bins + 1)
    ece = 0.0
    for lo, hi in zip(bounds[:-1], bounds[1:]):
        in_bin = (conf > lo) & (conf <= hi)
        prop = jnp.mean(in_bin.astype(jnp.float32))
        cnt = jnp.sum(in_bin.astype(jnp.float32))
        acc_in = jnp.sum(jnp.where(in_bin, acc, 0.0)) / jnp.maximum(cnt, 1.0)
        conf_in = jnp.sum(jnp.where(in_bin, conf, 0.0)) / jnp.maximum(cnt, 1.0)
        ece = ece + jnp.where(cnt > 0, jnp.abs(conf_in - acc_in) * prop, 0.0)
    return jnp.reshape(ece, (1,))


if __name__ == "__main__":
    key = jax.random.PRNGKey(0)
    k1, k2 = jax.random.split(key)
    N, C = 256, 10
    logits = jax.random.normal(k1, (N, C), dtype=jnp.float32) * 2.0
    labels = jax.random.randint(k2, (N,), 0, C, dtype=jnp.int32)

    ece = ece_loss(logits, labels, n_bins=15)
    jax.block_until_ready(ece)
    ref = _ece_reference(logits, labels, n_bins=15)
    np.testing.assert_allclose(np.asarray(ece), np.asarray(ref),
                               rtol=1e-5, atol=1e-6)

    # Exercise the tail-masking + multi-tile + 2-core partial path.
    N2 = 300
    k3, k4 = jax.random.split(k2)
    logits2 = jax.random.normal(k3, (N2, C), dtype=jnp.float32) * 2.0
    labels2 = jax.random.randint(k4, (N2,), 0, C, dtype=jnp.int32)
    ece2 = ece_loss(logits2, labels2, n_bins=15, tile_n=128, num_cores=2)
    jax.block_until_ready(ece2)
    ref2 = _ece_reference(logits2, labels2, n_bins=15)
    np.testing.assert_allclose(np.asarray(ece2), np.asarray(ref2),
                               rtol=1e-5, atol=1e-6)

    print("KERNEL_OK")
</pallas_src>

<mosaic_0001>
module attributes {stable_mosaic.version = 11 : i64} {
  func.func @_ece_kernel(%arg0: i32, %arg1: i32, %arg2: memref<256x10xf32, #tpu.memory_space<vmem>>, %arg3: memref<256x1xi32, #tpu.memory_space<vmem>>, %arg4: memref<1x8x128xf32, #tpu.memory_space<vmem>>) attributes {dimension_semantics = [#tpu.dimension_semantics<parallel>, #tpu.dimension_semantics<arbitrary>], iteration_bounds = array<i64: 1, 1>, scalar_prefetch = 0 : i64, scratch_operands = 0 : i64, tpu.core_type = #tpu.core_type<tc>, window_params = [{transform_indices = @transform_0, window_bounds = array<i64: 256, 10>}, {transform_indices = @transform_1, window_bounds = array<i64: 256, 1>}, {transform_indices = @transform_2, window_bounds = array<i64: 1, 8, 128>}]} {
    %c0_i32 = arith.constant 0 : i32
    %0 = arith.cmpi eq, %arg1, %c0_i32 : i32
    %1 = arith.extui %0 : i1 to i32
    %c0_i32_0 = arith.constant 0 : i32
    %2 = arith.cmpi ne, %1, %c0_i32_0 : i32
    scf.if %2 {
      %cst_21 = arith.constant 0.000000e+00 : f32
      %75 = vector.broadcast %cst_21 : f32 to vector<1x8x128xf32>
      %c0_22 = arith.constant 0 : index
      %c0_23 = arith.constant 0 : index
      %c0_24 = arith.constant 0 : index
      %76 = vector.load %arg4[%c0_22, %c0_23, %c0_24] : memref<1x8x128xf32, #tpu.memory_space<vmem>>, vector<1x8x128xf32>
      tpu.vector_store %arg4[%c0_22, %c0_23, %c0_24], %75 {strides = array<i32>} : memref<1x8x128xf32, #tpu.memory_space<vmem>>, vector<1x8x128xf32>,
    } else {
    }
    %c0 = arith.constant 0 : index
    %c0_1 = arith.constant 0 : index
    %3 = vector.load %arg2[%c0, %c0_1] : memref<256x10xf32, #tpu.memory_space<vmem>>, vector<256x10xf32>
    %c0_2 = arith.constant 0 : index
    %c0_3 = arith.constant 0 : index
    %4 = vector.load %arg3[%c0_2, %c0_3] : memref<256x1xi32, #tpu.memory_space<vmem>>, vector<256x1xi32>
    %cst = arith.constant dense<0xFF800000> : vector<256xf32>
    %5 = vector.multi_reduction <maximumf>, %3, %cst [1] : vector<256x10xf32> to vector<256xf32>
    %6 = vector.shape_cast %5 : vector<256xf32> to vector<256x1xf32>
    %7 = vector.broadcast %6 : vector<256x1xf32> to vector<256x10xf32>
    %8 = arith.subf %3, %7 : vector<256x10xf32>
    %9 = math.exp %8 : vector<256x10xf32>
    %cst_4 = arith.constant dense<0.000000e+00> : vector<256xf32>
    %10 = vector.multi_reduction <add>, %9, %cst_4 [1] : vector<256x10xf32> to vector<256xf32>
    %11 = vector.shape_cast %10 : vector<256xf32> to vector<256x1xf32>
    %cst_5 = arith.constant 1.000000e+00 : f32
    %12 = vector.broadcast %cst_5 : f32 to vector<256x1xf32>
    %13 = arith.divf %12, %11 : vector<256x1xf32>
    %14 = tpu.iota {dimensions = array<i32: 1>} : vector<256x10xi32>
    %15 = vector.broadcast %6 : vector<256x1xf32> to vector<256x10xf32>
    %16 = arith.cmpf oeq, %3, %15 : vector<256x10xf32>
    %c10_i32 = arith.constant 10 : i32
    %17 = vector.broadcast %c10_i32 : i32 to vector<256x10xi32>
    %18 = arith.select %16, %14, %17 : vector<256x10xi1>, vector<256x10xi32>
    %cst_6 = arith.constant dense<2147483647> : vector<256xi32>
    %19 = vector.multi_reduction <minsi>, %18, %cst_6 [1] : vector<256x10xi32> to vector<256xi32>
    %20 = vector.shape_cast %19 : vector<256xi32> to vector<256x1xi32>
    %21 = arith.cmpi eq, %20, %4 : vector<256x1xi32>
    %22 = arith.extui %21 : vector<256x1xi1> to vector<256x1xi32>
    %23 = arith.sitofp %22 : vector<256x1xi32> to vector<256x1xf32>
    %cst_7 = arith.constant 1.500000e+01 : f32
    %24 = vector.broadcast %cst_7 : f32 to vector<256x1xf32>
    %25 = arith.mulf %13, %24 : vector<256x1xf32>
    %26 = math.ceil %25 : vector<256x1xf32>
    %27 = arith.fptosi %26 : vector<256x1xf32> to vector<256x1xi32>
    %c1_i32 = arith.constant 1 : i32
    %28 = vector.broadcast %c1_i32 : i32 to vector<256x1xi32>
    %29 = arith.subi %27, %28 : vector<256x1xi32>
    %c0_i32_8 = arith.constant 0 : i32
    %c14_i32 = arith.constant 14 : i32
    %30 = vector.broadcast %c0_i32_8 : i32 to vector<256x1xi32>
    %31 = arith.maxsi %30, %29 : vector<256x1xi32>
    %32 = vector.broadcast %c14_i32 : i32 to vector<256x1xi32>
    %33 = arith.minsi %32, %31 : vector<256x1xi32>
    %34 = tpu.iota {dimensions = array<i32: 1>} : vector<256x128xi32>
    %35 = vector.broadcast %33 : vector<256x1xi32> to vector<256x128xi32>
    %36 = arith.cmpi eq, %34, %35 : vector<256x128xi32>
    %37 = arith.extui %36 : vector<256x128xi1> to vector<256x128xi32>
    %38 = arith.sitofp %37 : vector<256x128xi32> to vector<256x128xf32>
    %c1_i32_9 = arith.constant 1 : i32
    %39 = arith.muli %arg0, %c1_i32_9 : i32
    %40 = arith.addi %39, %arg1 : i32
    %c256_i32 = arith.constant 256 : i32
    %41 = arith.muli %40, %c256_i32 : i32
    %42 = tpu.iota {dimensions = array<i32: 0>} : vector<256x1xi32>
    %43 = vector.broadcast %41 : i32 to vector<256x1xi32>
    %44 = arith.addi %42, %43 : vector<256x1xi32>
    %c256_i32_10 = arith.constant 256 : i32
    %45 = vector.broadcast %c256_i32_10 : i32 to vector<256x1xi32>
    %46 = arith.cmpi slt, %44, %45 : vector<256x1xi32>
    %47 = arith.extui %46 : vector<256x1xi1> to vector<256x1xi32>
    %48 = arith.sitofp %47 : vector<256x1xi32> to vector<256x1xf32>
    %49 = tpu.iota {dimensions = array<i32: 1>} : vector<256x8xi32>
    %c0_i32_11 = arith.constant 0 : i32
    %50 = vector.broadcast %c0_i32_11 : i32 to vector<256x8xi32>
    %51 = arith.cmpi eq, %49, %50 : vector<256x8xi32>
    %c1_i32_12 = arith.constant 1 : i32
    %52 = vector.broadcast %c1_i32_12 : i32 to vector<256x8xi32>
    %53 = arith.cmpi eq, %49, %52 : vector<256x8xi32>
    %54 = arith.mulf %13, %48 : vector<256x1xf32>
    %c2_i32 = arith.constant 2 : i32
    %55 = vector.broadcast %c2_i32 : i32 to vector<256x8xi32>
    %56 = arith.cmpi eq, %49, %55 : vector<256x8xi32>
    %57 = arith.mulf %23, %48 : vector<256x1xf32>
    %cst_13 = arith.constant 0.000000e+00 : f32
    %58 = vector.shape_cast %57 : vector<256x1xf32> to vector<256x1xf32>
    %59 = vector.broadcast %58 : vector<256x1xf32> to vector<256x8xf32>
    %60 = vector.broadcast %cst_13 : f32 to vector<256x8xf32>
    %61 = arith.select %56, %59, %60 : vector<256x8xi1>, vector<256x8xf32>
    %62 = vector.shape_cast %54 : vector<256x1xf32> to vector<256x1xf32>
    %63 = vector.broadcast %62 : vector<256x1xf32> to vector<256x8xf32>
    %64 = arith.select %53, %63, %61 : vector<256x8xi1>, vector<256x8xf32>
    %65 = vector.shape_cast %48 : vector<256x1xf32> to vector<256x1xf32>
    %66 = vector.broadcast %65 : vector<256x1xf32> to vector<256x8xf32>
    %67 = arith.select %51, %66, %64 : vector<256x8xi1>, vector<256x8xf32>
    %cst_14 = arith.constant dense<0.000000e+00> : vector<8x128xf32>
    %68 = tpu.matmul %67, %38, %cst_14 {dimension_numbers = #tpu.dot_dimension_numbers<[0], [0], [1], [1], [0, 1, 1, 1], [], []>, precision = #tpu.contract_precision<fp32>} : vector<256x8xf32>, vector<256x128xf32>, vector<8x128xf32> -> vector<8x128xf32>
    %c0_15 = arith.constant 0 : index
    %c0_16 = arith.constant 0 : index
    %c0_17 = arith.constant 0 : index
    %69 = vector.load %arg4[%c0_15, %c0_16, %c0_17] : memref<1x8x128xf32, #tpu.memory_space<vmem>>, vector<1x8x128xf32>
    %70 = vector.shape_cast %69 : vector<1x8x128xf32> to vector<8x128xf32>
    %71 = arith.addf %70, %68 : vector<8x128xf32>
    %c0_18 = arith.constant 0 : index
    %c0_19 = arith.constant 0 : index
    %c0_20 = arith.constant 0 : index
    %72 = vector.load %arg4[%c0_18, %c0_19, %c0_20] : memref<1x8x128xf32, #tpu.memory_space<vmem>>, vector<1x8x128xf32>
    %73 = vector.shape_cast %72 : vector<1x8x128xf32> to vector<8x128xf32>
    %74 = vector.shape_cast %71 : vector<8x128xf32> to vector<1x8x128xf32>
    tpu.vector_store %arg4[%c0_18, %c0_19, %c0_20], %74 {strides = array<i32>} : memref<1x8x128xf32, #tpu.memory_space<vmem>>, vector<1x8x128xf32>,
    return
  }
  func.func @transform_0(%arg0: i32, %arg1: i32) -> (i32, i32) {
    %c1_i32 = arith.constant 1 : i32
    %0 = arith.muli %arg0, %c1_i32 : i32
    %1 = arith.addi %0, %arg1 : i32
    %c0_i32 = arith.constant 0 : i32
    %c0_i32_0 = arith.constant 0 : i32
    return %1, %c0_i32 : i32, i32
  }
  func.func @transform_1(%arg0: i32, %arg1: i32) -> (i32, i32) {
    %c1_i32 = arith.constant 1 : i32
    %0 = arith.muli %arg0, %c1_i32 : i32
    %1 = arith.addi %0, %arg1 : i32
    %c0_i32 = arith.constant 0 : i32
    %c0_i32_0 = arith.constant 0 : i32
    return %1, %c0_i32 : i32, i32
  }
  func.func @transform_2(%arg0: i32, %arg1: i32) -> (i32, i32, i32) {
    %c0_i32 = arith.constant 0 : i32
    %c0_i32_0 = arith.constant 0 : i32
    %c0_i32_1 = arith.constant 0 : i32
    return %arg0, %c0_i32, %c0_i32_0 : i32, i32, i32
  }
}

</mosaic_0001>

<bundles_post_ra>
// kernel: tpu_custom_call.1
= control target key start
LH: loop header
LB: loop body
LE: loop exit
PB: predicated region body
PF: predicated region fallthrough
CT: control target
= control target key end

     0   :  { %vm7501_vm0 = vcmask 80896   ;;  %s7443_s0 = inlined_call_operand.vmem [shape: f32[256,10], index: 0, kind: input, shape index: {}]   ;;  %s7444_s1 = inlined_call_operand.vmem [shape: s32[256,1], index: 1, kind: input, shape index: {}]   ;;  %s7445_s2 = inlined_call_operand.hbm [shape: f32[1,8,128], index: 2, kind: output, shape index: {}]  }
   0x1   :  { %v3686_v0 = vld [vmem:[%s7443_s0 + $0x20] sm:$0xff]  ;;  %v3691_v1 = vld [vmem:[%s7443_s0 + $0x10] sm:$0xff]  ;;  %v3707_v6 = vld [vmem:[%s7443_s0 + $0x28] sm:$0xff] }
   0x2   :  { %v3696_v2 = vld [vmem:[%s7443_s0] sm:$0xff]  ;;  %v138_v3 = vsel %vm7501_vm0, %v3686_v0, -inf  ;;  %v132_v4 = vsel %vm7501_vm0, %v3691_v1, -inf  ;;  %v3712_v7 = vld [vmem:[%s7443_s0 + $0x18] sm:$0xff]  ;;  %v3717_v8 = vld [vmem:[%s7443_s0 + $0x8] sm:$0xff] }
   0x3   :  { %v126_v5 = vsel %vm7501_vm0, %v3696_v2, -inf  ;;  %139 = vmax.xlane.f32.xlu2 %v138_v3  ;;  %133 = vmax.xlane.f32.xlu1 %v132_v4 }
   0x4   :  { %127 = vmax.xlane.f32.xlu0 %v126_v5 }
   0x5   :  { %7 = vsyncpa [#allocation3], 0  ;;  %v141_v9 = vsel %vm7501_vm0, %v3707_v6, -inf  ;;  %v135_v10 = vsel %vm7501_vm0, %v3712_v7, -inf  ;;  %v129_v11 = vsel %vm7501_vm0, %v3717_v8, -inf  ;;  %v3728_v12 = vld [vmem:[%s7443_s0 + $0x40] sm:$0xff] }
   0x6   :  { %v3733_v13 = vld [vmem:[%s7443_s0 + $0x38] sm:$0xff]  ;;  %v3738_v14 = vld [vmem:[%s7443_s0 + $0x30] sm:$0xff]  ;;  %v150_v15 = vsel %vm7501_vm0, %v3728_v12, -inf  ;;  %v3759_v20 = vld [vmem:[%s7443_s0 + $0x48] sm:$0xff]  ;;  %s3131_s29 = sshll.u32 %s7445_s2, 4  ;;  %s3132_s29 = int_to_ptr.hbm [resolvable:$true] %s3131_s29 }
   0x7   :  { %v147_v16 = vsel %vm7501_vm0, %v3733_v13, -inf  ;;  %v144_v17 = vsel %vm7501_vm0, %v3738_v14, -inf  ;;  %v3749_v18 = vld [vmem:[%s7443_s0 + $0x58] sm:$0xff]  ;;  %v3754_v19 = vld [vmem:[%s7443_s0 + $0x50] sm:$0xff]  ;;  %v153_v23 = vsel %vm7501_vm0, %v3759_v20, -inf  ;;  %v3775_v25 = vld [vmem:[%s7443_s0 + $0x68] sm:$0xff] }
   0x8   :  { %v159_v21 = vsel %vm7501_vm0, %v3749_v18, -inf  ;;  %v156_v22 = vsel %vm7501_vm0, %v3754_v19, -inf  ;;  %v3770_v24 = vld [vmem:[%s7443_s0 + $0x70] sm:$0xff]  ;;  %v3780_v26 = vld [vmem:[%s7443_s0 + $0x60] sm:$0xff]  ;;  %v165_v28 = vsel %vm7501_vm0, %v3775_v25, -inf  ;;  %v3791_v30 = vld [vmem:[%s7443_s0 + $0x88] sm:$0xff] }
   0x9   :  { %v168_v27 = vsel %vm7501_vm0, %v3770_v24, -inf  ;;  %v162_v29 = vsel %vm7501_vm0, %v3780_v26, -inf  ;;  %v3796_v31 = vld [vmem:[%s7443_s0 + $0x80] sm:$0xff]  ;;  %v3801_v32 = vld [vmem:[%s7443_s0 + $0x78] sm:$0xff]  ;;  %v177_v33 = vsel %vm7501_vm0, %v3791_v30, -inf  ;;  %v3822_v38 = vld [vmem:[%s7443_s0 + $0x90] sm:$0xff] }
   0xa   :  { %v174_v34 = vsel %vm7501_vm0, %v3796_v31, -inf  ;;  %v171_v35 = vsel %vm7501_vm0, %v3801_v32, -inf  ;;  %v3812_v36 = vld [vmem:[%s7443_s0 + $0xa0] sm:$0xff]  ;;  %v3817_v37 = vld [vmem:[%s7443_s0 + $0x98] sm:$0xff]  ;;  %v180_v41 = vsel %vm7501_vm0, %v3822_v38, -inf  ;;  %v3838_v43 = vld [vmem:[%s7443_s0 + $0xb0] sm:$0xff] }
   0xb   :  { %142 = vmax.xlane.f32.xlu2 %v141_v9  ;;  %136 = vmax.xlane.f32.xlu1 %v135_v10  ;;  %v186_v39 = vsel %vm7501_vm0, %v3812_v36, -inf  ;;  %v183_v40 = vsel %vm7501_vm0, %v3817_v37, -inf  ;;  %v3833_v42 = vld [vmem:[%s7443_s0 + $0xb8] sm:$0xff]  ;;  %v3843_v44 = vld [vmem:[%s7443_s0 + $0xa8] sm:$0xff]  ;;  %v192_v46 = vsel %vm7501_vm0, %v3838_v43, -inf  ;;  %v3854_v48 = vld [vmem:[%s7443_s0 + $0xd0] sm:$0xff] }
   0xc   :  { %130 = vmax.xlane.f32.xlu0 %v129_v11  ;;  %v195_v45 = vsel %vm7501_vm0, %v3833_v42, -inf  ;;  %v189_v47 = vsel %vm7501_vm0, %v3843_v44, -inf  ;;  %v3859_v49 = vld [vmem:[%s7443_s0 + $0xc8] sm:$0xff]  ;;  %v3864_v50 = vld [vmem:[%s7443_s0 + $0xc0] sm:$0xff]  ;;  %v204_v51 = vsel %vm7501_vm0, %v3854_v48, -inf  ;;  %v3885_v56 = vld [vmem:[%s7443_s0 + $0xd8] sm:$0xff] }
   0xd   :  { %v201_v52 = vsel %vm7501_vm0, %v3859_v49, -inf  ;;  %v198_v53 = vsel %vm7501_vm0, %v3864_v50, -inf  ;;  %v3875_v54 = vld [vmem:[%s7443_s0 + $0xe8] sm:$0xff]  ;;  %v3880_v55 = vld [vmem:[%s7443_s0 + $0xe0] sm:$0xff]  ;;  %v207_v59 = vsel %vm7501_vm0, %v3885_v56, -inf  ;;  %v3896_v60 = vld [vmem:[%s7443_s0 + $0xf8] sm:$0xff] }
   0xe   :  { %v213_v57 = vsel %vm7501_vm0, %v3875_v54, -inf  ;;  %v210_v58 = vsel %vm7501_vm0, %v3880_v55, -inf  ;;  %v3901_v61 = vld [vmem:[%s7443_s0 + $0xf0] sm:$0xff]  ;;  %v219_v62 = vsel %vm7501_vm0, %v3896_v60, -inf }
   0xf   :  { %v216_v63 = vsel %vm7501_vm0, %v3901_v61, -inf }
  0x13   :  { %151 = vmax.xlane.f32.xlu2 %v150_v15  ;;  %148 = vmax.xlane.f32.xlu1 %v147_v16 }
  0x14   :  { %145 = vmax.xlane.f32.xlu0 %v144_v17 }
  0x1b   :  { %160 = vmax.xlane.f32.xlu2 %v159_v21  ;;  %157 = vmax.xlane.f32.xlu1 %v156_v22 }
  0x1c   :  { %154 = vmax.xlane.f32.xlu0 %v153_v23 }
  0x23   :  { %169 = vmax.xlane.f32.xlu2 %v168_v27  ;;  %166 = vmax.xlane.f32.xlu1 %v165_v28 }
  0x24   :  { %163 = vmax.xlane.f32.xlu0 %v162_v29 }
  0x2b   :  { %178 = vmax.xlane.f32.xlu2 %v177_v33  ;;  %175 = vmax.xlane.f32.xlu1 %v174_v34 }
  0x2c   :  { %172 = vmax.xlane.f32.xlu0 %v171_v35 }
  0x33   :  { %187 = vmax.xlane.f32.xlu2 %v186_v39  ;;  %184 = vmax.xlane.f32.xlu1 %v183_v40 }
  0x34   :  { %181 = vmax.xlane.f32.xlu0 %v180_v41 }
  0x3b   :  { %196 = vmax.xlane.f32.xlu2 %v195_v45  ;;  %193 = vmax.xlane.f32.xlu1 %v192_v46 }
  0x3c   :  { %190 = vmax.xlane.f32.xlu0 %v189_v47 }
  0x43   :  { %205 = vmax.xlane.f32.xlu2 %v204_v51  ;;  %202 = vmax.xlane.f32.xlu1 %v201_v52 }
  0x44   :  { %199 = vmax.xlane.f32.xlu0 %v198_v53 }
  0x4b   :  { %214 = vmax.xlane.f32.xlu2 %v213_v57  ;;  %211 = vmax.xlane.f32.xlu1 %v210_v58 }
  0x4c   :  { %208 = vmax.xlane.f32.xlu0 %v207_v59 }
  0x53   :  { %220 = vmax.xlane.f32.xlu1 %v219_v62 }
  0x54   :  { %217 = vmax.xlane.f32.xlu0 %v216_v63 }
  0x76   :  { %v3907_v3 = vpop.xlane.xlu2 %139  ;;  %v3909_v4 = vpop.xlane.xlu1 %133 }
  0x77   :  { %v224_v5 = vsub.f32 %v3691_v1, %v3909_v4  ;;  %v3913_v9 = vpop.xlane.xlu0 %127  ;;  %v226_v28 = vsub.f32 %v3686_v0, %v3907_v3  ;;  %vm898_vm3 = vcmp.eq.f32.partialorder %v3691_v1, %v3909_v4  ;;  %vm900_vm9 = vcmp.eq.f32.partialorder %v3686_v0, %v3907_v3 }
  0x78   :  { %v222_v10 = vsub.f32 %v3696_v2, %v3913_v9  ;;  %vm896_vm1 = vcmp.eq.f32.partialorder %v3696_v2, %v3913_v9 }
  0x79   :  { %v258_v11 = vmul.f32 1.442695, %v224_v5  ;;  %v262_v45 = vmul.f32 1.442695, %v226_v28 }
  0x7a   :  { %v254_v15 = vmul.f32 1.442695, %v222_v10 }
  0x7b   :  { %3495 = vpow2.f32 %v258_v11 }
  0x7c   :  { %3497 = vpow2.f32 %v254_v15 }
  0x7e   :  { %v3917_v16 = vpop.xlane.xlu2 %142  ;;  %v3919_v17 = vpop.xlane.xlu1 %136 }
  0x7f   :  { %v227_v21 = vsub.f32 %v3707_v6, %v3917_v16  ;;  %v225_v22 = vsub.f32 %v3712_v7, %v3919_v17  ;;  %v3925_v23 = vpop.xlane.xlu0 %130  ;;  %vm899_vm2 = vcmp.eq.f32.partialorder %v3712_v7, %v3919_v17  ;;  %vm901_vm4 = vcmp.eq.f32.partialorder %v3707_v6, %v3917_v16 }
  0x80   :  { %v223_v27 = vsub.f32 %v3717_v8, %v3925_v23  ;;  %vm897_vm6 = vcmp.eq.f32.partialorder %v3717_v8, %v3925_v23 }
  0x81   :  { %v264_v29 = vmul.f32 1.442695, %v227_v21  ;;  %v260_v33 = vmul.f32 1.442695, %v225_v22  ;;  %v3496_v34 = vpop.eup %3495 }
  0x82   :  { %v256_v35 = vmul.f32 1.442695, %v223_v27  ;;  %v3498_v39 = vpop.eup %3497  ;;  %v324_v40 = vsel %vm7501_vm0, %v3496_v34, 0.0 }
  0x83   :  { %3499 = vpow2.f32 %v264_v29  ;;  %325 = vadd.xlane.f32.xlu1 %v324_v40  ;;  %v318_v41 = vsel %vm7501_vm0, %v3498_v39, 0.0 }
  0x84   :  { %3501 = vpow2.f32 %v260_v33  ;;  %319 = vadd.xlane.f32.xlu2 %v318_v41 }
  0x85   :  { %3503 = vpow2.f32 %v256_v35 }
  0x86   :  { %v3933_v46 = vpop.xlane.xlu2 %151  ;;  %v3935_v47 = vpop.xlane.xlu1 %148  ;;  %3505 = vpow2.f32 %v262_v45 }
  0x87   :  { %v230_v51 = vsub.f32 %v3728_v12, %v3933_v46  ;;  %v3939_v52 = vpop.xlane.xlu0 %145  ;;  %v229_v59 = vsub.f32 %v3733_v13, %v3935_v47  ;;  %vm904_vm7 = vcmp.eq.f32.partialorder %v3728_v12, %v3933_v46  ;;  %vm903_vm12 = vcmp.eq.f32.partialorder %v3733_v13, %v3935_v47 }
  0x88   :  { %v228_v53 = vsub.f32 %v3738_v14, %v3939_v52  ;;  %vm902_vm5 = vcmp.eq.f32.partialorder %v3738_v14, %v3939_v52 }
  0x89   :  { %v3500_v57 = vpop.eup %3499  ;;  %v270_v58 = vmul.f32 1.442695, %v230_v51  ;;  %v268_v21 = vmul.f32 1.442695, %v229_v59 }
  0x8a   :  { %v3502_v62 = vpop.eup %3501  ;;  %v266_v63 = vmul.f32 1.442695, %v228_v53  ;;  %v333_v5 = vsel %vm7501_vm0, %v3500_v57, 0.0 }
  0x8b   :  { %v3504_v10 = vpop.eup %3503  ;;  %3507 = vpow2.f32 %v270_v58  ;;  %v327_v11 = vsel %vm7501_vm0, %v3502_v62, 0.0  ;;  %334 = vadd.xlane.f32.xlu1 %v333_v5 }
  0x8c   :  { %3509 = vpow2.f32 %v266_v63  ;;  %v321_v15 = vsel %vm7501_vm0, %v3504_v10, 0.0  ;;  %328 = vadd.xlane.f32.xlu2 %v327_v11  ;;  %v3506_v28 = vpop.eup %3505 }
  0x8d   :  { %322 = vadd.xlane.f32.xlu0 %v321_v15  ;;  %3511 = vpow2.f32 %v268_v21  ;;  %v330_v53 = vsel %vm7501_vm0, %v3506_v28, 0.0 }
  0x8e   :  { %v3948_v22 = vpop.xlane.xlu2 %160  ;;  %v3950_v27 = vpop.xlane.xlu1 %157 }
  0x8f   :  { %v233_v29 = vsub.f32 %v3749_v18, %v3948_v22  ;;  %v3954_v33 = vpop.xlane.xlu0 %154  ;;  %v232_v40 = vsub.f32 %v3754_v19, %v3950_v27  ;;  %vm907_vm10 = vcmp.eq.f32.partialorder %v3749_v18, %v3948_v22  ;;  %vm906_vm14 = vcmp.eq.f32.partialorder %v3754_v19, %v3950_v27 }
  0x90   :  { %v231_v34 = vsub.f32 %v3759_v20, %v3954_v33  ;;  %vm905_vm8 = vcmp.eq.f32.partialorder %v3759_v20, %v3954_v33 }
  0x91   :  { %v3508_v35 = vpop.eup %3507  ;;  %v276_v39 = vmul.f32 1.442695, %v233_v29  ;;  %v274_v58 = vmul.f32 1.442695, %v232_v40 }
  0x92   :  { %v3510_v41 = vpop.eup %3509  ;;  %v272_v45 = vmul.f32 1.442695, %v231_v34  ;;  %v342_v51 = vsel %vm7501_vm0, %v3508_v35, 0.0 }
  0x93   :  { %3513 = vpow2.f32 %v276_v39  ;;  %v336_v57 = vsel %vm7501_vm0, %v3510_v41, 0.0  ;;  %343 = vadd.xlane.f32.xlu1 %v342_v51  ;;  %v3512_v63 = vpop.eup %3511 }
  0x94   :  { %3515 = vpow2.f32 %v272_v45  ;;  %337 = vadd.xlane.f32.xlu2 %v336_v57  ;;  %v339_v39 = vsel %vm7501_vm0, %v3512_v63, 0.0 }
  0x95   :  { %331 = vadd.xlane.f32.xlu0 %v330_v53  ;;  %3517 = vpow2.f32 %v274_v58 }
  0x96   :  { %v3963_v59 = vpop.xlane.xlu2 %169  ;;  %v3965_v62 = vpop.xlane.xlu1 %166 }
  0x97   :  { %v236_v5 = vsub.f32 %v3770_v24, %v3963_v59  ;;  %v3969_v10 = vpop.xlane.xlu0 %163  ;;  %v235_v28 = vsub.f32 %v3775_v25, %v3965_v62  ;;  %vm910_vm13 = vcmp.eq.f32.partialorder %v3770_v24, %v3963_v59  ;;  %vm909_vm15 = vcmp.eq.f32.partialorder %v3775_v25, %v3965_v62 }
  0x98   :  { %v234_v11 = vsub.f32 %v3780_v26, %v3969_v10  ;;  %vm908_vm11 = vcmp.eq.f32.partialorder %v3780_v26, %v3969_v10 }
  0x99   :  { %v3514_v15 = vpop.eup %3513  ;;  %v282_v21 = vmul.f32 1.442695, %v236_v5  ;;  %v280_v41 = vmul.f32 1.442695, %v235_v28 }
  0x9a   :  { %v3516_v29 = vpop.eup %3515  ;;  %v278_v34 = vmul.f32 1.442695, %v234_v11  ;;  %v351_v35 = vsel %vm7501_vm0, %v3514_v15, 0.0 }
  0x9b   :  { %3519 = vpow2.f32 %v282_v21  ;;  %v345_v40 = vsel %vm7501_vm0, %v3516_v29, 0.0  ;;  %352 = vadd.xlane.f32.xlu1 %v351_v35  ;;  %v3518_v53 = vpop.eup %3517 }
  0x9c   :  { %3521 = vpow2.f32 %v278_v34  ;;  %346 = vadd.xlane.f32.xlu2 %v345_v40  ;;  %v348_v34 = vsel %vm7501_vm0, %v3518_v53, 0.0 }
  0x9d   :  { %340 = vadd.xlane.f32.xlu0 %v339_v39  ;;  %3523 = vpow2.f32 %v280_v41 }
  0x9e   :  { %v3978_v45 = vpop.xlane.xlu2 %178  ;;  %v3980_v51 = vpop.xlane.xlu1 %175 }
  0x9f   :  { %7748 = vst [vmem:[#allocation5_spill] sm:$0xff] %v3978_v45  ;;  %v239_v57 = vsub.f32 %v3791_v30, %v3978_v45  ;;  %v3984_v58 = vpop.xlane.xlu0 %172  ;;  %v238_v15 = vsub.f32 %v3796_v31, %v3980_v51 }
  0xa0   :  { %v237_v63 = vsub.f32 %v3801_v32, %v3984_v58 }
  0xa1   :  { %v3520_v5 = vpop.eup %3519  ;;  %v288_v11 = vmul.f32 1.442695, %v239_v57  ;;  %v286_v35 = vmul.f32 1.442695, %v238_v15 }
  0xa2   :  { %v3522_v21 = vpop.eup %3521  ;;  %v284_v28 = vmul.f32 1.442695, %v237_v63  ;;  %v360_v29 = vsel %vm7501_vm0, %v3520_v5, 0.0 }
  0xa3   :  { %3525 = vpow2.f32 %v288_v11  ;;  %v354_v30 = vsel %vm7501_vm0, %v3522_v21, 0.0  ;;  %361 = vadd.xlane.f32.xlu1 %v360_v29  ;;  %v3524_v41 = vpop.eup %3523 }
  0xa4   :  { %3527 = vpow2.f32 %v284_v28  ;;  %355 = vadd.xlane.f32.xlu2 %v354_v30 }
  0xa5   :  { %349 = vadd.xlane.f32.xlu0 %v348_v34  ;;  %3529 = vpow2.f32 %v286_v35  ;;  %v357_v34 = vsel %vm7501_vm0, %v3524_v41, 0.0 }
  0xa6   :  { %v3993_v39 = vpop.xlane.xlu2 %187  ;;  %v3995_v40 = vpop.xlane.xlu1 %184 }
  0xa7   :  { %7749 = vst [vmem:[#allocation6_spill] sm:$0xff] %v3993_v39  ;;  %v242_v57 = vsub.f32 %v3812_v36, %v3993_v39  ;;  %v3999_v63 = vpop.xlane.xlu0 %181  ;;  %v241_v21 = vsub.f32 %v3817_v37, %v3995_v40 }
  0xa8   :  { %7750 = vst [vmem:[#allocation7_spill] sm:$0xff] %v3995_v40  ;;  %v240_v53 = vsub.f32 %v3822_v38, %v3999_v63 }
  0xa9   :  { %7751 = vst [vmem:[#allocation8_spill] sm:$0xff] %v3999_v63  ;;  %v3526_v5 = vpop.eup %3525  ;;  %v294_v11 = vmul.f32 1.442695, %v242_v57  ;;  %v292_v38 = vmul.f32 1.442695, %v241_v21 }
  0xaa   :  { %v3528_v15 = vpop.eup %3527  ;;  %v290_v28 = vmul.f32 1.442695, %v240_v53  ;;  %v369_v29 = vsel %vm7501_vm0, %v3526_v5, 0.0 }
  0xab   :  { %3531 = vpow2.f32 %v294_v11  ;;  %v363_v36 = vsel %vm7501_vm0, %v3528_v15, 0.0  ;;  %370 = vadd.xlane.f32.xlu1 %v369_v29  ;;  %v3530_v57 = vpop.eup %3529 }
  0xac   :  { %3533 = vpow2.f32 %v290_v28  ;;  %364 = vadd.xlane.f32.xlu2 %v363_v36 }
  0xad   :  { %358 = vadd.xlane.f32.xlu0 %v357_v34  ;;  %3535 = vpow2.f32 %v292_v38  ;;  %v366_v34 = vsel %vm7501_vm0, %v3530_v57, 0.0 }
  0xae   :  { %v4008_v30 = vpop.xlane.xlu2 %196  ;;  %v4010_v35 = vpop.xlane.xlu1 %193 }
  0xaf   :  { %7752 = vst [vmem:[#allocation9_spill] sm:$0xff] %v4008_v30  ;;  %v245_v37 = vsub.f32 %v3833_v42, %v4008_v30  ;;  %v4014_v53 = vpop.xlane.xlu0 %190  ;;  %v244_v15 = vsub.f32 %v3838_v43, %v4010_v35 }
  0xb0   :  { %7753 = vst [vmem:[#allocation10_spill] sm:$0xff] %v4010_v35  ;;  %v243_v41 = vsub.f32 %v3843_v44, %v4014_v53 }
  0xb1   :  { %7754 = vst [vmem:[#allocation11_spill] sm:$0xff] %v4014_v53  ;;  %v3532_v5 = vpop.eup %3531  ;;  %v300_v11 = vmul.f32 1.442695, %v245_v37  ;;  %v298_v44 = vmul.f32 1.442695, %v244_v15 }
  0xb2   :  { %v3534_v21 = vpop.eup %3533  ;;  %v296_v28 = vmul.f32 1.442695, %v243_v41  ;;  %v378_v29 = vsel %vm7501_vm0, %v3532_v5, 0.0 }
  0xb3   :  { %3537 = vpow2.f32 %v300_v11  ;;  %v372_v42 = vsel %vm7501_vm0, %v3534_v21, 0.0  ;;  %379 = vadd.xlane.f32.xlu1 %v378_v29  ;;  %v3536_v37 = vpop.eup %3535 }
  0xb4   :  { %3539 = vpow2.f32 %v296_v28  ;;  %373 = vadd.xlane.f32.xlu2 %v372_v42 }
  0xb5   :  { %367 = vadd.xlane.f32.xlu0 %v366_v34  ;;  %3541 = vpow2.f32 %v298_v44  ;;  %v375_v34 = vsel %vm7501_vm0, %v3536_v37, 0.0 }
  0xb6   :  { %v4023_v36 = vpop.xlane.xlu2 %205  ;;  %v4025_v38 = vpop.xlane.xlu1 %202 }
  0xb7   :  { %7755 = vst [vmem:[#allocation12_spill] sm:$0xff] %v4023_v36  ;;  %v248_v43 = vsub.f32 %v3854_v48, %v4023_v36  ;;  %v4029_v41 = vpop.xlane.xlu0 %199  ;;  %v247_v21 = vsub.f32 %v3859_v49, %v4025_v38 }
  0xb8   :  { %7756 = vst [vmem:[#allocation13_spill] sm:$0xff] %v4025_v38  ;;  %v246_v57 = vsub.f32 %v3864_v50, %v4029_v41 }
  0xb9   :  { %7757 = vst [vmem:[#allocation14_spill] sm:$0xff] %v4029_v41  ;;  %v3538_v5 = vpop.eup %3537  ;;  %v306_v11 = vmul.f32 1.442695, %v248_v43  ;;  %v304_v50 = vmul.f32 1.442695, %v247_v21 }
  0xba   :  { %v3540_v15 = vpop.eup %3539  ;;  %v302_v28 = vmul.f32 1.442695, %v246_v57  ;;  %v387_v29 = vsel %vm7501_vm0, %v3538_v5, 0.0  ;;  %v894_v5 = vlaneseq }
  0xbb   :  { %3543 = vpow2.f32 %v306_v11  ;;  %v381_v48 = vsel %vm7501_vm0, %v3540_v15, 0.0  ;;  %388 = vadd.xlane.f32.xlu1 %v387_v29  ;;  %v3542_v43 = vpop.eup %3541 }
  0xbc   :  { %3545 = vpow2.f32 %v302_v28  ;;  %382 = vadd.xlane.f32.xlu2 %v381_v48  ;;  %v384_v48 = vsel %vm7501_vm0, %v3542_v43, 0.0 }
  0xbd   :  { %376 = vadd.xlane.f32.xlu0 %v375_v34  ;;  %3547 = vpow2.f32 %v304_v50 }
  0xbe   :  { %v4038_v42 = vpop.xlane.xlu2 %214  ;;  %v4040_v44 = vpop.xlane.xlu1 %211 }
  0xbf   :  { %7758 = vst [vmem:[#allocation15_spill] sm:$0xff] %v4038_v42  ;;  %v251_v49 = vsub.f32 %v3875_v54, %v4038_v42  ;;  %v4044_v57 = vpop.xlane.xlu0 %208  ;;  %v250_v21 = vsub.f32 %v3880_v55, %v4040_v44  ;;  %v4053_v42 = vand.u32 127, %v894_v5 }
  0xc0   :  { %7759 = vst [vmem:[#allocation16_spill] sm:$0xff] %v4040_v44  ;;  %v249_v37 = vsub.f32 %v3885_v56, %v4044_v57 }
  0xc1   :  { %7760 = vst [vmem:[#allocation17_spill] sm:$0xff] %v4044_v57  ;;  %v3544_v11 = vpop.eup %3543  ;;  %v312_v15 = vmul.f32 1.442695, %v251_v49  ;;  %v310_v56 = vmul.f32 1.442695, %v250_v21  ;;  %v928_v43 = vsel %vm896_vm1, %v4053_v42, 10  ;;  %vm911_vm1 = vcmp.eq.f32.partialorder %v3801_v32, %v3984_v58 }
  0xc2   :  { %v3546_v28 = vpop.eup %3545  ;;  %v308_v29 = vmul.f32 1.442695, %v249_v37  ;;  %v396_v34 = vsel %vm7501_vm0, %v3544_v11, 0.0  ;;  %v934_v16 = vsel %vm902_vm5, %v4053_v42, 10  ;;  %v936_v12 = vsel %vm904_vm7, %v4053_v42, 10 }
  0xc3   :  { %3549 = vpow2.f32 %v312_v15  ;;  %v390_v54 = vsel %vm7501_vm0, %v3546_v28, 0.0  ;;  %397 = vadd.xlane.f32.xlu1 %v396_v34  ;;  %v3548_v50 = vpop.eup %3547  ;;  %v4110_v8 = vsel %vm7501_vm0, %v934_v16, 2147483647  ;;  %v4134_v33 = vsel %vm7501_vm0, %v936_v12, 2147483647 }
  0xc4   :  { %3551 = vpow2.f32 %v308_v29  ;;  %391 = vadd.xlane.f32.xlu2 %v390_v54  ;;  %v393_v21 = vsel %vm7501_vm0, %v3548_v50, 0.0  ;;  %v4070_v29 = vsel %vm7501_vm0, %v928_v43, 2147483647  ;;  %v930_v54 = vsel %vm898_vm3, %v4053_v42, 10  ;;  %7766 = vst [vmem:[#allocation23_spill] sm:$0xff] %v4110_v8 }
  0xc5   :  { %385 = vadd.xlane.f32.xlu0 %v384_v48  ;;  %3553 = vpow2.f32 %v310_v56  ;;  %v931_v48 = vsel %vm899_vm2, %v4053_v42, 10  ;;  %v4090_v1 = vsel %vm7501_vm0, %v930_v54, 2147483647  ;;  %7770 = vst [vmem:[#allocation27_spill] sm:$0xff] %v4134_v33  ;;  %v939_v18 = vsel %vm907_vm10, %v4053_v42, 10 }
  0xc6   :  { %v4057_v55 = vpop.xlane.xlu1 %220  ;;  %v4084_v17 = vsel %vm7501_vm0, %v931_v48, 2147483647  ;;  %v992_v6 = vshra.s32 %v4090_v1, 16  ;;  %v1082_v48 = vshra.s32 %v4134_v33, 16  ;;  %v938_v59 = vsel %vm906_vm14, %v4053_v42, 10 }
  0xc7   :  { %7761 = vst [vmem:[#allocation18_spill] sm:$0xff] %v4057_v55  ;;  %v4059_v49 = vpop.xlane.xlu0 %217  ;;  %v253_v11 = vsub.f32 %v3896_v60, %v4057_v55  ;;  %v962_v60 = vshra.s32 %v4070_v29, 16  ;;  %v1007_v4 = vshra.s32 %v4084_v17, 16  ;;  %v4197_v19 = vsel %vm7501_vm0, %v938_v59, 2147483647 }
  0xc8   :  { %7762 = vst [vmem:[#allocation19_spill] sm:$0xff] %v4059_v49  ;;  %v252_v37 = vsub.f32 %v3901_v61, %v4059_v49  ;;  %v4159_v26 = vcvt.s32.f32 %v1082_v48  ;;  %v1112_v12 = vshra.s32 %v4197_v19, 16  ;;  %vm912_vm2 = vcmp.eq.f32.partialorder %v3796_v31, %v3980_v51 }
  0xc9   :  { %v3550_v5 = vpop.eup %3549  ;;  %v316_v61 = vmul.f32 1.442695, %v253_v11  ;;  %v4079_v50 = vcvt.s32.f32 %v962_v60  ;;  %v929_v11 = vsel %vm897_vm6, %v4053_v42, 10  ;;  %7784 = vst [vmem:[#allocation41_spill] sm:$0xff] %v4197_v19  ;;  %v1006_v49 = vand.u32 65535, %v4084_v17 }
  0xca   :  { %v3552_v15 = vpop.eup %3551  ;;  %v314_v2 = vmul.f32 1.442695, %v252_v37  ;;  %v405_v9 = vsel %vm7501_vm0, %v3550_v5, 0.0  ;;  %v933_v5 = vsel %vm901_vm4, %v4053_v42, 10  ;;  %v4116_v23 = vsel %vm7501_vm0, %v929_v11, 2147483647 }
  0xcb   :  { %v399_v28 = vsel %vm7501_vm0, %v3552_v15, 0.0  ;;  %406 = vadd.xlane.f32.xlu1 %v405_v9  ;;  %v3554_v34 = vpop.eup %3553  ;;  %v4101_v15 = vcvt.s32.f32 %v1007_v4  ;;  %v4105_v52 = vsel %vm7501_vm0, %v933_v5, 2147483647  ;;  %7767 = vst [vmem:[#allocation24_spill] sm:$0xff] %v4116_v23  ;;  %v977_v46 = vshra.s32 %v4116_v23, 16 }
  0xcc   :  { %3555 = vpow2.f32 %v314_v2  ;;  %400 = vadd.xlane.f32.xlu2 %v399_v28  ;;  %v402_v43 = vsel %vm7501_vm0, %v3554_v34, 0.0  ;;  %7764 = vst [vmem:[#allocation21_spill] sm:$0xff] %v4105_v52  ;;  %v4107_v2 = vcvt.s32.f32 %v992_v6  ;;  %v1037_v9 = vshra.s32 %v4105_v52, 16 }
  0xcd   :  { %394 = vadd.xlane.f32.xlu0 %v393_v21  ;;  %3557 = vpow2.f32 %v316_v61  ;;  %7763 = vst [vmem:[#allocation20_spill] sm:$0xff] %v4101_v15  ;;  %v1052_v21 = vshra.s32 %v4110_v8, 16  ;;  %v937_v28 = vsel %vm905_vm8, %v4053_v42, 10  ;;  %v932_v61 = vsel %vm900_vm9, %v4053_v42, 10 }
  0xce   :  { %7765 = vst [vmem:[#allocation22_spill] sm:$0xff] %v4107_v2  ;;  %v4129_v60 = vcvt.s32.f32 %v1037_v9  ;;  %v4136_v34 = vcvt.s32.f32 %v977_v46  ;;  %v4139_v0 = vsel %vm7501_vm0, %v937_v28, 2147483647  ;;  %v4145_v3 = vsel %vm7501_vm0, %v932_v61, 2147483647 }
  0xcf   :  { %v4131_v20 = vcvt.s32.f32 %v1052_v21  ;;  %7772 = vst [vmem:[#allocation29_spill] sm:$0xff] %v4139_v0  ;;  %v1097_v54 = vshra.s32 %v4139_v0, 16  ;;  %v1022_v22 = vshra.s32 %v4145_v3, 16  ;;  %v942_v6 = vsel %vm910_vm13, %v4053_v42, 10 }
  0xd0   :  { %7768 = vst [vmem:[#allocation25_spill] sm:$0xff] %v4129_v60  ;;  %v941_v28 = vsel %vm909_vm15, %v4053_v42, 10  ;;  %v4212_v48 = vcvt.s32.f32 %v1112_v12  ;;  %v961_v12 = vand.u32 65535, %v4070_v29  ;;  %v4262_v29 = vsel %vm911_vm1, %v4053_v42, 10 }
  0xd1   :  { %7769 = vst [vmem:[#allocation26_spill] sm:$0xff] %v4131_v20  ;;  %v4161_v10 = vcvt.s32.f32 %v1097_v54  ;;  %v4166_v4 = vcvt.s32.f32 %v1022_v22  ;;  %v4215_v54 = vsel %vm7501_vm0, %v941_v28, 2147483647  ;;  %v991_v28 = vand.u32 65535, %v4090_v1 }
  0xd2   :  { %v3556_v56 = vpop.eup %3555  ;;  %7771 = vst [vmem:[#allocation28_spill] sm:$0xff] %v4136_v34  ;;  %v1157_v62 = vshra.s32 %v4215_v54, 16  ;;  %v4265_v32 = vsel %vm912_vm2, %v4053_v42, 10  ;;  %v4270_v58 = vcvt.s32.f32 %v961_v12  ;;  %v4284_v12 = vcvt.s32.f32 %v1006_v49 }
  0xd3   :  { %v408_v7 = vsel %vm7501_vm0, %v3556_v56, 0.0  ;;  %965 = vmin.xlane.f32.xlu1 %v4079_v50  ;;  %v3558_v37 = vpop.eup %3557  ;;  %7773 = vst [vmem:[#allocation30_spill] sm:$0xff] %v4145_v3  ;;  %v940_v56 = vsel %vm908_vm11, %v4053_v42, 10 }
  0xd4   :  { %409 = vadd.xlane.f32.xlu2 %v408_v7  ;;  %v411_v14 = vsel %vm7501_vm0, %v3558_v37, 0.0  ;;  %7774 = vst [vmem:[#allocation31_spill] sm:$0xff] %v4159_v26  ;;  %v4164_v7 = vsel %vm7501_vm0, %v939_v18, 2147483647  ;;  %v4169_v13 = vsel %vm7501_vm0, %v940_v56, 2147483647  ;;  %v4227_v56 = vcvt.s32.f32 %v1157_v62 }
  0xd5   :  { %403 = vadd.xlane.f32.xlu0 %v402_v43  ;;  %v935_v43 = vsel %vm903_vm12, %v4053_v42, 10  ;;  %7775 = vst [vmem:[#allocation32_spill] sm:$0xff] %v4161_v10  ;;  %v1127_v37 = vshra.s32 %v4164_v7, 16  ;;  %v1142_v5 = vshra.s32 %v4169_v13, 16 }
  0xd6   :  { %7776 = vst [vmem:[#allocation33_spill] sm:$0xff] %v4164_v7  ;;  %v4175_v47 = vsel %vm7501_vm0, %v935_v43, 2147483647 }
  0xd7   :  { %7777 = vst [vmem:[#allocation34_spill] sm:$0xff] %v4166_v4  ;;  %v1067_v24 = vshra.s32 %v4175_v47, 16  ;;  %v4186_v16 = vcvt.s32.f32 %v1127_v37  ;;  %v4188_v11 = vcvt.s32.f32 %v1142_v5 }
  0xd8   :  { %7778 = vst [vmem:[#allocation35_spill] sm:$0xff] %v4169_v13 }
  0xd9   :  { %7779 = vst [vmem:[#allocation36_spill] sm:$0xff] %v4175_v47  ;;  %v4193_v9 = vcvt.s32.f32 %v1067_v24 }
  0xda   :  { %7780 = vst [vmem:[#allocation37_spill] sm:$0xff] %v4186_v16 }
  0xdb   :  { %1010 = vmin.xlane.f32.xlu1 %v4101_v15  ;;  %7781 = vst [vmem:[#allocation38_spill] sm:$0xff] %v4188_v11 }
  0xdc   :  { %995 = vmin.xlane.f32.xlu2 %v4107_v2  ;;  %7783 = vst [vmem:[#allocation40_spill] sm:$0xff] %v4193_v9 }
  0xdd   :  { %412 = vadd.xlane.f32.xlu0 %v411_v14  ;;  %v4191_v14 = vsel %vm7501_vm0, %v942_v6, 2147483647  ;;  %7788 = vst [vmem:[#allocation45_spill] sm:$0xff] %v4212_v48 }
  0xde   :  { %7782 = vst [vmem:[#allocation39_spill] sm:$0xff] %v4191_v14  ;;  %v1172_v27 = vshra.s32 %v4191_v14, 16 }
  0xdf   :  { %7789 = vst [vmem:[#allocation46_spill] sm:$0xff] %v4215_v54 }
  0xe0   :  { %v4210_v61 = vcvt.s32.f32 %v1172_v27  ;;  %7793 = vst [vmem:[#allocation50_spill] sm:$0xff] %v4227_v56 }
  0xe1   :  { %7800 = vst [vmem:[#allocation57_spill] sm:$0xff] %v4262_v29 }
  0xe2   :  { %7787 = vst [vmem:[#allocation44_spill] sm:$0xff] %v4210_v61 }
  0xe3   :  { %1055 = vmin.xlane.f32.xlu1 %v4131_v20  ;;  %7801 = vst [vmem:[#allocation58_spill] sm:$0xff] %v4265_v32 }
  0xe4   :  { %1040 = vmin.xlane.f32.xlu2 %v4129_v60  ;;  %7804 = vst [vmem:[#allocation61_spill] sm:$0xff] %v4284_v12 }
  0xe5   :  { %980 = vmin.xlane.f32.xlu0 %v4136_v34 }
  0xeb   :  { %1100 = vmin.xlane.f32.xlu1 %v4161_v10 }
  0xec   :  { %1085 = vmin.xlane.f32.xlu2 %v4159_v26 }
  0xed   :  { %1025 = vmin.xlane.f32.xlu0 %v4166_v4 }
  0xf3   :  { %1145 = vmin.xlane.f32.xlu1 %v4188_v11 }
  0xf4   :  { %1130 = vmin.xlane.f32.xlu2 %v4186_v16 }
  0xf5   :  { %1070 = vmin.xlane.f32.xlu0 %v4193_v9 }
  0xf6   :  { %v4204_v21 = vpop.xlane.xlu1 %325 }
  0xf7   :  { %7785 = vst [vmem:[#allocation42_spill] sm:$0xff] %v4204_v21  ;;  %v4207_v46 = vpop.xlane.xlu2 %319  ;;  %3559 = vrcp.f32 %v4204_v21  ;;  %v455_v31 = vand.u32 2147483648, %v4204_v21  ;;  %vm449_vm3 = vweird.f32 %v4204_v21 }
  0xf8   :  { %7786 = vst [vmem:[#allocation43_spill] sm:$0xff] %v4207_v46  ;;  %3561 = vrcp.f32 %v4207_v46  ;;  %v425_v17 = vand.u32 2147483648, %v4207_v46  ;;  %vm419_vm4 = vweird.f32 %v4207_v46 }
  0xfa   :  { %v4298_v49 = vor.u32 1.1754944e-38, %v425_v17 }
  0xfc   :  { %1175 = vmin.xlane.f32.xlu2 %v4210_v61  ;;  %7806 = vst [vmem:[#allocation63_spill] sm:$0xff] %v4298_v49 }
  0xfd   :  { %1115 = vmin.xlane.f32.xlu0 %v4212_v48  ;;  %v4235_v5 = vpop.eup %3559 }
  0xfe   :  { %v4219_v25 = vpop.xlane.xlu1 %334  ;;  %7795 = vst [vmem:[#allocation52_spill] sm:$0xff] %v4235_v5  ;;  %v4237_v6 = vpop.eup %3561  ;;  %v445_v59 = vmul.f32 %v4235_v5, %v4204_v21  ;;  %vm450_vm5 = vweird.f32 %v4235_v5 }
  0xff   :  { %7790 = vst [vmem:[#allocation47_spill] sm:$0xff] %v4219_v25  ;;  %v4222_v18 = vpop.xlane.xlu2 %328  ;;  %3563 = vrcp.f32 %v4219_v25  ;;  %v415_v27 = vmul.f32 %v4237_v6, %v4207_v46  ;;  %v500_v41 = vand.u32 2147483648, %v4219_v25  ;;  %vm420_vm6 = vweird.f32 %v4237_v6  ;;  %vm4322_vm9 = vmor %vm449_vm3, %vm450_vm5 }
 0x100   :  { %7791 = vst [vmem:[#allocation48_spill] sm:$0xff] %v4222_v18  ;;  %v4224_v22 = vpop.xlane.xlu0 %322  ;;  %3565 = vrcp.f32 %v4222_v18  ;;  %v446_v55 = vsub.f32 1.0, %v445_v59  ;;  %vm494_vm7 = vweird.f32 %v4219_v25  ;;  %vm464_vm8 = vweird.f32 %v4222_v18  ;;  %vm4344_vm10 = vmor %vm419_vm4, %vm420_vm6 }
 0x101   :  { %7792 = vst [vmem:[#allocation49_spill] sm:$0xff] %v4224_v22  ;;  %3567 = vrcp.f32 %v4224_v22  ;;  %v416_v44 = vsub.f32 1.0, %v415_v27  ;;  %v4278_v27 = vcvt.s32.f32 %v991_v28  ;;  %v4292_v28 = vor.u32 1.1754944e-38, %v455_v31 }
 0x102   :  { %7796 = vst [vmem:[#allocation53_spill] sm:$0xff] %v4237_v6  ;;  %v447_v36 = vmul.f32 %v4235_v5, %v446_v55  ;;  %v4327_v17 = vor.u32 1.1754944e-38, %v500_v41  ;;  %vm434_vm11 = vweird.f32 %v4224_v22 }
 0x103   :  { %7803 = vst [vmem:[#allocation60_spill] sm:$0xff] %v4278_v27  ;;  %v417_v53 = vmul.f32 %v4237_v6, %v416_v44  ;;  %v470_v44 = vand.u32 2147483648, %v4222_v18 }
 0x104   :  { %7805 = vst [vmem:[#allocation62_spill] sm:$0xff] %v4292_v28  ;;  %v4303_v45 = vadd.f32 %v4235_v5, %v447_v36 }
 0x105   :  { %1160 = vmin.xlane.f32.xlu0 %v4227_v56  ;;  %v4254_v62 = vpop.eup %3563  ;;  %v4310_v63 = vadd.f32 %v4237_v6, %v417_v53  ;;  %v7811_v53 = vmov 0  ;;  %7814 = vst [vmem:[#allocation69_spill] sm:$0xff] %v4327_v17  ;;  %v4329_v54 = vor.u32 1.1754944e-38, %v470_v44  ;;  %v7860_v17 = vmov 0 }
 0x106   :  { %v4231_v43 = vpop.xlane.xlu1 %343  ;;  %7798 = vst [vmem:[#allocation55_spill] sm:$0xff] %v4254_v62  ;;  %v4257_v57 = vpop.eup %3565  ;;  %v490_v59 = vmul.f32 %v4254_v62, %v4219_v25  ;;  %v7812_v53 = vsel %vm4322_vm9, 4294967295, %v7811_v53  ;;  %vm495_vm12 = vweird.f32 %v4254_v62 }
 0x107   :  { %v4233_v37 = vpop.xlane.xlu2 %337  ;;  %7799 = vst [vmem:[#allocation56_spill] sm:$0xff] %v4257_v57  ;;  %v4272_v1 = vpop.eup %3567  ;;  %3569 = vrcp.f32 %v4231_v43  ;;  %v460_v30 = vmul.f32 %v4257_v57, %v4222_v18  ;;  %vm465_vm13 = vweird.f32 %v4257_v57  ;;  %v545_v14 = vand.u32 2147483648, %v4231_v43  ;;  %vm4381_vm15 = vmor %vm494_vm7, %vm495_vm12 }
 0x108   :  { %7794 = vst [vmem:[#allocation51_spill] sm:$0xff] %v4233_v37  ;;  %v4241_v24 = vpop.xlane.xlu0 %331  ;;  %3571 = vrcp.f32 %v4233_v37  ;;  %v430_v40 = vmul.f32 %v4272_v1, %v4224_v22  ;;  %v491_v39 = vsub.f32 1.0, %v490_v59  ;;  %vm539_vm14 = vweird.f32 %v4231_v43  ;;  %vm4411_vm3 = vmor %vm464_vm8, %vm465_vm13 }
 0x109   :  { %7797 = vst [vmem:[#allocation54_spill] sm:$0xff] %v4241_v24  ;;  %3573 = vrcp.f32 %v4241_v24  ;;  %v461_v31 = vsub.f32 1.0, %v460_v30  ;;  %v440_v30 = vand.u32 2147483648, %v4224_v22  ;;  %vm435_vm1 = vweird.f32 %v4272_v1 }
 0x10a   :  { %7802 = vst [vmem:[#allocation59_spill] sm:$0xff] %v4272_v1  ;;  %v431_v29 = vsub.f32 1.0, %v430_v40  ;;  %v492_v56 = vmul.f32 %v4254_v62, %v491_v39  ;;  %v7817_v39 = vmov 0  ;;  %v515_v40 = vand.u32 2147483648, %v4233_v37  ;;  %vm4432_vm5 = vmor %vm434_vm11, %vm435_vm1 }
 0x10b   :  { %7807 = vst [vmem:[#allocation64_spill] sm:$0xff] %v4303_v45  ;;  %v7818_v39 = vsel %vm4344_vm10, 4294967295, %v7817_v39  ;;  %v462_v41 = vmul.f32 %v4257_v57, %v461_v31  ;;  %v4364_v44 = vor.u32 1.1754944e-38, %v440_v30  ;;  %vm509_vm2 = vweird.f32 %v4233_v37 }
 0x10c   :  { %7809 = vst [vmem:[#allocation66_spill] sm:$0xff] %v4310_v63  ;;  %v432_v19 = vmul.f32 %v4272_v1, %v431_v29  ;;  %v4371_v47 = vadd.f32 %v4254_v62, %v492_v56  ;;  %v7822_v29 = vmov 0  ;;  %v485_v3 = vand.u32 2147483648, %v4241_v24 }
 0x10d   :  { %v4307_v55 = vpop.eup %3569  ;;  %7813 = vst [vmem:[#allocation68_spill] sm:$0xff] %v7812_v53  ;;  %v7823_v29 = vsel %vm4381_vm15, 4294967295, %v7822_v29  ;;  %v4386_v30 = vadd.f32 %v4257_v57, %v462_v41  ;;  %v4398_v33 = vor.u32 1.1754944e-38, %v545_v14  ;;  %v4415_v14 = vor.u32 1.1754944e-38, %v515_v40 }
 0x10e   :  { %v4259_v38 = vpop.xlane.xlu1 %352  ;;  %7808 = vst [vmem:[#allocation65_spill] sm:$0xff] %v4307_v55  ;;  %v4315_v59 = vpop.eup %3571  ;;  %v535_v48 = vmul.f32 %v4307_v55, %v4231_v43  ;;  %v4396_v26 = vadd.f32 %v4272_v1, %v432_v19  ;;  %vm540_vm4 = vweird.f32 %v4307_v55  ;;  %vm479_vm6 = vweird.f32 %v4241_v24 }
 0x10f   :  { %v4268_v51 = vpop.xlane.xlu2 %346  ;;  %3575 = vrcp.f32 %v4259_v38  ;;  %7810 = vst [vmem:[#allocation67_spill] sm:$0xff] %v4315_v59  ;;  %v4334_v36 = vpop.eup %3573  ;;  %v505_v31 = vmul.f32 %v4315_v59, %v4233_v37  ;;  %v4438_v11 = vor.u32 1.1754944e-38, %v485_v3  ;;  %vm584_vm7 = vweird.f32 %v4259_v38  ;;  %vm4468_vm12 = vmor %vm539_vm14, %vm540_vm4 }
 0x110   :  { %v4290_v35 = vpop.xlane.xlu0 %340  ;;  %7815 = vst [vmem:[#allocation70_spill] sm:$0xff] %v4329_v54  ;;  %3577 = vrcp.f32 %v4268_v51  ;;  %v475_v16 = vmul.f32 %v4334_v36, %v4241_v24  ;;  %v536_v56 = vsub.f32 1.0, %v535_v48  ;;  %vm510_vm8 = vweird.f32 %v4315_v59 }
 0x111   :  { %7816 = vst [vmem:[#allocation71_spill] sm:$0xff] %v4334_v36  ;;  %3579 = vrcp.f32 %v4290_v35  ;;  %v506_v4 = vsub.f32 1.0, %v505_v31  ;;  %v7828_v31 = vmov 0  ;;  %v590_v6 = vand.u32 2147483648, %v4259_v38  ;;  %vm4485_vm14 = vmor %vm509_vm2, %vm510_vm8 }
 0x112   :  { %7819 = vst [vmem:[#allocation72_spill] sm:$0xff] %v7818_v39  ;;  %v7829_v31 = vsel %vm4411_vm3, 4294967295, %v7828_v31  ;;  %v476_v19 = vsub.f32 1.0, %v475_v16  ;;  %v537_v0 = vmul.f32 %v4307_v55, %v536_v56  ;;  %v7833_v16 = vmov 0 }
 0x113   :  { %7820 = vst [vmem:[#allocation73_spill] sm:$0xff] %v4364_v44  ;;  %v7834_v16 = vsel %vm4432_vm5, 4294967295, %v7833_v16  ;;  %v507_v40 = vmul.f32 %v4315_v59, %v506_v4  ;;  %v560_v34 = vand.u32 2147483648, %v4268_v51  ;;  %vm554_vm11 = vweird.f32 %v4268_v51 }
 0x114   :  { %7821 = vst [vmem:[#allocation74_spill] sm:$0xff] %v4371_v47  ;;  %v477_v39 = vmul.f32 %v4334_v36, %v476_v19  ;;  %v4460_v44 = vadd.f32 %v4307_v55, %v537_v0  ;;  %vm480_vm13 = vweird.f32 %v4334_v36  ;;  %v7843_v63 = vmov 0 }
 0x115   :  { %v4368_v9 = vpop.eup %3575  ;;  %7824 = vst [vmem:[#allocation75_spill] sm:$0xff] %v7823_v29  ;;  %v4473_v19 = vadd.f32 %v4315_v59, %v507_v40  ;;  %v7844_v63 = vsel %vm4485_vm14, 4294967295, %v7843_v63  ;;  %v4490_v1 = vor.u32 1.1754944e-38, %v590_v6  ;;  %v4500_v8 = vor.u32 1.1754944e-38, %v560_v34  ;;  %vm4522_vm8 = vmor %vm479_vm6, %vm480_vm13 }
 0x116   :  { %v4332_v32 = vpop.xlane.xlu1 %361  ;;  %7825 = vst [vmem:[#allocation76_spill] sm:$0xff] %v4386_v30  ;;  %v4390_v13 = vpop.eup %3577  ;;  %v580_v41 = vmul.f32 %v4368_v9, %v4259_v38  ;;  %v4497_v52 = vadd.f32 %v4334_v36, %v477_v39  ;;  %vm585_vm1 = vweird.f32 %v4368_v9  ;;  %vm524_vm2 = vweird.f32 %v4290_v35 }
 0x117   :  { %v4353_v61 = vpop.xlane.xlu2 %355  ;;  %3581 = vrcp.f32 %v4332_v32  ;;  %7826 = vst [vmem:[#allocation77_spill] sm:$0xff] %v4396_v26  ;;  %v4418_v10 = vpop.eup %3579  ;;  %v550_v49 = vmul.f32 %v4390_v13, %v4268_v51  ;;  %vm555_vm4 = vweird.f32 %v4390_v13  ;;  %v635_v6 = vand.u32 2147483648, %v4332_v32  ;;  %vm4544_vm6 = vmor %vm584_vm7, %vm585_vm1 }
 0x118   :  { %v4377_v7 = vpop.xlane.xlu0 %349  ;;  %7827 = vst [vmem:[#allocation78_spill] sm:$0xff] %v4398_v33  ;;  %3583 = vrcp.f32 %v4353_v61  ;;  %v581_v4 = vsub.f32 1.0, %v580_v41  ;;  %v520_v23 = vmul.f32 %v4418_v10, %v4290_v35  ;;  %v7839_v41 = vmov 0  ;;  %vm4568_vm7 = vmor %vm554_vm11, %vm555_vm4 }
 0x119   :  { %7830 = vst [vmem:[#allocation79_spill] sm:$0xff] %v7829_v31  ;;  %3585 = vrcp.f32 %v4377_v7  ;;  %v551_v26 = vsub.f32 1.0, %v550_v49  ;;  %v7840_v41 = vsel %vm4468_vm12, 4294967295, %v7839_v41  ;;  %vm525_vm13 = vweird.f32 %v4418_v10 }
 0x11a   :  { %7831 = vst [vmem:[#allocation80_spill] sm:$0xff] %v4415_v14  ;;  %v582_v40 = vmul.f32 %v4368_v9, %v581_v4  ;;  %v521_v46 = vsub.f32 1.0, %v520_v23  ;;  %v605_v54 = vand.u32 2147483648, %v4353_v61  ;;  %v4573_v5 = vor.u32 1.1754944e-38, %v635_v6  ;;  %vm4606_vm4 = vmor %vm524_vm2, %vm525_vm13 }
 0x11b   :  { %7832 = vst [vmem:[#allocation81_spill] sm:$0xff] %v4418_v10  ;;  %v552_v4 = vmul.f32 %v4390_v13, %v551_v26  ;;  %v7847_v26 = vmov 0  ;;  %v7861_v17 = vsel %vm4606_vm4, 4294967295, %v7860_v17  ;;  %vm7863_vm10 = vweird.f32 %v4332_v32 }
 0x11c   :  { %7835 = vst [vmem:[#allocation82_spill] sm:$0xff] %v7834_v16  ;;  %v530_v16 = vand.u32 2147483648, %v4290_v35  ;;  %v7848_v26 = vsel %vm4522_vm8, 4294967295, %v7847_v26  ;;  %v4527_v28 = vadd.f32 %v4368_v9, %v582_v40  ;;  %v4597_v31 = vor.u32 1.1754944e-38, %v605_v54 }
 0x11d   :  { %7836 = vst [vmem:[#allocation83_spill] sm:$0xff] %v4438_v11  ;;  %v4444_v48 = vpop.eup %3581  ;;  %v4556_v45 = vadd.f32 %v4390_v13, %v552_v4  ;;  %v7961_v40 = vmov 0 }
 0x11e   :  { %v4442_v56 = vpop.xlane.xlu1 %370  ;;  %7838 = vst [vmem:[#allocation85_spill] sm:$0xff] %v4460_v44  ;;  %v625_v0 = vmul.f32 %v4444_v48, %v4332_v32  ;;  %v4494_v60 = vpop.eup %3583  ;;  %v4529_v20 = vor.u32 1.1754944e-38, %v530_v16  ;;  %v522_v16 = vmul.f32 %v4418_v10, %v521_v46  ;;  %v7856_v46 = vmov 0 }
 0x11f   :  { %7837 = vst [vmem:[#allocation84_spill] sm:$0xff] %v4442_v56  ;;  %v4452_v3 = vpop.xlane.xlu2 %364  ;;  %v4510_v39 = vpop.eup %3585  ;;  %v7857_v46 = vsel %vm4568_vm7, 4294967295, %v7856_v46  ;;  %vm630_vm11 = vweird.f32 %v4444_v48  ;;  %vm600_vm2 = vweird.f32 %v4494_v60 }
 0x120   :  { %7841 = vst [vmem:[#allocation86_spill] sm:$0xff] %v7840_v41  ;;  %3587 = vrcp.f32 %v4452_v3  ;;  %v4479_v49 = vpop.xlane.xlu0 %358  ;;  %v626_v34 = vsub.f32 1.0, %v625_v0  ;;  %v595_v0 = vmul.f32 %v4494_v60, %v4353_v61  ;;  %v565_v30 = vmul.f32 %v4510_v39, %v4377_v7  ;;  %vm4621_vm5 = vmor %vm7863_vm10, %vm630_vm11 }
 0x121   :  { %7842 = vst [vmem:[#allocation87_spill] sm:$0xff] %v4473_v19  ;;  %3589 = vrcp.f32 %v4442_v56  ;;  %v648_v2 = vand.u32 2147483647, %v4452_v3  ;;  %vm570_vm10 = vweird.f32 %v4510_v39  ;;  %vm7871_vm11 = vweird.f32 %v4353_v61 }
 0x122   :  { %7845 = vst [vmem:[#allocation88_spill] sm:$0xff] %v7844_v63  ;;  %3591 = vrcp.f32 %v4479_v49  ;;  %v627_v4 = vmul.f32 %v4444_v48, %v626_v34  ;;  %v596_v11 = vsub.f32 1.0, %v595_v0  ;;  %vm4667_vm0 = vmor %vm7871_vm11, %vm600_vm2  ;;  %vm7877_vm2 = vweird.f32 %v4377_v7 }
 0x123   :  { %7846 = vst [vmem:[#allocation89_spill] sm:$0xff] %v4497_v52  ;;  %v566_v52 = vsub.f32 1.0, %v565_v30  ;;  %v680_v30 = vand.u32 2147483648, %v4442_v56  ;;  %vm4672_vm13 = vcmp.eq.f32.partialorder %v648_v2, 8.507059e+37  ;;  %vm4698_vm9 = vmor %vm7877_vm2, %vm570_vm10  ;;  %vm7883_vm3 = vweird.f32 %v4452_v3 }
 0x124   :  { %7849 = vst [vmem:[#allocation90_spill] sm:$0xff] %v7848_v26  ;;  %v4585_v26 = vadd.f32 %v4418_v10, %v522_v16  ;;  %v575_v16 = vand.u32 2147483648, %v4377_v7  ;;  %v4611_v47 = vadd.f32 %v4444_v48, %v627_v4  ;;  %v597_v62 = vmul.f32 %v4494_v60, %v596_v11 }
 0x125   :  { %7850 = vst [vmem:[#allocation91_spill] sm:$0xff] %v4529_v20  ;;  %v567_v15 = vmul.f32 %v4510_v39, %v566_v52  ;;  %v4648_v14 = vor.u32 1.1754944e-38, %v680_v30  ;;  %v650_v52 = vand.u32 2147483648, %v4452_v3  ;;  %vm7896_vm1 = vweird.f32 %v4479_v49 }
 0x126   :  { %v4534_v23 = vpop.eup %3587  ;;  %v4551_v53 = vpop.xlane.xlu1 %379  ;;  %7858 = vst [vmem:[#allocation95_spill] sm:$0xff] %v4585_v26  ;;  %v4638_v11 = vor.u32 1.1754944e-38, %v575_v16  ;;  %v4655_v16 = vadd.f32 %v4494_v60, %v597_v62 }
 0x127   :  { %7853 = vst [vmem:[#allocation92_spill] sm:$0xff] %v4551_v53  ;;  %v4553_v22 = vpop.eup %3589  ;;  %v4562_v57 = vpop.xlane.xlu2 %373  ;;  %3593 = vrcp.f32 %v4551_v53  ;;  %v640_v36 = vmul.f32 %v4534_v23, %v4452_v3  ;;  %v4681_v24 = vadd.f32 %v4510_v39, %v567_v15  ;;  %v651_v2 = vor.u32 1.1754944e-38, %v650_v52 }
 0x128   :  { %7854 = vst [vmem:[#allocation93_spill] sm:$0xff] %v4553_v22  ;;  %v670_v6 = vmul.f32 %v4553_v22, %v4442_v56  ;;  %3595 = vrcp.f32 %v4562_v57  ;;  %v4591_v34 = vpop.xlane.xlu0 %367  ;;  %v4600_v21 = vpop.eup %3591  ;;  %v725_v37 = vand.u32 2147483648, %v4551_v53  ;;  %vm7882_vm11 = vweird.f32 %v4534_v23 }
 0x129   :  { %7855 = vst [vmem:[#allocation94_spill] sm:$0xff] %v4562_v57  ;;  %v641_v29 = vsub.f32 1.0, %v640_v36  ;;  %3597 = vrcp.f32 %v4591_v34  ;;  %v610_v36 = vmul.f32 %v4600_v21, %v4479_v49  ;;  %vm4713_vm8 = vmor %vm7883_vm3, %vm7882_vm11  ;;  %vm7887_vm10 = vweird.f32 %v4553_v22 }
 0x12a   :  { %7859 = vst [vmem:[#allocation96_spill] sm:$0xff] %v4591_v34  ;;  %v671_v12 = vsub.f32 1.0, %v670_v6  ;;  %vm7888_vm3 = vweird.f32 %v4442_v56  ;;  %v7889_v3 = vmov 0  ;;  %v695_v33 = vand.u32 2147483648, %v4562_v57 }
 0x12b   :  { %7862 = vst [vmem:[#allocation97_spill] sm:$0xff] %v7861_v17  ;;  %v642_v19 = vmul.f32 %v4534_v23, %v641_v29  ;;  %v620_v29 = vand.u32 2147483648, %v4479_v49  ;;  %v611_v18 = vsub.f32 1.0, %v610_v36  ;;  %v7878_v36 = vmov 0  ;;  %vm4732_vm2 = vmor %vm7888_vm3, %vm7887_vm10 }
 0x12c   :  { %7868 = vst [vmem:[#allocation100_spill] sm:$0xff] %v4648_v14  ;;  %v672_v62 = vmul.f32 %v4553_v22, %v671_v12  ;;  %v7879_v36 = vsel %vm4698_vm9, 4294967295, %v7878_v36  ;;  %v7890_v3 = vsel %vm4732_vm2, 4294967295, %v7889_v3  ;;  %v4740_v55 = vor.u32 1.1754944e-38, %v725_v37 }
 0x12d   :  { %v4628_v54 = vpop.eup %3593  ;;  %v643_v52 = vadd.f32 %v4534_v23, %v642_v19  ;;  %v4717_v10 = vor.u32 1.1754944e-38, %v620_v29  ;;  %7891 = vst [vmem:[#allocation107_spill] sm:$0xff] %v7890_v3  ;;  %v612_v29 = vmul.f32 %v4600_v21, %v611_v18  ;;  %vm615_vm10 = vweird.f32 %v4600_v21 }
 0x12e   :  { %7866 = vst [vmem:[#allocation98_spill] sm:$0xff] %v4628_v54  ;;  %v4642_v4 = vpop.eup %3595  ;;  %v4652_v6 = vpop.xlane.xlu1 %388  ;;  %v715_v59 = vmul.f32 %v4628_v54, %v4551_v53  ;;  %v4707_v26 = vadd.f32 %v4553_v22, %v672_v62  ;;  %v665_v18 = vand.u32 2147483648, %v4591_v34  ;;  %vm4778_vm3 = vmor %vm7896_vm1, %vm615_vm10  ;;  %vm7903_vm1 = vweird.f32 %v4551_v53 }
 0x12f   :  { %7867 = vst [vmem:[#allocation99_spill] sm:$0xff] %v4642_v4  ;;  %3599 = vrcp.f32 %v4652_v6  ;;  %v4661_v63 = vpop.xlane.xlu2 %382  ;;  %v4678_v14 = vpop.eup %3597  ;;  %v685_v25 = vmul.f32 %v4642_v4, %v4562_v57  ;;  %v647_v56 = vsel %vm4713_vm8, %v4534_v23, %v643_v52  ;;  %v4759_v15 = vadd.f32 %v4600_v21, %v612_v29 }
 0x130   :  { %7869 = vst [vmem:[#allocation101_spill] sm:$0xff] %v4652_v6  ;;  %3601 = vrcp.f32 %v4661_v63  ;;  %v716_v20 = vsub.f32 1.0, %v715_v59  ;;  %v4704_v12 = vpop.xlane.xlu0 %376  ;;  %v655_v59 = vmul.f32 %v4678_v14, %v4591_v34  ;;  %v4762_v52 = vor.u32 1.1754944e-38, %v695_v33 }
 0x131   :  { %7870 = vst [vmem:[#allocation102_spill] sm:$0xff] %v4661_v63  ;;  %v686_v19 = vsub.f32 1.0, %v685_v25  ;;  %3603 = vrcp.f32 %v4704_v12  ;;  %vm690_vm8 = vweird.f32 %v4642_v4  ;;  %v4785_v29 = vor.u32 1.1754944e-38, %v665_v18 }
 0x132   :  { %7876 = vst [vmem:[#allocation103_spill] sm:$0xff] %v4678_v14  ;;  %v717_v25 = vmul.f32 %v4628_v54, %v716_v20  ;;  %v656_v62 = vsub.f32 1.0, %v655_v59  ;;  %v770_v59 = vand.u32 2147483648, %v4652_v6  ;;  %vm7912_vm11 = vweird.f32 %v4562_v57 }
 0x133   :  { %7880 = vst [vmem:[#allocation104_spill] sm:$0xff] %v4704_v12  ;;  %v687_v23 = vmul.f32 %v4642_v4, %v686_v19  ;;  %vm4824_vm2 = vmor %vm7912_vm11, %vm690_vm8  ;;  %v7913_v37 = vmov 0  ;;  %v710_v57 = vand.u32 2147483648, %v4704_v12  ;;  %vm7938_vm15 = vweird.f32 %v4652_v6 }
 0x134   :  { %7881 = vst [vmem:[#allocation105_spill] sm:$0xff] %v4707_v26  ;;  %v4772_v26 = vsel %vm4672_vm13, %v651_v2, %v647_v56  ;;  %v4783_v19 = vadd.f32 %v4628_v54, %v717_v25  ;;  %vm7902_vm13 = vweird.f32 %v4628_v54  ;;  %v7904_v2 = vmov 0 }
 0x135   :  { %v4722_v17 = vpop.eup %3599  ;;  %7893 = vst [vmem:[#allocation109_spill] sm:$0xff] %v4740_v55  ;;  %vm4797_vm10 = vmor %vm7903_vm1, %vm7902_vm13  ;;  %v657_v25 = vmul.f32 %v4678_v14, %v656_v62  ;;  %v4809_v22 = vadd.f32 %v4642_v4, %v687_v23  ;;  %v7909_v62 = vand.u32 2147483647, %v4332_v32  ;;  %v7914_v37 = vsel %vm4824_vm2, 4294967295, %v7913_v37 }
 0x136   :  { %7886 = vst [vmem:[#allocation106_spill] sm:$0xff] %v4722_v17  ;;  %v4738_v44 = vpop.eup %3601  ;;  %v760_v55 = vmul.f32 %v4722_v17, %v4652_v6  ;;  %v4789_v27 = vpop.xlane.xlu1 %397  ;;  %v7905_v2 = vsel %vm4797_vm10, 4294967295, %v7904_v2  ;;  %v4828_v23 = vor.u32 1.1754944e-38, %v770_v59  ;;  %vm7929_vm13 = vweird.f32 %v4678_v14 }
 0x137   :  { %7892 = vst [vmem:[#allocation108_spill] sm:$0xff] %v4738_v44  ;;  %v730_v20 = vmul.f32 %v4738_v44, %v4661_v63  ;;  %v4791_v56 = vpop.eup %3603  ;;  %3605 = vrcp.f32 %v4789_v27  ;;  %vm4816_vm1 = vcmp.eq.f32.partialorder %v7909_v62, 8.507059e+37  ;;  %v4843_v59 = vadd.f32 %v4678_v14, %v657_v25 }
 0x138   :  { %7894 = vst [vmem:[#allocation110_spill] sm:$0xff] %v4762_v52  ;;  %v761_v18 = vsub.f32 1.0, %v760_v55  ;;  %v4812_v52 = vpop.xlane.xlu2 %391  ;;  %v700_v62 = vmul.f32 %v4791_v56, %v4704_v12  ;;  %v4840_v53 = vpop.xlane.xlu0 %385  ;;  %vm7930_vm2 = vweird.f32 %v4591_v34  ;;  %vm7944_vm12 = vweird.f32 %v4661_v63 }
 0x139   :  { %7895 = vst [vmem:[#allocation111_spill] sm:$0xff] %v4772_v26  ;;  %v731_v3 = vsub.f32 1.0, %v730_v20  ;;  %v740_v20 = vand.u32 2147483648, %v4661_v63  ;;  %3607 = vrcp.f32 %v4812_v52  ;;  %vm4882_vm14 = vmor %vm7930_vm2, %vm7929_vm13  ;;  %vm7937_vm13 = vweird.f32 %v4722_v17 }
 0x13a   :  { %7899 = vst [vmem:[#allocation112_spill] sm:$0xff] %v4783_v19  ;;  %v7922_v19 = vand.u32 2147483647, %v4479_v49  ;;  %3609 = vrcp.f32 %v4840_v53  ;;  %vm4904_vm4 = vmor %vm7938_vm15, %vm7937_vm13  ;;  %vm704_vm15 = vweird.f32 %v4704_v12  ;;  %vm705_vm13 = vweird.f32 %v4791_v56 }
 0x13b   :  { %7900 = vst [vmem:[#allocation113_spill] sm:$0xff] %v4785_v29  ;;  %v1551_v29 = vmul.f32 15.0, %v4772_v26 }
 0x13c   :  { %7901 = vst [vmem:[#allocation114_spill] sm:$0xff] %v4791_v56  ;;  %vm4855_vm8 = vcmp.eq.f32.partialorder %v7922_v19, 8.507059e+37  ;;  %v4875_v19 = vor.u32 1.1754944e-38, %v740_v20 }
 0x13d   :  { %7906 = vst [vmem:[#allocation115_spill] sm:$0xff] %v7905_v2  ;;  %v1583_v26 = vceil.f32 %v1551_v29  ;;  %v7919_v2 = vand.u32 2147483647, %v4353_v61  ;;  %v815_v29 = vand.u32 2147483648, %v4789_v27 }
 0x13e   :  { %7907 = vst [vmem:[#allocation116_spill] sm:$0xff] %v4809_v22  ;;  %v785_v22 = vand.u32 2147483648, %v4812_v52 }
 0x13f   :  { %7908 = vst [vmem:[#allocation117_spill] sm:$0xff] %v4812_v52  ;;  %v3375_v41 = vcvt.f32.s32 %v1583_v26  ;;  %vm4849_vm11 = vcmp.eq.f32.partialorder %v7919_v2, 8.507059e+37  ;;  %v732_v26 = vmul.f32 %v4738_v44, %v731_v3  ;;  %v4866_v2 = vpop.eup %3605  ;;  %v7931_v3 = vmov 0 }
 0x140   :  { %7915 = vst [vmem:[#allocation118_spill] sm:$0xff] %v7914_v37  ;;  %v7932_v3 = vsel %vm4882_vm14, 4294967295, %v7931_v3  ;;  %v4890_v20 = vpop.eup %3607  ;;  %vm7943_vm14 = vweird.f32 %v4738_v44 }
 0x141   :  { %7916 = vst [vmem:[#allocation119_spill] sm:$0xff] %v4828_v23  ;;  %v762_v23 = vmul.f32 %v4722_v17, %v761_v18  ;;  %v7925_v18 = vand.u32 2147483647, %v4259_v38  ;;  %v3199_v25 = vadd.s32 4294967295, %v3375_v41  ;;  %v701_v38 = vsub.f32 1.0, %v700_v62  ;;  %vm4918_vm7 = vmor %vm7944_vm12, %vm7943_vm14  ;;  %v4932_v4 = vpop.eup %3609 }
 0x142   :  { %7917 = vst [vmem:[#allocation120_spill] sm:$0xff] %v4840_v53  ;;  %v4909_v62 = vadd.f32 %v4738_v44, %v732_v26  ;;  %v805_v41 = vmul.f32 %v4866_v2, %v4789_v27  ;;  %v755_v26 = vand.u32 2147483648, %v4840_v53  ;;  %v745_v55 = vmul.f32 %v4932_v4, %v4840_v53 }
 0x143   :  { %7918 = vst [vmem:[#allocation121_spill] sm:$0xff] %v4843_v59  ;;  %vm4870_vm10 = vcmp.eq.f32.partialorder %v7925_v18, 8.507059e+37  ;;  %v4886_v18 = vor.u32 1.1754944e-38, %v710_v57  ;;  %v4897_v34 = vadd.f32 %v4722_v17, %v762_v23  ;;  %vm1694_vm2 = vcmp.gt.s32.totalorder %v3199_v25, 0  ;;  %v8045_v17 = vld [vmem:[#allocation67_spill] sm:$0xff] }
 0x144   :  { %7928 = vst [vmem:[#allocation122_spill] sm:$0xff] %v4875_v19  ;;  %v7939_v57 = vmov 0  ;;  %v1695_v61 = vsel %vm1694_vm2, %v3199_v25, 0  ;;  %v7945_v59 = vmov 0  ;;  %v702_v14 = vmul.f32 %v4791_v56, %v701_v38 }
 0x145   :  { %7933 = vst [vmem:[#allocation123_spill] sm:$0xff] %v7932_v3  ;;  %v7940_v57 = vsel %vm4904_vm4, 4294967295, %v7939_v57  ;;  %v7946_v59 = vsel %vm4918_vm7, 4294967295, %v7945_v59  ;;  %vm1758_vm9 = vcmp.lt.s32.totalorder %v1695_v61, 14  ;;  %v4926_v3 = vor.u32 1.1754944e-38, %v815_v29 }
 0x146   :  { %7934 = vst [vmem:[#allocation124_spill] sm:$0xff] %v4886_v18  ;;  %v775_v25 = vmul.f32 %v4890_v20, %v4812_v52  ;;  %v4930_v23 = vsel %vm1758_vm9, %v1695_v61, 14  ;;  %v4938_v18 = vor.u32 1.1754944e-38, %v785_v22  ;;  %v806_v61 = vsub.f32 1.0, %v805_v41 }
 0x147   :  { %7935 = vst [vmem:[#allocation125_spill] sm:$0xff] %v4890_v20  ;;  %vm7565_vm12 = vcmp.eq.s32.totalorder %v4053_v42, %v4930_v23  ;;  %v7563_v38 = vmov 1.0   ;;  %v7951_v22 = vsel %vm4621_vm5, %v4444_v48, %v4611_v47  ;;  %v4965_v29 = vor.u32 1.1754944e-38, %v755_v26  ;;  %v4987_v26 = vpop.xlane.xlu1 %406 }
 0x148   :  { %7936 = vst [vmem:[#allocation126_spill] sm:$0xff] %v4897_v34  ;;  %3248 = vmatpush.msk.msra.mxu0 %vm7565_vm12, %v7563_v38  ;;  %3264 = vmatpush.msk.msra.mxu3 %vm7565_vm12, %v7563_v38  ;;  %v4963_v41 = vsel %vm4816_vm1, %v4573_v5, %v7951_v22  ;;  %v7575_v19 = vmov 0.0   ;;  %v7954_v47 = vsel %vm4778_vm3, %v4600_v21, %v4759_v15  ;;  %v776_v0 = vsub.f32 1.0, %v775_v25  ;;  %vm5026_vm3 = vmor %vm704_vm15, %vm705_vm13  ;;  %v8043_v34 = vld [vmem:[#allocation88_spill] sm:$0xff] }
 0x149   :  { %7941 = vst [vmem:[#allocation127_spill] sm:$0xff] %v7940_v57  ;;  %v1550_v37 = vmul.f32 15.0, %v4963_v41  ;;  %v3231_v38 = vsel %vm7565_vm12, 1.0, %v7575_v19  ;;  %v4980_v5 = vsel %vm4855_vm8, %v4717_v10, %v7954_v47  ;;  %v4983_v48 = vadd.f32 %v4791_v56, %v702_v14  ;;  %v8046_v57 = vld [vmem:[#allocation87_spill] sm:$0xff] }
 0x14a   :  { %7942 = vst [vmem:[#allocation128_spill] sm:$0xff] %v4909_v62  ;;  %v4989_v22 = vsub.f32 %v3231_v38, %v3231_v38  ;;  %vm809_vm9 = vweird.f32 %v4789_v27  ;;  %vm810_vm5 = vweird.f32 %v4866_v2  ;;  %3611 = vrcp.f32 %v4987_v26 }
 0x14b   :  { %7947 = vst [vmem:[#allocation129_spill] sm:$0xff] %v7946_v59  ;;  %v1582_v21 = vceil.f32 %v1550_v37  ;;  %v1549_v10 = vmul.f32 15.0, %v4980_v5  ;;  %v7957_v14 = vsel %vm4667_vm0, %v4494_v60, %v4655_v16  ;;  %v807_v15 = vmul.f32 %v4866_v2, %v806_v61  ;;  %v5036_v61 = vpop.xlane.xlu2 %400  ;;  %v8011_v59 = vld [vmem:[#allocation91_spill] sm:$0xff] }
 0x14c   :  { %7948 = vst [vmem:[#allocation130_spill] sm:$0xff] %v4926_v3  ;;  %v5003_v54 = vsel %vm4849_vm11, %v4597_v31, %v7957_v14  ;;  %v860_v33 = vand.u32 2147483648, %v4987_v26  ;;  %2583 = vmatpush.msra.mxu2 %v4989_v22  ;;  %v7959_v60 = vsel %vm4544_vm6, %v4368_v9, %v4527_v28  ;;  %vm780_vm0 = vweird.f32 %v4890_v20 }
 0x14d   :  { %7949 = vst [vmem:[#allocation131_spill] sm:$0xff] %v4932_v4  ;;  %v1548_v37 = vmul.f32 15.0, %v5003_v54  ;;  %v5018_v31 = vsel %vm4870_vm10, %v4490_v1, %v7959_v60  ;;  %v3373_v16 = vcvt.f32.s32 %v1582_v21  ;;  %v1581_v30 = vceil.f32 %v1549_v10 }
 0x14e   :  { %7950 = vst [vmem:[#allocation132_spill] sm:$0xff] %v4938_v18  ;;  %v1547_v32 = vmul.f32 15.0, %v5018_v31  ;;  %v7962_v40 = vsel %vm5026_vm3, 4294967295, %v7961_v40  ;;  %v777_v9 = vmul.f32 %v4890_v20, %v776_v0  ;;  %v746_v28 = vsub.f32 1.0, %v745_v55  ;;  %v8048_v18 = vld [vmem:[#allocation80_spill] sm:$0xff] }
 0x14f   :  { %7952 = vst [vmem:[#allocation133_spill] sm:$0xff] %v4963_v41  ;;  %v1580_v49 = vceil.f32 %v1548_v37  ;;  %v3198_v38 = vadd.s32 4294967295, %v3373_v16  ;;  %v3371_v47 = vcvt.f32.s32 %v1581_v30  ;;  %v5039_v10 = vadd.f32 %v4866_v2, %v807_v15 }
 0x150   :  { %7953 = vst [vmem:[#allocation134_spill] sm:$0xff] %v4965_v29  ;;  %v1579_v21 = vceil.f32 %v1547_v32  ;;  %v5041_v14 = vor.u32 1.1754944e-38, %v860_v33  ;;  %3613 = vrcp.f32 %v5036_v61  ;;  %v5044_v55 = vpop.eup %3611  ;;  %v7965_v1 = vand.u32 2147483647, %v4377_v7 }
 0x151   :  { %7955 = vst [vmem:[#allocation135_spill] sm:$0xff] %v4980_v5  ;;  %v3369_v0 = vcvt.f32.s32 %v1580_v49  ;;  %vm1692_vm6 = vcmp.gt.s32.totalorder %v3198_v38, 0  ;;  %v3197_v60 = vadd.s32 4294967295, %v3371_v47  ;;  %v5054_v15 = vadd.f32 %v4890_v20, %v777_v9  ;;  %v8008_v47 = vld [vmem:[#allocation81_spill] sm:$0xff] }
 0x152   :  { %7956 = vst [vmem:[#allocation136_spill] sm:$0xff] %v4983_v48  ;;  %v3367_v25 = vcvt.f32.s32 %v1579_v21  ;;  %vm5049_vm10 = vcmp.eq.f32.partialorder %v7965_v1, 8.507059e+37  ;;  %v747_v33 = vmul.f32 %v4932_v4, %v746_v28  ;;  %v1693_v30 = vsel %vm1692_vm6, %v3198_v38, 0 }
 0x153   :  { %7958 = vst [vmem:[#allocation137_spill] sm:$0xff] %v5003_v54  ;;  %v3196_v32 = vadd.s32 4294967295, %v3369_v0  ;;  %v7969_v49 = vand.u32 2147483647, %v4268_v51  ;;  %v830_v7 = vand.u32 2147483648, %v5036_v61  ;;  %vm1756_vm8 = vcmp.lt.s32.totalorder %v1693_v30, 14 }
 0x154   :  { %7960 = vst [vmem:[#allocation138_spill] sm:$0xff] %v5018_v31  ;;  %vm1690_vm2 = vcmp.gt.s32.totalorder %v3197_v60, 0  ;;  %v3195_v1 = vadd.s32 4294967295, %v3367_v25  ;;  %vm749_vm15 = vweird.f32 %v4840_v53  ;;  %v850_v9 = vmul.f32 %v5044_v55, %v4987_v26  ;;  %v5275_v25 = vpop.xlane.xlu2 %409 }
 0x155   :  { %7963 = vst [vmem:[#allocation139_spill] sm:$0xff] %v7962_v40  ;;  %vm5060_vm11 = vcmp.eq.f32.partialorder %v7969_v49, 8.507059e+37  ;;  %v5068_v28 = vsel %vm1756_vm8, %v1693_v30, 14  ;;  %v1691_v38 = vsel %vm1690_vm2, %v3197_v60, 0  ;;  %vm1688_vm13 = vcmp.gt.s32.totalorder %v3196_v32, 0  ;;  %vm5084_vm8 = vmor %vm809_vm9, %vm810_vm5  ;;  %v5088_v30 = vpop.xlane.xlu0 %394 }
 0x156   :  { %7964 = vst [vmem:[#allocation140_spill] sm:$0xff] %v5039_v10  ;;  %vm7589_vm6 = vcmp.eq.s32.totalorder %v4053_v42, %v5068_v28  ;;  %vm1754_vm12 = vcmp.lt.s32.totalorder %v1691_v38, 14  ;;  %v1689_v51 = vsel %vm1688_vm13, %v3196_v32, 0  ;;  %vm1686_vm1 = vcmp.gt.s32.totalorder %v3195_v1, 0  ;;  %v5072_v21 = vpop.eup %3613  ;;  %v8117_v10 = vld [vmem:[#allocation28_spill] sm:$0xff] }
 0x157   :  { %7968 = vst [vmem:[#allocation141_spill] sm:$0xff] %v5054_v15  ;;  %v7972_v0 = vand.u32 2147483647, %v4231_v43  ;;  %v7977_v32 = vmov 1.0   ;;  %v5098_v43 = vsel %vm1754_vm12, %v1691_v38, 14  ;;  %v3230_v49 = vsel %vm7589_vm6, 1.0, %v7575_v19 }
 0x158   :  { %3249 = vmatpush.msk.msra.mxu0 %vm7589_vm6, %v7977_v32  ;;  %3265 = vmatpush.msk.msra.mxu3 %vm7589_vm6, %v7977_v32  ;;  %vm1752_vm9 = vcmp.lt.s32.totalorder %v1689_v51, 14  ;;  %vm7978_vm5 = vweird.f32 %v4812_v52  ;;  %v7979_v37 = vmov 0  ;;  %vm7570_vm13 = vcmp.eq.s32.totalorder %v4053_v42, %v5098_v43 }
 0x159   :  { %vm5076_vm14 = vcmp.eq.f32.partialorder %v7972_v0, 8.507059e+37  ;;  %v1687_v0 = vsel %vm1686_vm1, %v3195_v1, 0  ;;  %vm5108_vm2 = vmor %vm7978_vm5, %vm780_vm0  ;;  %v5114_v38 = vsub.f32 %v3230_v49, %v3230_v49  ;;  %v5116_v41 = vsel %vm1752_vm9, %v1689_v51, 14 }
 0x15a   :  { %v7980_v37 = vsel %vm5108_vm2, 4294967295, %v7979_v37  ;;  %7982 = vst [vmem:[#allocation143_spill] sm:$0xff] %v5116_v41  ;;  %vm1750_vm12 = vcmp.lt.s32.totalorder %v1687_v0, 14  ;;  %v851_v5 = vsub.f32 1.0, %v850_v9  ;;  %3250 = vmatpush.msk.msra.mxu0 %vm7570_vm13, %v7977_v32  ;;  %3266 = vmatpush.msk.msra.mxu3 %vm7570_vm13, %v7977_v32  ;;  %vm7588_vm0 = vcmp.eq.s32.totalorder %v4053_v42, %v5116_v41 }
 0x15b   :  { %7981 = vst [vmem:[#allocation142_spill] sm:$0xff] %v7980_v37  ;;  %v3229_v1 = vsel %vm7570_vm13, 1.0, %v7575_v19  ;;  %v5132_v51 = vsel %vm1750_vm12, %v1687_v0, 14  ;;  %v7984_v9 = vand.u32 2147483647, %v4290_v35  ;;  %3615 = vrcp.f32 %v5088_v30  ;;  %2586 = vmatpush.msra.mxu2 %v5114_v38 }
 0x15c   :  { %7983 = vst [vmem:[#allocation144_spill] sm:$0xff] %v5132_v51  ;;  %v5146_v31 = vsub.f32 %v3229_v1, %v3229_v1  ;;  %vm7577_vm9 = vcmp.eq.s32.totalorder %v4053_v42, %v5132_v51  ;;  %v5155_v0 = vadd.f32 %v4932_v4, %v747_v33  ;;  %vm854_vm5 = vweird.f32 %v4987_v26  ;;  %3251 = vmatpush.msk.msra.mxu0 %vm7588_vm0, %v7977_v32  ;;  %v5170_v33 = vpop.xlane.xlu1 %965  ;;  %v8059_v51 = vld [vmem:[#allocation74_spill] sm:$0xff] }
 0x15d   :  { %vm5136_vm1 = vcmp.eq.f32.partialorder %v7984_v9, 8.507059e+37  ;;  %vm855_vm12 = vweird.f32 %v5044_v55  ;;  %v5159_v9 = vor.u32 1.1754944e-38, %v830_v7  ;;  %3267 = vmatpush.msk.msra.mxu3 %vm7588_vm0, %v7977_v32  ;;  %v3228_v7 = vsel %vm7588_vm0, 1.0, %v7575_v19 }
 0x15e   :  { %7987 = vst [vmem:[#allocation145_spill] sm:$0xff] %v5155_v0  ;;  %2589 = vmatpush.msra.mxu2 %v5146_v31  ;;  %vm7988_vm13 = vnez %v7879_v36  ;;  %v7574_v48 = vand.u32 4294901760, %v5114_v38  ;;  %v852_v56 = vmul.f32 %v5044_v55, %v851_v5  ;;  %v820_v1 = vmul.f32 %v5072_v21, %v5036_v61  ;;  %3252 = vmatpush.msk.msra.mxu0 %vm7577_vm9, %v7977_v32 }
 0x15f   :  { %v7989_v35 = vsel %vm7988_vm13, %v4510_v39, %v4681_v24  ;;  %3268 = vmatpush.msk.msra.mxu3 %vm7577_vm9, %v7977_v32  ;;  %v5200_v24 = vsub.f32 %v3228_v7, %v3228_v7  ;;  %v7992_v39 = vmov 0  ;;  %3617 = vrcp.f32 %v5275_v25 }
 0x160   :  { %v5185_v54 = vsel %vm5049_vm10, %v4638_v11, %v7989_v35  ;;  %vm7991_vm10 = vweird.f32 %v4932_v4  ;;  %v7995_v11 = vand.u32 4294901760, %v4989_v22  ;;  %v2489_v16 = vsub.f32 %v5114_v38, %v7574_v48  ;;  %v8034_v4 = vld [vmem:[#allocation54_spill] sm:$0xff] }
 0x161   :  { %7990 = vst [vmem:[#allocation146_spill] sm:$0xff] %v5185_v54  ;;  %vm5206_vm13 = vmor %vm749_vm15, %vm7991_vm10  ;;  %v1546_v5 = vmul.f32 15.0, %v5185_v54  ;;  %v3227_v35 = vsel %vm7577_vm9, 1.0, %v7575_v19  ;;  %2592 = vmatpush.msra.mxu2 %v5200_v24  ;;  %vm967_vm15 = vcmp.eq.f32.partialorder %v4079_v50, %v5170_v33  ;;  %vm7996_vm10 = vnez %v7857_v46  ;;  %v5240_v19 = vpop.eup %3615 }
 0x162   :  { %v7993_v39 = vsel %vm5206_vm13, 4294967295, %v7992_v39  ;;  %v2483_v36 = vsub.f32 %v4989_v22, %v7995_v11  ;;  %v5226_v40 = vsub.f32 %v3227_v35, %v3227_v35  ;;  %v7997_v11 = vsel %vm7996_vm10, %v4390_v13, %v4556_v45 }
 0x163   :  { %7994 = vst [vmem:[#allocation147_spill] sm:$0xff] %v7993_v39  ;;  %v5238_v48 = vsel %vm5060_vm11, %v4500_v8, %v7997_v11  ;;  %vm824_vm9 = vweird.f32 %v5036_v61  ;;  %v1578_v35 = vceil.f32 %v1546_v5  ;;  %v2490_v54 = vand.u32 4294901760, %v2489_v16  ;;  %v8001_v5 = vld [vmem:[#allocation65_spill] sm:$0xff]  ;;  %v8004_v11 = vld [vmem:[#allocation78_spill] sm:$0xff] }
 0x164   :  { %7998 = vst [vmem:[#allocation148_spill] sm:$0xff] %v5238_v48  ;;  %v2484_v7 = vand.u32 4294901760, %v2483_v36  ;;  %v968_v62 = vsel %vm967_vm15, %v4270_v58, inf  ;;  %v5245_v50 = vadd.f32 %v5044_v55, %v852_v56  ;;  %v821_v46 = vsub.f32 1.0, %v820_v1  ;;  %2595 = vmatpush.msra.mxu2 %v5226_v40  ;;  %v7999_v36 = vld [vmem:[#allocation86_spill] sm:$0xff]  ;;  %v8002_v16 = vld [vmem:[#allocation85_spill] sm:$0xff] }
 0x165   :  { %v800_v45 = vand.u32 2147483648, %v5088_v30  ;;  %969 = vmin.xlane.f32.xlu2 %v968_v62  ;;  %v1545_v8 = vmul.f32 15.0, %v5238_v48  ;;  %v3365_v13 = vcvt.f32.s32 %v1578_v35  ;;  %vm8000_vm11 = vnez %v7999_v36  ;;  %v8006_v35 = vld [vmem:[#allocation97_spill] sm:$0xff]  ;;  %v8009_v36 = vld [vmem:[#allocation95_spill] sm:$0xff] }
 0x166   :  { %2485 = vmatpush.msra.mxu1 %v2484_v7  ;;  %v8003_v58 = vsel %vm8000_vm11, %v8001_v5, %v8002_v16  ;;  %v7584_v1 = vand.u32 4294901760, %v5200_v24  ;;  %v790_v62 = vmul.f32 %v5240_v19, %v5088_v30  ;;  %vm8007_vm15 = vnez %v8006_v35  ;;  %v5277_v16 = vpop.xlane.xlu0 %403 }
 0x167   :  { %v5259_v56 = vsel %vm5076_vm14, %v8004_v11, %v8003_v58  ;;  %v1577_v48 = vceil.f32 %v1545_v8  ;;  %v8010_v44 = vsel %vm8007_vm15, %v8008_v47, %v8009_v36  ;;  %v3194_v58 = vadd.s32 4294967295, %v3365_v13  ;;  %v8014_v36 = vld [vmem:[#allocation51_spill] sm:$0xff] }
 0x168   :  { %8005 = vst [vmem:[#allocation86_spill] sm:$0xff] %v5259_v56  ;;  %v1544_v7 = vmul.f32 15.0, %v5259_v56  ;;  %v5273_v5 = vsel %vm5136_vm1, %v8011_v59, %v8010_v44  ;;  %2491 = vmatpush.msra.mxu1 %v2490_v54  ;;  %v8013_v8 = vand.u32 4294901760, %v5146_v31  ;;  %v2501_v35 = vsub.f32 %v5200_v24, %v7584_v1  ;;  %vm5298_vm1 = vmor %vm854_vm5, %vm855_vm12  ;;  %v8051_v54 = vld [vmem:[#allocation20_spill] sm:$0xff] }
 0x169   :  { %8012 = vst [vmem:[#allocation65_spill] sm:$0xff] %v5273_v5  ;;  %v1543_v47 = vmul.f32 15.0, %v5273_v5  ;;  %v822_v49 = vmul.f32 %v5072_v21, %v821_v46  ;;  %v3363_v44 = vcvt.f32.s32 %v1577_v48  ;;  %v8015_v56 = vand.u32 2147483647, %v8014_v36 }
 0x16a   :  { %v2495_v11 = vsub.f32 %v5146_v31, %v8013_v8  ;;  %v1576_v59 = vceil.f32 %v1544_v7  ;;  %vm1684_vm10 = vcmp.gt.s32.totalorder %v3194_v58, 0  ;;  %v2502_v8 = vand.u32 4294901760, %v2501_v35  ;;  %v8067_v35 = vld [vmem:[#allocation90_spill] sm:$0xff] }
 0x16b   :  { %vm5290_vm14 = vcmp.eq.f32.partialorder %v8015_v56, 8.507059e+37  ;;  %v1575_v1 = vceil.f32 %v1543_v47  ;;  %v791_v48 = vsub.f32 1.0, %v790_v62  ;;  %v1685_v7 = vsel %vm1684_vm10, %v3194_v58, 0  ;;  %v8022_v62 = vld [vmem:[#allocation47_spill] sm:$0xff] }
 0x16c   :  { %v2496_v46 = vand.u32 4294901760, %v2495_v11  ;;  %v3193_v5 = vadd.s32 4294967295, %v3363_v44  ;;  %v3361_v36 = vcvt.f32.s32 %v1576_v59  ;;  %vm825_vm11 = vweird.f32 %v5072_v21  ;;  %v5322_v44 = vpop.eup %3617 }
 0x16d   :  { %v5303_v56 = vor.u32 1.1754944e-38, %v800_v45  ;;  %vm1748_vm15 = vcmp.lt.s32.totalorder %v1685_v7, 14  ;;  %v3359_v12 = vcvt.f32.s32 %v1575_v1  ;;  %v8023_v58 = vand.u32 2147483647, %v8022_v62  ;;  %v8030_v62 = vld [vmem:[#allocation48_spill] sm:$0xff] }
 0x16e   :  { %2497 = vmatpush.msra.mxu1 %v2496_v46  ;;  %v5309_v0 = vsel %vm1748_vm15, %v1685_v7, 14  ;;  %vm1682_vm5 = vcmp.gt.s32.totalorder %v3193_v5, 0  ;;  %v3192_v11 = vadd.s32 4294967295, %v3361_v36  ;;  %v5318_v45 = vadd.f32 %v5072_v21, %v822_v49  ;;  %vm5328_vm15 = vmor %vm824_vm9, %vm825_vm11 }
 0x16f   :  { %8020 = vst [vmem:[#allocation85_spill] sm:$0xff] %v5303_v56  ;;  %vm5313_vm12 = vcmp.eq.f32.partialorder %v8023_v58, 8.507059e+37  ;;  %vm7593_vm10 = vcmp.eq.s32.totalorder %v4053_v42, %v5309_v0  ;;  %v1683_v1 = vsel %vm1682_vm5, %v3193_v5, 0  ;;  %v3191_v47 = vadd.s32 4294967295, %v3359_v12 }
 0x170   :  { %8021 = vst [vmem:[#allocation78_spill] sm:$0xff] %v5309_v0  ;;  %2503 = vmatpush.msra.mxu1 %v2502_v8  ;;  %v792_v46 = vmul.f32 %v5240_v19, %v791_v48  ;;  %3253 = vmatpush.msk.msra.mxu0 %vm7593_vm10, %v7977_v32  ;;  %vm1746_vm5 = vcmp.lt.s32.totalorder %v1683_v1, 14  ;;  %v8028_v12 = vmov 0.0   ;;  %vm1680_vm9 = vcmp.gt.s32.totalorder %v3192_v11, 0  ;;  %v8056_v0 = vld [vmem:[#allocation75_spill] sm:$0xff] }
 0x171   :  { %3269 = vmatpush.msk.msra.mxu3 %vm7593_vm10, %v7977_v32  ;;  %v3226_v5 = vsel %vm7593_vm10, 1.0, %v8028_v12  ;;  %v5346_v8 = vsel %vm1746_vm5, %v1683_v1, 14  ;;  %v1681_v48 = vsel %vm1680_vm9, %v3192_v11, 0  ;;  %vm1678_vm11 = vcmp.gt.s32.totalorder %v3191_v47, 0 }
 0x172   :  { %8029 = vst [vmem:[#allocation97_spill] sm:$0xff] %v5346_v8  ;;  %vm7632_vm0 = vcmp.eq.s32.totalorder %v4053_v42, %v5346_v8  ;;  %v5350_v7 = vsub.f32 %v3226_v5, %v3226_v5  ;;  %vm1744_vm6 = vcmp.lt.s32.totalorder %v1681_v48, 14  ;;  %v1679_v36 = vsel %vm1678_vm11, %v3191_v47, 0  ;;  %v5382_v47 = vpop.xlane.xlu0 %412  ;;  %v8055_v8 = vld [vmem:[#allocation60_spill] sm:$0xff] }
 0x173   :  { %v8031_v58 = vand.u32 2147483647, %v8030_v62  ;;  %v8035_v39 = vand.u32 2147483647, %v8034_v4  ;;  %3254 = vmatpush.msk.msra.mxu0 %vm7632_vm0, %v7977_v32  ;;  %3270 = vmatpush.msk.msra.mxu3 %vm7632_vm0, %v7977_v32  ;;  %v5376_v4 = vsel %vm1744_vm6, %v1681_v48, 14  ;;  %vm1742_vm5 = vcmp.lt.s32.totalorder %v1679_v36, 14 }
 0x174   :  { %8038 = vst [vmem:[#allocation81_spill] sm:$0xff] %v5376_v4  ;;  %v865_v5 = vmul.f32 %v5322_v44, %v5275_v25  ;;  %2598 = vmatpush.msra.mxu2 %v5350_v7  ;;  %vm7621_vm9 = vcmp.eq.s32.totalorder %v4053_v42, %v5376_v4  ;;  %v5391_v48 = vsel %vm1742_vm5, %v1679_v36, 14  ;;  %3619 = vrcp.f32 %v5277_v16  ;;  %v8054_v4 = vld [vmem:[#allocation61_spill] sm:$0xff] }
 0x175   :  { %vm5354_vm3 = vcmp.eq.f32.partialorder %v8031_v58, 8.507059e+37  ;;  %vm5360_vm10 = vcmp.eq.f32.partialorder %v8035_v39, 8.507059e+37  ;;  %v3225_v39 = vsel %vm7632_vm0, 1.0, %v8028_v12  ;;  %8039 = vst [vmem:[#allocation95_spill] sm:$0xff] %v5391_v48  ;;  %3255 = vmatpush.msk.msra.mxu0 %vm7621_vm9, %v7977_v32  ;;  %3271 = vmatpush.msk.msra.mxu3 %vm7621_vm9, %v7977_v32  ;;  %vm7619_vm6 = vcmp.eq.s32.totalorder %v4053_v42, %v5391_v48  ;;  %v5404_v58 = vpop.xlane.xlu1 %1010  ;;  %v8058_v48 = vld [vmem:[#allocation55_spill] sm:$0xff] }
 0x176   :  { %v5389_v62 = vsub.f32 %v3225_v39, %v3225_v39  ;;  %8040 = vst [vmem:[#allocation91_spill] sm:$0xff] %v5404_v58  ;;  %v5406_v39 = vpop.xlane.xlu2 %995  ;;  %v3224_v11 = vsel %vm7621_vm9, 1.0, %v8028_v12  ;;  %3621 = vrcp.f32 %v5382_v47  ;;  %vm8044_vm11 = vnez %v8043_v34 }
 0x177   :  { %8041 = vst [vmem:[#allocation51_spill] sm:$0xff] %v5406_v39  ;;  %v5415_v49 = vsub.f32 %v3224_v11, %v3224_v11  ;;  %v8047_v63 = vsel %vm8044_vm11, %v8045_v17, %v8046_v57  ;;  %v7604_v15 = vand.u32 4294901760, %v5350_v7  ;;  %v5429_v20 = vadd.f32 %v5240_v19, %v792_v46  ;;  %3256 = vmatpush.msk.msra.mxu0 %vm7619_vm6, %v7977_v32  ;;  %v8052_v46 = vld [vmem:[#allocation22_spill] sm:$0xff] }
 0x178   :  { %2601 = vmatpush.msra.mxu2 %v5389_v62  ;;  %v5425_v36 = vsel %vm5290_vm14, %v8048_v18, %v8047_v63  ;;  %v875_v37 = vand.u32 2147483648, %v5275_v25  ;;  %3272 = vmatpush.msk.msra.mxu3 %vm7619_vm6, %v7977_v32  ;;  %v8050_v63 = vand.u32 4294901760, %v5226_v40  ;;  %v3223_v57 = vsel %vm7619_vm6, 1.0, %v8028_v12 }
 0x179   :  { %8042 = vst [vmem:[#allocation47_spill] sm:$0xff] %v5415_v49  ;;  %v1542_v34 = vmul.f32 15.0, %v5425_v36  ;;  %v2513_v18 = vsub.f32 %v5350_v7, %v7604_v15  ;;  %vm1012_vm14 = vcmp.eq.f32.partialorder %v8051_v54, %v5404_v58  ;;  %vm997_vm5 = vcmp.eq.f32.partialorder %v8052_v46, %v5406_v39  ;;  %v8061_v54 = vld [vmem:[#allocation69_spill] sm:$0xff]  ;;  %v8079_v39 = vld [vmem:[#allocation70_spill] sm:$0xff] }
 0x17a   :  { %8049 = vst [vmem:[#allocation48_spill] sm:$0xff] %v5425_v36  ;;  %v2507_v17 = vsub.f32 %v5226_v40, %v8050_v63  ;;  %2604 = vmatpush.msra.mxu2 %v5415_v49  ;;  %v866_v11 = vsub.f32 1.0, %v865_v5  ;;  %v5456_v56 = vsub.f32 %v3223_v57, %v3223_v57  ;;  %v1013_v15 = vsel %vm1012_vm14, %v8054_v4, inf  ;;  %v5471_v5 = vpop.eup %3619  ;;  %v8063_v57 = vld [vmem:[#allocation42_spill] sm:$0xff] }
 0x17b   :  { %v1574_v36 = vceil.f32 %v1542_v34  ;;  %v998_v6 = vsel %vm997_vm5, %v8055_v8, inf  ;;  %vm8057_vm11 = vnez %v8056_v0  ;;  %v2514_v34 = vand.u32 4294901760, %v2513_v18  ;;  %1014 = vmin.xlane.f32.xlu2 %v1013_v15  ;;  %v8070_v18 = vld [vmem:[#allocation89_spill] sm:$0xff]  ;;  %v8076_v8 = vld [vmem:[#allocation56_spill] sm:$0xff] }
 0x17c   :  { %v2508_v63 = vand.u32 4294901760, %v2507_v17  ;;  %8053 = vst [vmem:[#allocation54_spill] sm:$0xff] %v5456_v56  ;;  %v8060_v52 = vsel %vm8057_vm11, %v8058_v48, %v8059_v51  ;;  %2607 = vmatpush.msra.mxu2 %v5456_v56  ;;  %v5476_v0 = vpop.eup %3621  ;;  %v8064_v51 = vand.u32 2147483647, %v8063_v57  ;;  %999 = vmin.xlane.f32.xlu0 %v998_v6  ;;  %v7613_v57 = vand.u32 4294901760, %v5415_v49 }
 0x17d   :  { %v5469_v46 = vsel %vm5313_vm12, %v8061_v54, %v8060_v52  ;;  %v3357_v17 = vcvt.f32.s32 %v1574_v36  ;;  %v5484_v52 = vor.u32 1.1754944e-38, %v875_v37  ;;  %vm8068_vm12 = vnez %v8067_v35  ;;  %v8069_v36 = vld [vmem:[#allocation71_spill] sm:$0xff] }
 0x17e   :  { %8062 = vst [vmem:[#allocation88_spill] sm:$0xff] %v5469_v46  ;;  %2509 = vmatpush.msra.mxu1 %v2508_v63  ;;  %v1541_v4 = vmul.f32 15.0, %v5469_v46  ;;  %vm5480_vm14 = vcmp.eq.f32.partialorder %v8064_v51, 8.507059e+37  ;;  %v8071_v63 = vsel %vm8068_vm12, %v8069_v36, %v8070_v18  ;;  %v8072_v54 = vld [vmem:[#allocation83_spill] sm:$0xff]  ;;  %v8077_v46 = vld [vmem:[#allocation76_spill] sm:$0xff]  ;;  %v867_v15 = vmul.f32 %v5322_v44, %v866_v11 }
 0x17f   :  { %v5494_v53 = vsel %vm5360_vm10, %v8072_v54, %v8071_v63  ;;  %v8074_v51 = vld [vmem:[#allocation79_spill] sm:$0xff]  ;;  %v3190_v35 = vadd.s32 4294967295, %v3357_v17  ;;  %v8081_v1 = vand.u32 4294901760, %v5389_v62  ;;  %v5513_v63 = vmul.f32 %v5471_v5, %v5277_v16 }
 0x180   :  { %8073 = vst [vmem:[#allocation67_spill] sm:$0xff] %v5494_v53  ;;  %vm8075_vm5 = vnez %v8074_v51  ;;  %2515 = vmatpush.msra.mxu1 %v2514_v34  ;;  %v1573_v36 = vceil.f32 %v1541_v4  ;;  %v2525_v29 = vsub.f32 %v5415_v49, %v7613_v57  ;;  %v5522_v11 = vmul.f32 %v5476_v0, %v5382_v47 }
 0x181   :  { %v8078_v37 = vsel %vm8075_vm5, %v8076_v8, %v8077_v46  ;;  %v2519_v18 = vsub.f32 %v5389_v62, %v8081_v1  ;;  %v1540_v46 = vmul.f32 15.0, %v5494_v53  ;;  %v7620_v41 = vand.u32 4294901760, %v5456_v56 }
 0x182   :  { %v5505_v6 = vsel %vm5354_vm3, %v8079_v39, %v8078_v37  ;;  %vm1676_vm3 = vcmp.gt.s32.totalorder %v3190_v35, 0  ;;  %v3355_v17 = vcvt.f32.s32 %v1573_v36  ;;  %v2526_v54 = vand.u32 4294901760, %v2525_v29 }
 0x183   :  { %8080 = vst [vmem:[#allocation87_spill] sm:$0xff] %v5505_v6  ;;  %v1539_v39 = vmul.f32 15.0, %v5505_v6  ;;  %v2520_v34 = vand.u32 4294901760, %v2519_v18  ;;  %v1677_v4 = vsel %vm1676_vm3, %v3190_v35, 0  ;;  %v1572_v8 = vceil.f32 %v1540_v46 }
 0x184   :  { %v5525_v37 = vadd.f32 %v5322_v44, %v867_v15  ;;  %vm1740_vm10 = vcmp.lt.s32.totalorder %v1677_v4, 14  ;;  %v3189_v57 = vadd.s32 4294967295, %v3355_v17  ;;  %v8083_v15 = vld [vmem:[#allocation49_spill] sm:$0xff]  ;;  %vm869_vm9 = vweird.f32 %v5275_v25 }
 0x185   :  { %v1571_v51 = vceil.f32 %v1539_v39  ;;  %2521 = vmatpush.msra.mxu1 %v2520_v34  ;;  %v5528_v53 = vsel %vm1740_vm10, %v1677_v4, 14  ;;  %v3353_v6 = vcvt.f32.s32 %v1572_v8  ;;  %v8084_v18 = vand.u32 2147483647, %v8083_v15  ;;  %v8091_v15 = vld [vmem:[#allocation64_spill] sm:$0xff] }
 0x186   :  { %8082 = vst [vmem:[#allocation80_spill] sm:$0xff] %v5528_v53  ;;  %vm7618_vm11 = vcmp.eq.s32.totalorder %v4053_v42, %v5528_v53  ;;  %vm1674_vm12 = vcmp.gt.s32.totalorder %v3189_v57, 0  ;;  %v2531_v8 = vsub.f32 %v5456_v56, %v7620_v41  ;;  %vm8172_vm13 = vweird.f32 %v5088_v30 }
 0x187   :  { %v3351_v58 = vcvt.f32.s32 %v1571_v51  ;;  %2527 = vmatpush.msra.mxu1 %v2526_v54  ;;  %vm5537_vm5 = vcmp.eq.f32.partialorder %v8084_v18, 8.507059e+37  ;;  %3257 = vmatpush.msk.msra.mxu0 %vm7618_vm11, %v7977_v32  ;;  %v1675_v29 = vsel %vm1674_vm12, %v3189_v57, 0  ;;  %v3222_v39 = vsel %vm7618_vm11, 1.0, %v8028_v12  ;;  %v8088_v54 = vld [vmem:[#allocation68_spill] sm:$0xff]  ;;  %v8093_v57 = vld [vmem:[#allocation62_spill] sm:$0xff] }
 0x188   :  { %3273 = vmatpush.msk.msra.mxu3 %vm7618_vm11, %v7977_v32  ;;  %v3188_v17 = vadd.s32 4294967295, %v3353_v6  ;;  %vm1738_vm3 = vcmp.lt.s32.totalorder %v1675_v29, 14  ;;  %v5553_v4 = vsub.f32 %v3222_v39, %v3222_v39  ;;  %vm8089_vm10 = vnez %v8088_v54  ;;  %v8090_v51 = vld [vmem:[#allocation52_spill] sm:$0xff]  ;;  %v8096_v6 = vld [vmem:[#allocation43_spill] sm:$0xff]  ;;  %v5582_v54 = vpop.xlane.xlu2 %1040 }
 0x189   :  { %v3187_v34 = vadd.s32 4294967295, %v3351_v58  ;;  %v8092_v18 = vsel %vm8089_vm10, %v8090_v51, %v8091_v15  ;;  %v5568_v36 = vsel %vm1738_vm3, %v1675_v29, 14  ;;  %v8097_v39 = vand.u32 2147483647, %v8096_v6  ;;  %8100 = vst [vmem:[#allocation60_spill] sm:$0xff] %v5582_v54 }
 0x18a   :  { %8087 = vst [vmem:[#allocation20_spill] sm:$0xff] %v5553_v4  ;;  %v5566_v1 = vsel %vm5480_vm14, %v8093_v57, %v8092_v18  ;;  %vm1672_vm12 = vcmp.gt.s32.totalorder %v3188_v17, 0  ;;  %vm870_vm10 = vweird.f32 %v5322_v44  ;;  %vm7622_vm14 = vcmp.eq.s32.totalorder %v4053_v42, %v5568_v36  ;;  %2610 = vmatpush.msra.mxu2 %v5553_v4 }
 0x18b   :  { %8094 = vst [vmem:[#allocation22_spill] sm:$0xff] %v5566_v1  ;;  %vm1670_vm11 = vcmp.gt.s32.totalorder %v3187_v34, 0  ;;  %v1538_v58 = vmul.f32 15.0, %v5566_v1  ;;  %vm5573_vm6 = vcmp.eq.f32.partialorder %v8097_v39, 8.507059e+37  ;;  %v1673_v48 = vsel %vm1672_vm12, %v3188_v17, 0  ;;  %3258 = vmatpush.msk.msra.mxu0 %vm7622_vm14, %v7977_v32  ;;  %3274 = vmatpush.msk.msra.mxu3 %vm7622_vm14, %v7977_v32  ;;  %v8105_v1 = vld [vmem:[#allocation23_spill] sm:$0xff] }
 0x18c   :  { %8095 = vst [vmem:[#allocation61_spill] sm:$0xff] %v5568_v36  ;;  %v1671_v29 = vsel %vm1670_vm11, %v3187_v34, 0  ;;  %v2532_v51 = vand.u32 4294901760, %v2531_v8  ;;  %vm1736_vm3 = vcmp.lt.s32.totalorder %v1673_v48, 14  ;;  %v3221_v17 = vsel %vm7622_vm14, 1.0, %v8028_v12  ;;  %v5596_v34 = vpop.xlane.xlu1 %1055  ;;  %v5598_v8 = vpop.xlane.xlu0 %980 }
 0x18d   :  { %vm1734_vm11 = vcmp.lt.s32.totalorder %v1671_v29, 14  ;;  %8101 = vst [vmem:[#allocation75_spill] sm:$0xff] %v5596_v34  ;;  %v1570_v15 = vceil.f32 %v1538_v58  ;;  %v5600_v18 = vsel %vm1736_vm3, %v1673_v48, 14  ;;  %v5602_v57 = vsub.f32 %v3221_v17, %v3221_v17 }
 0x18e   :  { %8102 = vst [vmem:[#allocation55_spill] sm:$0xff] %v5598_v8  ;;  %v5604_v6 = vsel %vm1734_vm11, %v1671_v29, 14  ;;  %2533 = vmatpush.msra.mxu1 %v2532_v51  ;;  %v7626_v39 = vand.u32 4294901760, %v5553_v4  ;;  %vm7628_vm12 = vcmp.eq.s32.totalorder %v4053_v42, %v5600_v18  ;;  %v1051_v36 = vand.u32 65535, %v8105_v1  ;;  %v8106_v29 = vld [vmem:[#allocation26_spill] sm:$0xff] }
 0x18f   :  { %8103 = vst [vmem:[#allocation74_spill] sm:$0xff] %v5600_v18  ;;  %vm7636_vm14 = vcmp.eq.s32.totalorder %v4053_v42, %v5604_v6  ;;  %v3349_v35 = vcvt.f32.s32 %v1570_v15  ;;  %3259 = vmatpush.msk.msra.mxu0 %vm7628_vm12, %v7977_v32  ;;  %3275 = vmatpush.msk.msra.mxu3 %vm7628_vm12, %v7977_v32  ;;  %v3220_v58 = vsel %vm7628_vm12, 1.0, %v8028_v12  ;;  %vm1057_vm3 = vcmp.eq.f32.partialorder %v8106_v29, %v5596_v34  ;;  %v8107_v29 = vld [vmem:[#allocation21_spill] sm:$0xff] }
 0x190   :  { %8104 = vst [vmem:[#allocation69_spill] sm:$0xff] %v5604_v6  ;;  %v2537_v48 = vsub.f32 %v5553_v4, %v7626_v39  ;;  %v3219_v1 = vsel %vm7636_vm14, 1.0, %v8028_v12  ;;  %2613 = vmatpush.msra.mxu2 %v5602_v57  ;;  %v5634_v51 = vsub.f32 %v3220_v58, %v3220_v58  ;;  %v1053_v18 = vcvt.s32.f32 %v1051_v36  ;;  %v8108_v58 = vld [vmem:[#allocation25_spill] sm:$0xff] }
 0x191   :  { %v3186_v17 = vadd.s32 4294967295, %v3349_v35  ;;  %v5636_v15 = vsub.f32 %v3219_v1, %v3219_v1  ;;  %3260 = vmatpush.msk.msra.mxu0 %vm7636_vm14, %v7977_v32  ;;  %3276 = vmatpush.msk.msra.mxu3 %vm7636_vm14, %v7977_v32  ;;  %v1036_v34 = vand.u32 65535, %v8107_v29  ;;  %vm1042_vm11 = vcmp.eq.f32.partialorder %v8108_v58, %v5582_v54  ;;  %v8109_v35 = vld [vmem:[#allocation82_spill] sm:$0xff]  ;;  %v8111_v1 = vld [vmem:[#allocation59_spill] sm:$0xff]  ;;  %v8112_v36 = vld [vmem:[#allocation77_spill] sm:$0xff] }
 0x192   :  { %v2538_v39 = vand.u32 4294901760, %v2537_v48  ;;  %vm8110_vm12 = vnez %v8109_v35  ;;  %v8114_v4 = vld [vmem:[#allocation73_spill] sm:$0xff]  ;;  %2616 = vmatpush.msra.mxu2 %v5634_v51  ;;  %v1058_v6 = vsel %vm1057_vm3, %v1053_v18, inf  ;;  %v8116_v29 = vld [vmem:[#allocation24_spill] sm:$0xff]  ;;  %v7640_v58 = vand.u32 4294901760, %v5634_v51  ;;  %v8141_v54 = vld [vmem:[#allocation30_spill] sm:$0xff] }
 0x193   :  { %v8113_v53 = vsel %vm8110_vm12, %v8111_v1, %v8112_v36  ;;  %vm1668_vm0 = vcmp.gt.s32.totalorder %v3186_v17, 0  ;;  %v976_v49 = vand.u32 65535, %v8116_v29  ;;  %1059 = vmin.xlane.f32.xlu2 %v1058_v6  ;;  %v1038_v35 = vcvt.s32.f32 %v1036_v34  ;;  %v8120_v18 = vld [vmem:[#allocation53_spill] sm:$0xff]  ;;  %v8121_v36 = vld [vmem:[#allocation66_spill] sm:$0xff]  ;;  %v8123_v29 = vld [vmem:[#allocation63_spill] sm:$0xff] }
 0x194   :  { %v5657_v56 = vsel %vm5537_vm5, %v8114_v4, %v8113_v53  ;;  %v1669_v3 = vsel %vm1668_vm0, %v3186_v17, 0  ;;  %2539 = vmatpush.msra.mxu1 %v2538_v39  ;;  %vm982_vm12 = vcmp.eq.f32.partialorder %v8117_v10, %v5598_v8  ;;  %v7638_v1 = vand.u32 4294901760, %v5602_v57  ;;  %2619 = vmatpush.msra.mxu2 %v5636_v15  ;;  %v8118_v4 = vld [vmem:[#allocation72_spill] sm:$0xff]  ;;  %vm5691_vm0 = vmor %vm869_vm9, %vm870_vm10 }
 0x195   :  { %8115 = vst [vmem:[#allocation42_spill] sm:$0xff] %v5657_v56  ;;  %v1537_v48 = vmul.f32 15.0, %v5657_v56  ;;  %vm1732_vm14 = vcmp.lt.s32.totalorder %v1669_v3, 14  ;;  %v978_v46 = vcvt.s32.f32 %v976_v49  ;;  %vm8119_vm5 = vnez %v8118_v4 }
 0x196   :  { %v8122_v56 = vsel %vm8119_vm5, %v8120_v18, %v8121_v36  ;;  %v5676_v34 = vsel %vm1732_vm14, %v1669_v3, 14  ;;  %v1043_v39 = vsel %vm1042_vm11, %v1038_v35, inf  ;;  %v2543_v49 = vsub.f32 %v5602_v57, %v7638_v1  ;;  %v5701_v35 = vpop.xlane.xlu0 %1025  ;;  %v5716_v18 = vpop.xlane.xlu1 %1100 }
 0x197   :  { %v1569_v53 = vceil.f32 %v1537_v48  ;;  %v5674_v6 = vsel %vm5573_vm6, %v8123_v29, %v8122_v56  ;;  %8125 = vst [vmem:[#allocation71_spill] sm:$0xff] %v5676_v34  ;;  %v5685_v48 = vpop.xlane.xlu2 %1085  ;;  %vm7642_vm6 = vcmp.eq.s32.totalorder %v4053_v42, %v5676_v34  ;;  %1044 = vmin.xlane.f32.xlu0 %v1043_v39  ;;  %v983_v56 = vsel %vm982_vm12, %v978_v46, inf }
 0x198   :  { %8124 = vst [vmem:[#allocation90_spill] sm:$0xff] %v5674_v6  ;;  %v1536_v17 = vmul.f32 15.0, %v5674_v6  ;;  %3261 = vmatpush.msk.msra.mxu0 %vm7642_vm6, %v7977_v32  ;;  %3277 = vmatpush.msk.msra.mxu3 %vm7642_vm6, %v7977_v32  ;;  %v3218_v10 = vsel %vm7642_vm6, 1.0, %v8028_v12  ;;  %v8130_v36 = vsub.f32 1.0, %v5522_v11  ;;  %vm884_vm9 = vweird.f32 %v5382_v47 }
 0x199   :  { %8126 = vst [vmem:[#allocation89_spill] sm:$0xff] %v5685_v48  ;;  %v3347_v3 = vcvt.f32.s32 %v1569_v53  ;;  %v2544_v53 = vand.u32 4294901760, %v2543_v49  ;;  %984 = vmin.xlane.f32.xlu1 %v983_v56  ;;  %v5721_v1 = vsub.f32 %v3218_v10, %v3218_v10  ;;  %v2549_v49 = vsub.f32 %v5634_v51, %v7640_v58 }
 0x19a   :  { %v1568_v46 = vceil.f32 %v1536_v17  ;;  %8129 = vst [vmem:[#allocation83_spill] sm:$0xff] %v5716_v18  ;;  %v882_v29 = vmul.f32 %v5476_v0, %v8130_v36  ;;  %v8131_v17 = vsub.f32 1.0, %v5513_v63  ;;  %vm885_vm14 = vweird.f32 %v5476_v0 }
 0x19b   :  { %v3185_v39 = vadd.s32 4294967295, %v3347_v3  ;;  %2545 = vmatpush.msra.mxu1 %v2544_v53  ;;  %v7644_v3 = vand.u32 4294901760, %v5636_v15  ;;  %2622 = vmatpush.msra.mxu2 %v5721_v1  ;;  %v2550_v10 = vand.u32 4294901760, %v2549_v49  ;;  %v7643_v36 = vand.u32 4294901760, %v5721_v1  ;;  %v8132_v49 = vld [vmem:[#allocation29_spill] sm:$0xff] }
 0x19c   :  { %v837_v6 = vmul.f32 %v5471_v5, %v8131_v17  ;;  %v3345_v11 = vcvt.f32.s32 %v1568_v46  ;;  %v5743_v46 = vadd.f32 %v5476_v0, %v882_v29  ;;  %v1096_v4 = vand.u32 65535, %v8132_v49 }
 0x19d   :  { %vm1666_vm10 = vcmp.gt.s32.totalorder %v3185_v39, 0  ;;  %v2555_v53 = vsub.f32 %v5636_v15, %v7644_v3  ;;  %2551 = vmatpush.msra.mxu1 %v2550_v10  ;;  %v2561_v17 = vsub.f32 %v5721_v1, %v7643_v36  ;;  %v8136_v29 = vand.u32 2147483647, %v5275_v25 }
 0x19e   :  { %v1667_v58 = vsel %vm1666_vm10, %v3185_v39, 0  ;;  %v3184_v63 = vadd.s32 4294967295, %v3345_v11  ;;  %v8134_v39 = vld [vmem:[#allocation32_spill] sm:$0xff]  ;;  %v8135_v11 = vld [vmem:[#allocation27_spill] sm:$0xff]  ;;  %v1098_v36 = vcvt.s32.f32 %v1096_v4  ;;  %v5789_v34 = vpop.xlane.xlu0 %1070  ;;  %vm840_vm6 = vweird.f32 %v5471_v5 }
 0x19f   :  { %vm1730_vm3 = vcmp.lt.s32.totalorder %v1667_v58, 14  ;;  %vm1102_vm12 = vcmp.eq.f32.partialorder %v8134_v39, %v5716_v18  ;;  %v1081_v8 = vand.u32 65535, %v8135_v11  ;;  %vm5757_vm10 = vcmp.eq.f32.partialorder %v8136_v29, 8.507059e+37  ;;  %v5778_v4 = vpop.xlane.xlu2 %1130  ;;  %v8145_v39 = vld [vmem:[#allocation34_spill] sm:$0xff] }
 0x1a0   :  { %v5749_v56 = vsel %vm1730_vm3, %v1667_v58, 14  ;;  %vm1664_vm11 = vcmp.gt.s32.totalorder %v3184_v63, 0  ;;  %v2556_v49 = vand.u32 4294901760, %v2555_v53  ;;  %v1103_v3 = vsel %vm1102_vm12, %v1098_v36, inf  ;;  %v5802_v36 = vpop.xlane.xlu1 %1145  ;;  %vm5829_vm12 = vmor %vm884_vm9, %vm885_vm14 }
 0x1a1   :  { %8133 = vst [vmem:[#allocation79_spill] sm:$0xff] %v5749_v56  ;;  %vm7648_vm3 = vcmp.eq.s32.totalorder %v4053_v42, %v5749_v56  ;;  %v1665_v58 = vsel %vm1664_vm11, %v3184_v63, 0  ;;  %v1083_v11 = vcvt.s32.f32 %v1081_v8  ;;  %v8139_v63 = vld [vmem:[#allocation31_spill] sm:$0xff]  ;;  %v1021_v56 = vand.u32 65535, %v8141_v54  ;;  %1104 = vmin.xlane.f32.xlu2 %v1103_v3 }
 0x1a2   :  { %3262 = vmatpush.msk.msra.mxu0 %vm7648_vm3, %v7977_v32  ;;  %3278 = vmatpush.msk.msra.mxu3 %vm7648_vm3, %v7977_v32  ;;  %vm1728_vm5 = vcmp.lt.s32.totalorder %v1665_v58, 14  ;;  %v3217_v25 = vsel %vm7648_vm3, 1.0, %v8028_v12  ;;  %vm1087_vm11 = vcmp.eq.f32.partialorder %v8139_v63, %v5685_v48  ;;  %v8142_v8 = vand.u32 2147483647, %v4987_v26 }
 0x1a3   :  { %v5781_v53 = vsel %vm1728_vm5, %v1665_v58, 14  ;;  %v5783_v29 = vsub.f32 %v3217_v25, %v3217_v25  ;;  %2557 = vmatpush.msra.mxu1 %v2556_v49  ;;  %v890_v58 = vand.u32 2147483648, %v5382_v47  ;;  %v1088_v49 = vsel %vm1087_vm11, %v1083_v11, inf }
 0x1a4   :  { %8140 = vst [vmem:[#allocation56_spill] sm:$0xff] %v5781_v53  ;;  %vm5793_vm3 = vcmp.eq.f32.partialorder %v8142_v8, 8.507059e+37  ;;  %vm7652_vm5 = vcmp.eq.s32.totalorder %v4053_v42, %v5781_v53  ;;  %v2562_v54 = vand.u32 4294901760, %v2561_v17  ;;  %v1023_v3 = vcvt.s32.f32 %v1021_v56  ;;  %v8152_v17 = vld [vmem:[#allocation35_spill] sm:$0xff]  ;;  %1089 = vmin.xlane.f32.xlu0 %v1088_v49 }
 0x1a5   :  { %3263 = vmatpush.msk.msra.mxu0 %vm7652_vm5, %v7977_v32  ;;  %3279 = vmatpush.msk.msra.mxu3 %vm7652_vm5, %v7977_v32  ;;  %v3216_v26 = vsel %vm7652_vm5, 1.0, %v8028_v12  ;;  %v8146_v11 = vand.u32 2147483647, %v5036_v61  ;;  %v838_v48 = vadd.f32 %v5471_v5, %v837_v6  ;;  %v8151_v61 = vand.u32 4294901760, %v4989_v22 }
 0x1a6   :  { %2625 = vmatpush.msra.mxu2 %v5783_v29  ;;  %v5836_v56 = vsub.f32 %v3216_v26, %v3216_v26  ;;  %v887_v6 = vsel %vm5829_vm12, %v5476_v0, %v5743_v46  ;;  %2563 = vmatpush.msra.mxu1 %v2562_v54  ;;  %vm8153_vm9 = vcmp.eq.f32.partialorder %v8145_v39, %v5701_v35  ;;  %v8154_v53 = vand.u32 4294901760, %v5783_v29  ;;  %v8155_v26 = vld [vmem:[#allocation38_spill] sm:$0xff]  ;;  %v8160_v39 = vld [vmem:[#allocation33_spill] sm:$0xff] }
 0x1a7   :  { %vm5819_vm11 = vcmp.eq.f32.partialorder %v8146_v11, 8.507059e+37  ;;  %2677 = vmatpush.msrb.mxu0 %v8151_v61  ;;  %v1141_v11 = vand.u32 65535, %v8152_v17  ;;  %v1028_v25 = vsel %vm8153_vm9, %v1023_v3, inf  ;;  %v8156_v61 = vand.u32 2147483647, %v4789_v27  ;;  %v8162_v3 = vld [vmem:[#allocation37_spill] sm:$0xff] }
 0x1a8   :  { %v2567_v22 = vsub.f32 %v5783_v29, %v8154_v53  ;;  %v891_v0 = vor.u32 1.1754944e-38, %v890_v58  ;;  %2628 = vmatpush.msra.mxu2 %v5836_v56  ;;  %v8159_v18 = vand.u32 4294901760, %v5114_v38  ;;  %v2572_v46 = vand.u32 4294901760, %v5836_v56  ;;  %1029 = vmin.xlane.f32.xlu1 %v1028_v25 }
 0x1a9   :  { %vm5853_vm5 = vcmp.eq.f32.partialorder %v8156_v61, 8.507059e+37  ;;  %v1143_v49 = vcvt.s32.f32 %v1141_v11  ;;  %v1126_v53 = vand.u32 65535, %v8160_v39  ;;  %v8161_v54 = vand.u32 2147483647, %v5382_v47  ;;  %v8163_v61 = vld [vmem:[#allocation36_spill] sm:$0xff] }
 0x1aa   :  { %2681 = vmatpush.msrb.mxu0 %v8159_v18  ;;  %v2568_v27 = vand.u32 4294901760, %v2567_v22  ;;  %v1066_v58 = vand.u32 65535, %v8163_v61  ;;  %vm8164_vm14 = vweird.f32 %v5277_v16  ;;  %v8167_v11 = vand.u32 4294901760, %v5146_v31  ;;  %v8170_v31 = vld [vmem:[#allocation40_spill] sm:$0xff] }
 0x1ab   :  { %vm889_vm12 = vcmp.eq.f32.partialorder %v8161_v54, 8.507059e+37  ;;  %vm5871_vm7 = vmor %vm8164_vm14, %vm840_vm6  ;;  %v2573_v47 = vsub.f32 %v5836_v56, %v2572_v46  ;;  %vm8168_vm9 = vcmp.eq.f32.partialorder %v8155_v26, %v5802_v36  ;;  %v1128_v22 = vcvt.s32.f32 %v1126_v53  ;;  %v8274_v26 = vld [vmem:[#allocation74_spill] sm:$0xff] }
 0x1ac   :  { %2685 = vmatpush.msrb.mxu0 %v8167_v11  ;;  %v1148_v25 = vsel %vm8168_vm9, %v1143_v49, inf  ;;  %v5883_v18 = vsel %vm889_vm12, %v891_v0, %v887_v6  ;;  %v842_v39 = vsel %vm5871_vm7, %v5471_v5, %v838_v48  ;;  %2569 = vmatpush.msra.mxu1 %v2568_v27  ;;  %v1068_v54 = vcvt.s32.f32 %v1066_v58  ;;  %v5904_v48 = vpop.xlane.xlu2 %1175 }
 0x1ad   :  { %8169 = vst [vmem:[#allocation76_spill] sm:$0xff] %v5883_v18  ;;  %vm1072_vm6 = vcmp.eq.f32.partialorder %v8170_v31, %v5789_v34  ;;  %v1567_v61 = vmul.f32 15.0, %v5883_v18  ;;  %vm8171_vm14 = vweird.f32 %v5240_v19  ;;  %v8175_v6 = vand.u32 4294901760, %v5200_v24  ;;  %1149 = vmin.xlane.f32.xlu2 %v1148_v25  ;;  %v8179_v24 = vld [vmem:[#allocation39_spill] sm:$0xff]  ;;  %v8184_v25 = vld [vmem:[#allocation41_spill] sm:$0xff] }
 0x1ae   :  { %vm5895_vm4 = vmor %vm8172_vm13, %vm8171_vm14  ;;  %v2574_v0 = vand.u32 4294901760, %v2573_v47  ;;  %vm8176_vm7 = vcmp.eq.f32.partialorder %v8162_v3, %v5778_v4  ;;  %v8177_v49 = vsel %vm5691_vm0, %v5322_v44, %v5525_v37  ;;  %v1171_v27 = vand.u32 65535, %v8179_v24  ;;  %v5927_v37 = vpop.xlane.xlu0 %1115  ;;  %v104_v18 = vld [vmem:[%s7444_s1 + $0x58] sm:$0xff] }
 0x1af   :  { %2689 = vmatpush.msrb.mxu0 %v8175_v6  ;;  %v1133_v5 = vsel %vm8176_vm7, %v1128_v22, inf  ;;  %v5914_v53 = vsel %vm5757_vm10, %v5484_v52, %v8177_v49  ;;  %v797_v3 = vsel %vm5895_vm4, %v5240_v19, %v5429_v20  ;;  %v8180_v58 = vcvt.f32.s32 %v5170_v33 }
 0x1b0   :  { %8178 = vst [vmem:[#allocation70_spill] sm:$0xff] %v5914_v53  ;;  %v8181_v41 = vand.u32 2147483648, %v5277_v16  ;;  %v1599_v44 = vceil.f32 %v1567_v61  ;;  %v8182_v52 = vand.u32 2147483647, %v5277_v16  ;;  %2575 = vmatpush.msra.mxu1 %v2574_v0  ;;  %v8183_v10 = vand.u32 4294901760, %v5226_v40  ;;  %1134 = vmin.xlane.f32.xlu0 %v1133_v5  ;;  %v8186_v61 = vld [vmem:[#allocation44_spill] sm:$0xff] }
 0x1b1   :  { %v5923_v38 = vshll.u32 %v8180_v58, 16  ;;  %v1073_v47 = vsel %vm1072_vm6, %v1068_v54, inf  ;;  %v1566_v33 = vmul.f32 15.0, %v5914_v53  ;;  %v1111_v22 = vand.u32 65535, %v8184_v25  ;;  %v8191_v5 = vld [vmem:[#allocation45_spill] sm:$0xff]  ;;  %v8201_v58 = vld [vmem:[#allocation47_spill] sm:$0xff] }
 0x1b2   :  { %v846_v11 = vor.u32 1.1754944e-38, %v8181_v41  ;;  %vm844_vm13 = vcmp.eq.f32.partialorder %v8182_v52, 8.507059e+37  ;;  %2693 = vmatpush.msrb.mxu0 %v8183_v10  ;;  %vm8185_vm0 = vcmp.eq.s32.totalorder %v4053_v42, %v4930_v23  ;;  %v3407_v16 = vcvt.f32.s32 %v1599_v44  ;;  %1074 = vmin.xlane.f32.xlu1 %v1073_v47  ;;  %v8203_v10 = vld [vmem:[#allocation143_spill] sm:$0xff]  ;;  %v8205_v47 = vld [vmem:[#allocation58_spill] sm:$0xff] }
 0x1b3   :  { %3280 = vmatpush.msk.msrb.mxu1 %vm8185_vm0, %v7977_v32  ;;  %vm1177_vm10 = vcmp.eq.f32.partialorder %v8186_v61, %v5904_v48  ;;  %v8187_v40 = vsel %vm5298_vm1, %v5044_v55, %v5245_v50  ;;  %v8190_v23 = vand.u32 4294901760, %v5350_v7  ;;  %v1598_v6 = vceil.f32 %v1566_v33  ;;  %v8207_v33 = vld [vmem:[#allocation117_spill] sm:$0xff] }
 0x1b4   :  { %v5952_v54 = vsel %vm5793_vm3, %v5041_v14, %v8187_v40  ;;  %v5954_v31 = vsel %vm844_vm13, %v846_v11, %v842_v39  ;;  %v1173_v0 = vcvt.s32.f32 %v1171_v27  ;;  %vm1117_vm12 = vcmp.eq.f32.partialorder %v8191_v5, %v5927_v37  ;;  %v8214_v40 = vld [vmem:[#allocation54_spill] sm:$0xff]  ;;  %v8253_v61 = vld [vmem:[#allocation141_spill] sm:$0xff] }
 0x1b5   :  { %8188 = vst [vmem:[#allocation49_spill] sm:$0xff] %v5952_v54  ;;  %2697 = vmatpush.msrb.mxu0 %v8190_v23  ;;  %v1565_v13 = vmul.f32 15.0, %v5952_v54  ;;  %vm8192_vm1 = vcmp.eq.s32.totalorder %v4053_v42, %v5068_v28  ;;  %v3215_v14 = vadd.s32 4294967295, %v3407_v16  ;;  %v1113_v55 = vcvt.s32.f32 %v1111_v22 }
 0x1b6   :  { %8189 = vst [vmem:[#allocation68_spill] sm:$0xff] %v5954_v31  ;;  %3281 = vmatpush.msk.msrb.mxu1 %vm8192_vm1, %v7977_v32  ;;  %v1564_v50 = vmul.f32 15.0, %v5954_v31  ;;  %v8193_v7 = vsel %vm5328_vm15, %v5072_v21, %v5318_v45  ;;  %v8195_v39 = vand.u32 4294901760, %v5389_v62  ;;  %v3405_v28 = vcvt.f32.s32 %v1598_v6  ;;  %v8197_v45 = vld [vmem:[#allocation140_spill] sm:$0xff]  ;;  %v8199_v62 = vld [vmem:[#allocation130_spill] sm:$0xff] }
 0x1b7   :  { %v5974_v63 = vsel %vm5819_vm11, %v5159_v9, %v8193_v7  ;;  %v1178_v49 = vsel %vm1177_vm10, %v1173_v0, inf  ;;  %v1597_v24 = vceil.f32 %v1565_v13  ;;  %vm8196_vm15 = vcmp.eq.s32.totalorder %v4053_v42, %v5098_v43  ;;  %v8217_v13 = vld [vmem:[#allocation144_spill] sm:$0xff]  ;;  %v107_v31 = vld [vmem:[%s7444_s1 + $0x70] sm:$0xff] }
 0x1b8   :  { %8194 = vst [vmem:[#allocation52_spill] sm:$0xff] %v5974_v63  ;;  %2701 = vmatpush.msrb.mxu0 %v8195_v39  ;;  %v1563_v27 = vmul.f32 15.0, %v5974_v63  ;;  %3282 = vmatpush.msk.msrb.mxu1 %vm8196_vm15, %v7977_v32  ;;  %vm1726_vm3 = vcmp.gt.s32.totalorder %v3215_v14, 0  ;;  %v1118_v21 = vsel %vm1117_vm12, %v1113_v55, inf  ;;  %v1596_v9 = vceil.f32 %v1564_v50  ;;  %v8219_v50 = vld [vmem:[#allocation20_spill] sm:$0xff] }
 0x1b9   :  { %v8198_v59 = vsel %vm5084_vm8, %v4866_v2, %v8197_v45  ;;  %v8202_v41 = vand.u32 4294901760, %v8201_v58  ;;  %v1727_v11 = vsel %vm1726_vm3, %v3215_v14, 0  ;;  %v3214_v44 = vadd.s32 4294967295, %v3405_v28  ;;  %1179 = vmin.xlane.f32.xlu0 %v1178_v49  ;;  %v8221_v49 = vld [vmem:[#allocation78_spill] sm:$0xff]  ;;  %v8225_v45 = vld [vmem:[#allocation101_spill] sm:$0xff] }
 0x1ba   :  { %v5994_v8 = vsel %vm5853_vm5, %v8199_v62, %v8198_v59  ;;  %v3403_v43 = vcvt.f32.s32 %v1597_v24  ;;  %v1595_v52 = vceil.f32 %v1563_v27  ;;  %vm8204_vm11 = vcmp.eq.s32.totalorder %v4053_v42, %v8203_v10  ;;  %1119 = vmin.xlane.f32.xlu1 %v1118_v21  ;;  %v8230_v21 = vld [vmem:[#allocation97_spill] sm:$0xff]  ;;  %v6074_v10 = vpop.xlane.xlu0 %1160 }
 0x1bb   :  { %8200 = vst [vmem:[#allocation64_spill] sm:$0xff] %v5994_v8  ;;  %2705 = vmatpush.msrb.mxu0 %v8202_v41  ;;  %3283 = vmatpush.msk.msrb.mxu1 %vm8204_vm11, %v7977_v32  ;;  %vm1790_vm9 = vcmp.lt.s32.totalorder %v1727_v11, 14  ;;  %v3401_v60 = vcvt.f32.s32 %v1596_v9  ;;  %v1562_v2 = vmul.f32 15.0, %v5994_v8  ;;  %vm8206_vm8 = vcmask 80896  }
 0x1bc   :  { %v6005_v17 = vsel %vm8206_vm8, %v8205_v47, 2147483647  ;;  %v8208_v25 = vand.u32 2147483647, %v8207_v33  ;;  %v8211_v16 = vand.u32 2147483647, %v5088_v30  ;;  %v3399_v5 = vcvt.f32.s32 %v1595_v52 }
 0x1bd   :  { %v8215_v23 = vand.u32 4294901760, %v8214_v40  ;;  %v6021_v6 = vsel %vm1790_vm9, %v1727_v11, 14  ;;  %vm1724_vm14 = vcmp.gt.s32.totalorder %v3214_v44, 0  ;;  %v3213_v0 = vadd.s32 4294967295, %v3403_v43 }
 0x1be   :  { %vm6009_vm5 = vcmp.eq.f32.partialorder %v8208_v25, 8.507059e+37  ;;  %vm6015_vm6 = vcmp.eq.f32.partialorder %v8211_v16, 8.507059e+37  ;;  %8216 = vst [vmem:[#allocation62_spill] sm:$0xff] %v6021_v6  ;;  %vm8218_vm7 = vcmp.eq.s32.totalorder %v4053_v42, %v8217_v13  ;;  %vm1823_vm13 = vcmp.eq.s32.totalorder %v4053_v42, %v6021_v6  ;;  %v8238_v25 = vld [vmem:[#allocation120_spill] sm:$0xff]  ;;  %v103_v6 = vld [vmem:[%s7444_s1 + $0x50] sm:$0xff] }
 0x1bf   :  { %2709 = vmatpush.msrb.mxu0 %v8215_v23  ;;  %3284 = vmatpush.msk.msrb.mxu1 %vm8218_vm7, %v7977_v32  ;;  %v1725_v30 = vsel %vm1724_vm14, %v3214_v44, 0  ;;  %v3212_v14 = vadd.s32 4294967295, %v3401_v60  ;;  %v1594_v55 = vceil.f32 %v1562_v2  ;;  %v8220_v7 = vand.u32 4294901760, %v8219_v50  ;;  %v8235_v2 = vld [vmem:[#allocation81_spill] sm:$0xff]  ;;  %v8247_v50 = vld [vmem:[#allocation50_spill] sm:$0xff] }
 0x1c0   :  { %3296 = vmatpush.msk.msrb.mxu2 %vm1823_vm13, %v7977_v32  ;;  %vm1788_vm0 = vcmp.lt.s32.totalorder %v1725_v30, 14  ;;  %vm1722_vm10 = vcmp.gt.s32.totalorder %v3213_v0, 0  ;;  %v3211_v39 = vadd.s32 4294967295, %v3399_v5  ;;  %v3247_v28 = vsel %vm1823_vm13, 1.0, %v8028_v12 }
 0x1c1   :  { %2713 = vmatpush.msrb.mxu0 %v8220_v7  ;;  %vm8222_vm12 = vcmp.eq.s32.totalorder %v4053_v42, %v8221_v49  ;;  %v6043_v24 = vsel %vm1788_vm0, %v1725_v30, 14  ;;  %v1723_v27 = vsel %vm1722_vm10, %v3213_v0, 0  ;;  %vm1720_vm1 = vcmp.gt.s32.totalorder %v3212_v14, 0  ;;  %v8244_v30 = vld [vmem:[#allocation95_spill] sm:$0xff]  ;;  %v8248_v7 = vld [vmem:[#allocation85_spill] sm:$0xff] }
 0x1c2   :  { %3285 = vmatpush.msk.msrb.mxu1 %vm8222_vm12, %v7977_v32  ;;  %8223 = vst [vmem:[#allocation43_spill] sm:$0xff] %v6043_v24  ;;  %v6045_v9 = vsub.f32 %v3247_v28, %v3247_v28  ;;  %v8226_v59 = vand.u32 2147483647, %v8225_v45  ;;  %vm1822_vm3 = vcmp.eq.s32.totalorder %v4053_v42, %v6043_v24  ;;  %v8229_v58 = vand.u32 4294901760, %v5602_v57 }
 0x1c3   :  { %vm1786_vm11 = vcmp.lt.s32.totalorder %v1723_v27, 14  ;;  %v1721_v41 = vsel %vm1720_vm1, %v3212_v14, 0  ;;  %vm1718_vm9 = vcmp.gt.s32.totalorder %v3211_v39, 0  ;;  %3297 = vmatpush.msk.msrb.mxu2 %vm1822_vm3, %v7977_v32  ;;  %vm8231_vm8 = vcmp.eq.s32.totalorder %v4053_v42, %v8230_v21  ;;  %v8246_v14 = vld [vmem:[#allocation46_spill] sm:$0xff]  ;;  %v8256_v21 = vld [vmem:[#allocation80_spill] sm:$0xff] }
 0x1c4   :  { %8224 = vst [vmem:[#allocation23_spill] sm:$0xff] %v6045_v9  ;;  %vm6049_vm15 = vcmp.eq.f32.partialorder %v8226_v59, 8.507059e+37  ;;  %2717 = vmatpush.msrb.mxu0 %v8229_v58  ;;  %3286 = vmatpush.msk.msrb.mxu1 %vm8231_vm8, %v7977_v32  ;;  %v6065_v11 = vsel %vm1786_vm11, %v1723_v27, 14  ;;  %vm1784_vm14 = vcmp.lt.s32.totalorder %v1721_v41, 14  ;;  %v1719_v44 = vsel %vm1718_vm9, %v3211_v39, 0  ;;  %v8255_v58 = vld [vmem:[#allocation132_spill] sm:$0xff] }
 0x1c5   :  { %8232 = vst [vmem:[#allocation26_spill] sm:$0xff] %v6065_v11  ;;  %v7662_v57 = vand.u32 4294901760, %v6045_v9  ;;  %vm1821_vm7 = vcmp.eq.s32.totalorder %v4053_v42, %v6065_v11  ;;  %v8233_v43 = vand.u32 4294901760, %v5634_v51  ;;  %v6072_v52 = vsel %vm1784_vm14, %v1721_v41, 14  ;;  %v101_v11 = vld [vmem:[%s7444_s1 + $0x40] sm:$0xff] }
 0x1c6   :  { %8234 = vst [vmem:[#allocation21_spill] sm:$0xff] %v6072_v52  ;;  %vm1782_vm0 = vcmp.lt.s32.totalorder %v1719_v44, 14  ;;  %v3397_v60 = vcvt.f32.s32 %v1594_v55  ;;  %3298 = vmatpush.msk.msrb.mxu2 %vm1821_vm7, %v7977_v32  ;;  %vm8236_vm10 = vcmp.eq.s32.totalorder %v4053_v42, %v8235_v2  ;;  %vm1820_vm12 = vcmp.eq.s32.totalorder %v4053_v42, %v6072_v52 }
 0x1c7   :  { %2721 = vmatpush.msrb.mxu0 %v8233_v43  ;;  %3287 = vmatpush.msk.msrb.mxu1 %vm8236_vm10, %v7977_v32  ;;  %v6086_v51 = vsel %vm1782_vm0, %v1719_v44, 14  ;;  %v2824_v47 = vsub.f32 %v6045_v9, %v7662_v57  ;;  %v3246_v33 = vsel %vm1822_vm3, 1.0, %v8028_v12  ;;  %v8239_v16 = vand.u32 2147483647, %v8238_v25 }
 0x1c8   :  { %8237 = vst [vmem:[#allocation25_spill] sm:$0xff] %v6086_v51  ;;  %v8242_v23 = vand.u32 4294901760, %v5636_v15  ;;  %vm1819_vm11 = vcmp.eq.s32.totalorder %v4053_v42, %v6086_v51  ;;  %v3210_v0 = vadd.s32 4294967295, %v3397_v60  ;;  %v6105_v5 = vsub.f32 %v3246_v33, %v3246_v33  ;;  %3299 = vmatpush.msk.msrb.mxu2 %vm1820_vm12, %v7977_v32 }
 0x1c9   :  { %vm6097_vm1 = vcmp.eq.f32.partialorder %v8239_v16, 8.507059e+37  ;;  %v1202_v13 = vshra.s32 %v6005_v17, 16  ;;  %vm8245_vm9 = vcmp.eq.s32.totalorder %v4053_v42, %v8244_v30  ;;  %v2825_v15 = vand.u32 4294901760, %v2824_v47  ;;  %v8260_v47 = vld [vmem:[#allocation102_spill] sm:$0xff] }
 0x1ca   :  { %2725 = vmatpush.msrb.mxu0 %v8242_v23  ;;  %8243 = vst [vmem:[#allocation82_spill] sm:$0xff] %v6105_v5  ;;  %3288 = vmatpush.msk.msrb.mxu1 %vm8245_vm9, %v7977_v32  ;;  %v1156_v55 = vand.u32 65535, %v8246_v14  ;;  %vm1162_vm8 = vcmp.eq.f32.partialorder %v8247_v50, %v6074_v10  ;;  %v6127_v39 = vsel %vm6015_vm6, %v8248_v7, %v797_v3  ;;  %v8250_v28 = vand.u32 4294901760, %v5721_v1  ;;  %v8252_v3 = vld [vmem:[#allocation125_spill] sm:$0xff]  ;;  %v8268_v50 = vld [vmem:[#allocation127_spill] sm:$0xff]  ;;  %v8270_v7 = vld [vmem:[#allocation106_spill] sm:$0xff] }
 0x1cb   :  { %8249 = vst [vmem:[#allocation59_spill] sm:$0xff] %v6127_v39  ;;  %vm1716_vm14 = vcmp.gt.s32.totalorder %v3210_v0, 0  ;;  %v7661_v49 = vand.u32 4294901760, %v6105_v5  ;;  %v6132_v27 = vcvt.s32.f32 %v1202_v13  ;;  %v1561_v45 = vmul.f32 15.0, %v6127_v39  ;;  %3300 = vmatpush.msk.msrb.mxu2 %vm1819_vm11, %v7977_v32  ;;  %2826 = vmatpush.msrb.mxu3 %v2825_v15  ;;  %v8265_v13 = vld [vmem:[#allocation61_spill] sm:$0xff] }
 0x1cc   :  { %2729 = vmatpush.msrb.mxu0 %v8250_v28  ;;  %v1717_v19 = vsel %vm1716_vm14, %v3210_v0, 0  ;;  %v1158_v20 = vcvt.s32.f32 %v1156_v55  ;;  %v3245_v1 = vsel %vm1821_vm7, 1.0, %v8028_v12  ;;  %v8254_v59 = vsel %vm5108_vm2, %v8252_v3, %v8253_v61  ;;  %v8271_v28 = vld [vmem:[#allocation126_spill] sm:$0xff]  ;;  %v8277_v61 = vld [vmem:[#allocation92_spill] sm:$0xff] }
 0x1cd   :  { %v6151_v41 = vsel %vm6009_vm5, %v8255_v58, %v8254_v59  ;;  %vm8257_vm4 = vcmp.eq.s32.totalorder %v4053_v42, %v8256_v21  ;;  %vm1780_vm6 = vcmp.lt.s32.totalorder %v1717_v19, 14  ;;  %v8258_v44 = vand.u32 4294901760, %v5783_v29  ;;  %1205 = vmin.xlane.f32.xlu0 %v6132_v27 }
 0x1ce   :  { %3289 = vmatpush.msk.msrb.mxu1 %vm8257_vm4, %v7977_v32  ;;  %v2830_v43 = vsub.f32 %v6105_v5, %v7661_v49  ;;  %v1593_v60 = vceil.f32 %v1561_v45  ;;  %v6162_v2 = vsub.f32 %v3245_v1, %v3245_v1  ;;  %v8261_v22 = vand.u32 2147483647, %v8260_v47  ;;  %v8284_v47 = vld [vmem:[#allocation145_spill] sm:$0xff] }
 0x1cf   :  { %2733 = vmatpush.msrb.mxu0 %v8258_v44  ;;  %v6170_v25 = vsel %vm1780_vm6, %v1717_v19, 14  ;;  %v1163_v29 = vsel %vm1162_vm8, %v1158_v20, inf  ;;  %v1560_v16 = vmul.f32 15.0, %v6151_v41  ;;  %v3244_v23 = vsel %vm1820_vm12, 1.0, %v8028_v12  ;;  %v8273_v19 = vld [vmem:[#allocation119_spill] sm:$0xff] }
 0x1d0   :  { %8259 = vst [vmem:[#allocation77_spill] sm:$0xff] %v6162_v2  ;;  %vm6166_vm2 = vcmp.eq.f32.partialorder %v8261_v22, 8.507059e+37  ;;  %vm1818_vm5 = vcmp.eq.s32.totalorder %v4053_v42, %v6170_v25  ;;  %v2831_v0 = vand.u32 4294901760, %v2830_v43  ;;  %1164 = vmin.xlane.f32.xlu1 %v1163_v29  ;;  %vm8266_vm0 = vcmp.eq.s32.totalorder %v4053_v42, %v8265_v13  ;;  %v8281_v43 = vld [vmem:[#allocation147_spill] sm:$0xff]  ;;  %v8286_v29 = vld [vmem:[#allocation134_spill] sm:$0xff]  ;;  %v8287_v13 = vld [vmem:[#allocation69_spill] sm:$0xff] }
 0x1d1   :  { %8264 = vst [vmem:[#allocation73_spill] sm:$0xff] %v6170_v25  ;;  %3290 = vmatpush.msk.msrb.mxu1 %vm8266_vm0, %v7977_v32  ;;  %v3395_v30 = vcvt.f32.s32 %v1593_v60  ;;  %v7660_v15 = vand.u32 4294901760, %v6162_v2  ;;  %3301 = vmatpush.msk.msrb.mxu2 %vm1818_vm5, %v7977_v32  ;;  %v1592_v14 = vceil.f32 %v1560_v16  ;;  %v6194_v55 = vsub.f32 %v3244_v23, %v3244_v23  ;;  %v8283_v60 = vld [vmem:[#allocation131_spill] sm:$0xff] }
 0x1d2   :  { %2737 = vmatpush.msrb.mxu0 %v2572_v46  ;;  %vm8269_vm10 = vnez %v8268_v50  ;;  %v3243_v1 = vsel %vm1819_vm11, 1.0, %v8028_v12  ;;  %2832 = vmatpush.msrb.mxu3 %v2831_v0  ;;  %vm8275_vm9 = vcmp.eq.s32.totalorder %v4053_v42, %v8274_v26  ;;  %v8278_v59 = vand.u32 2147483647, %v8277_v61  ;;  %v8296_v61 = vld [vmem:[#allocation104_spill] sm:$0xff] }
 0x1d3   :  { %8267 = vst [vmem:[#allocation24_spill] sm:$0xff] %v6194_v55  ;;  %v8272_v45 = vsel %vm8269_vm10, %v8270_v7, %v8271_v28  ;;  %v3209_v56 = vadd.s32 4294967295, %v3395_v30  ;;  %v2836_v46 = vsub.f32 %v6162_v2, %v7660_v15  ;;  %3291 = vmatpush.msk.msrb.mxu1 %vm8275_vm9, %v7977_v32  ;;  %v6218_v3 = vsub.f32 %v3243_v1, %v3243_v1  ;;  %v8289_v1 = vld [vmem:[#allocation71_spill] sm:$0xff] }
 0x1d4   :  { %v6204_v20 = vsel %vm6049_vm15, %v8273_v19, %v8272_v45  ;;  %vm6222_vm15 = vcmp.eq.f32.partialorder %v8278_v59, 8.507059e+37  ;;  %v3393_v21 = vcvt.f32.s32 %v1592_v14  ;;  %v7659_v44 = vand.u32 4294901760, %v6194_v55 }
 0x1d5   :  { %v1559_v62 = vmul.f32 15.0, %v6204_v20  ;;  %8276 = vst [vmem:[#allocation28_spill] sm:$0xff] %v6218_v3  ;;  %vm8282_vm8 = vnez %v8281_v43  ;;  %v3242_v23 = vsel %vm1818_vm5, 1.0, %v8028_v12  ;;  %vm1714_vm14 = vcmp.gt.s32.totalorder %v3209_v56, 0 }
 0x1d6   :  { %v8285_v22 = vsel %vm8282_vm8, %v8283_v60, %v8284_v47  ;;  %v2837_v0 = vand.u32 4294901760, %v2836_v46  ;;  %vm8288_vm4 = vcmp.eq.s32.totalorder %v4053_v42, %v8287_v13  ;;  %v7657_v14 = vand.u32 4294901760, %v6218_v3  ;;  %v8292_v46 = vld [vmem:[#allocation94_spill] sm:$0xff] }
 0x1d7   :  { %v6235_v16 = vsel %vm6097_vm1, %v8286_v29, %v8285_v22  ;;  %3292 = vmatpush.msk.msrb.mxu1 %vm8288_vm4, %v7977_v32  ;;  %v1591_v30 = vceil.f32 %v1559_v62  ;;  %v1715_v50 = vsel %vm1714_vm14, %v3209_v56, 0  ;;  %v3208_v7 = vadd.s32 4294967295, %v3393_v21  ;;  %v8341_v21 = vld [vmem:[#allocation96_spill] sm:$0xff] }
 0x1d8   :  { %v2842_v40 = vsub.f32 %v6194_v55, %v7659_v44  ;;  %v1558_v28 = vmul.f32 15.0, %v6235_v16  ;;  %vm1778_vm1 = vcmp.lt.s32.totalorder %v1715_v50, 14  ;;  %2838 = vmatpush.msrb.mxu3 %v2837_v0  ;;  %v2848_v19 = vsub.f32 %v6218_v3, %v7657_v14  ;;  %v8301_v0 = vld [vmem:[#allocation79_spill] sm:$0xff] }
 0x1d9   :  { %v3391_v45 = vcvt.f32.s32 %v1591_v30  ;;  %vm8290_vm6 = vcmp.eq.s32.totalorder %v4053_v42, %v8289_v1  ;;  %v6257_v56 = vsub.f32 %v3242_v23, %v3242_v23  ;;  %v8293_v26 = vand.u32 2147483647, %v8292_v46  ;;  %v8309_v1 = vld [vmem:[#allocation128_spill] sm:$0xff] }
 0x1da   :  { %3293 = vmatpush.msk.msrb.mxu1 %vm8290_vm6, %v7977_v32  ;;  %v8297_v59 = vand.u32 2147483647, %v8296_v61  ;;  %v6271_v43 = vsel %vm1778_vm1, %v1715_v50, 14  ;;  %vm1712_vm9 = vcmp.gt.s32.totalorder %v3208_v7, 0  ;;  %v2843_v60 = vand.u32 4294901760, %v2842_v40  ;;  %v8303_v50 = vld [vmem:[#allocation57_spill] sm:$0xff] }
 0x1db   :  { %8291 = vst [vmem:[#allocation72_spill] sm:$0xff] %v6257_v56  ;;  %vm6261_vm0 = vcmp.eq.f32.partialorder %v8293_v26, 8.507059e+37  ;;  %v1590_v47 = vceil.f32 %v1558_v28  ;;  %vm1817_vm8 = vcmp.eq.s32.totalorder %v4053_v42, %v6271_v43  ;;  %v1713_v22 = vsel %vm1712_vm9, %v3208_v7, 0  ;;  %v8311_v26 = vld [vmem:[#allocation122_spill] sm:$0xff] }
 0x1dc   :  { %vm6267_vm10 = vcmp.eq.f32.partialorder %v8297_v59, 8.507059e+37  ;;  %8300 = vst [vmem:[#allocation53_spill] sm:$0xff] %v6271_v43  ;;  %v3207_v29 = vadd.s32 4294967295, %v3391_v45  ;;  %v2849_v23 = vand.u32 4294901760, %v2848_v19  ;;  %vm8302_vm14 = vcmp.eq.s32.totalorder %v4053_v42, %v8301_v0  ;;  %3302 = vmatpush.msk.msrb.mxu2 %vm1817_vm8, %v7977_v32  ;;  %2844 = vmatpush.msrb.mxu3 %v2843_v60  ;;  %v8306_v45 = vld [vmem:[#allocation129_spill] sm:$0xff]  ;;  %v8308_v19 = vld [vmem:[#allocation108_spill] sm:$0xff] }
 0x1dd   :  { %3294 = vmatpush.msk.msrb.mxu1 %vm8302_vm14, %v7977_v32  ;;  %vm1776_vm4 = vcmp.lt.s32.totalorder %v1713_v22, 14  ;;  %v3389_v13 = vcvt.f32.s32 %v1590_v47  ;;  %v7656_v30 = vand.u32 4294901760, %v6257_v56  ;;  %vm8304_vm1 = vcmask 80896   ;;  %v8312_v59 = vld [vmem:[#allocation56_spill] sm:$0xff] }
 0x1de   :  { %v6286_v7 = vsel %vm8304_vm1, %v8303_v50, 2147483647  ;;  %v6288_v40 = vsel %vm1776_vm4, %v1713_v22, 14  ;;  %vm1710_vm6 = vcmp.gt.s32.totalorder %v3207_v29, 0  ;;  %vm8307_vm9 = vnez %v8306_v45  ;;  %2850 = vmatpush.msrb.mxu3 %v2849_v23  ;;  %v8316_v45 = vld [vmem:[#allocation84_spill] sm:$0xff] }
 0x1df   :  { %8305 = vst [vmem:[#allocation66_spill] sm:$0xff] %v6288_v40  ;;  %v1187_v28 = vshra.s32 %v6286_v7, 16  ;;  %v8310_v46 = vsel %vm8307_vm9, %v8308_v19, %v8309_v1  ;;  %vm8313_vm14 = vcmp.eq.s32.totalorder %v4053_v42, %v8312_v59  ;;  %vm1816_vm4 = vcmp.eq.s32.totalorder %v4053_v42, %v6288_v40  ;;  %v8322_v59 = vld [vmem:[#allocation98_spill] sm:$0xff] }
 0x1e0   :  { %v6299_v61 = vsel %vm6166_vm2, %v8311_v26, %v8310_v46  ;;  %3295 = vmatpush.msk.msrb.mxu1 %vm8313_vm14, %v7977_v32  ;;  %v1711_v60 = vsel %vm1710_vm6, %v3207_v29, 0  ;;  %v3206_v47 = vadd.s32 4294967295, %v3389_v13  ;;  %v2854_v22 = vsub.f32 %v6257_v56, %v7656_v30  ;;  %3303 = vmatpush.msk.msrb.mxu2 %vm1816_vm4, %v7977_v32  ;;  %v8320_v26 = vld [vmem:[#allocation115_spill] sm:$0xff] }
 0x1e1   :  { %vm1774_vm2 = vcmp.lt.s32.totalorder %v1711_v60, 14  ;;  %v6314_v33 = vcvt.s32.f32 %v1187_v28  ;;  %v1557_v0 = vmul.f32 15.0, %v6299_v61  ;;  %v3241_v29 = vsel %vm1817_vm8, 1.0, %v8028_v12 }
 0x1e2   :  { %v6321_v23 = vsel %vm1774_vm2, %v1711_v60, 14  ;;  %vm1708_vm1 = vcmp.gt.s32.totalorder %v3206_v47, 0  ;;  %v2855_v13 = vand.u32 4294901760, %v2854_v22  ;;  %v6323_v50 = vsub.f32 %v3241_v29, %v3241_v29  ;;  %v8323_v60 = vld [vmem:[#allocation112_spill] sm:$0xff]  ;;  %v8325_v29 = vld [vmem:[#allocation109_spill] sm:$0xff] }
 0x1e3   :  { %8314 = vst [vmem:[#allocation63_spill] sm:$0xff] %v6321_v23  ;;  %v8317_v19 = vand.u32 2147483647, %v8316_v45  ;;  %vm7673_vm9 = vcmp.eq.s32.totalorder %v4053_v42, %v6321_v23  ;;  %v1709_v28 = vsel %vm1708_vm1, %v3206_v47, 0  ;;  %1190 = vmin.xlane.f32.xlu1 %v6314_v33  ;;  %v1589_v46 = vceil.f32 %v1557_v0 }
 0x1e4   :  { %8315 = vst [vmem:[#allocation29_spill] sm:$0xff] %v6323_v50  ;;  %vm8321_vm14 = vnez %v8320_v26  ;;  %3304 = vmatpush.msk.msrb.mxu2 %vm7673_vm9, %v7977_v32  ;;  %vm1772_vm2 = vcmp.lt.s32.totalorder %v1709_v28, 14  ;;  %2856 = vmatpush.msrb.mxu3 %v2855_v13  ;;  %v7658_v47 = vand.u32 4294901760, %v6323_v50  ;;  %v8333_v13 = vld [vmem:[#allocation124_spill] sm:$0xff] }
 0x1e5   :  { %vm6327_vm6 = vcmp.eq.f32.partialorder %v8317_v19, 8.507059e+37  ;;  %v8324_v22 = vsel %vm8321_vm14, %v8322_v59, %v8323_v60  ;;  %v3240_v19 = vsel %vm1816_vm4, 1.0, %v8028_v12  ;;  %v6354_v26 = vsel %vm1772_vm2, %v1709_v28, 14  ;;  %v8328_v60 = vld [vmem:[#allocation139_spill] sm:$0xff] }
 0x1e6   :  { %v6342_v45 = vsel %vm6222_vm15, %v8325_v29, %v8324_v22  ;;  %8326 = vst [vmem:[#allocation32_spill] sm:$0xff] %v6354_v26  ;;  %v3387_v58 = vcvt.f32.s32 %v1589_v46  ;;  %v6356_v59 = vsub.f32 %v3240_v19, %v3240_v19  ;;  %vm8329_vm15 = vnez %v8328_v60  ;;  %v8330_v22 = vld [vmem:[#allocation114_spill] sm:$0xff]  ;;  %v8331_v29 = vld [vmem:[#allocation136_spill] sm:$0xff] }
 0x1e7   :  { %v1556_v0 = vmul.f32 15.0, %v6342_v45  ;;  %v8332_v30 = vsel %vm8329_vm15, %v8330_v22, %v8331_v29  ;;  %vm7669_vm1 = vcmp.eq.s32.totalorder %v4053_v42, %v6354_v26  ;;  %v2860_v28 = vsub.f32 %v6323_v50, %v7658_v47  ;;  %v8334_v22 = vld [vmem:[#allocation118_spill] sm:$0xff]  ;;  %v8336_v29 = vld [vmem:[#allocation99_spill] sm:$0xff] }
 0x1e8   :  { %8327 = vst [vmem:[#allocation27_spill] sm:$0xff] %v6356_v59  ;;  %v6366_v14 = vsel %vm6267_vm10, %v8333_v13, %v8332_v30  ;;  %3305 = vmatpush.msk.msrb.mxu2 %vm7669_vm1, %v7977_v32  ;;  %v3205_v60 = vadd.s32 4294967295, %v3387_v58  ;;  %v3239_v30 = vsel %vm7673_vm9, 1.0, %v8028_v12  ;;  %vm8335_vm10 = vnez %v8334_v22  ;;  %v8337_v13 = vld [vmem:[#allocation116_spill] sm:$0xff]  ;;  %v8339_v47 = vld [vmem:[#allocation110_spill] sm:$0xff] }
 0x1e9   :  { %v1588_v46 = vceil.f32 %v1556_v0  ;;  %v1555_v19 = vmul.f32 15.0, %v6366_v14  ;;  %v8338_v0 = vsel %vm8335_vm10, %v8336_v29, %v8337_v13  ;;  %v2861_v15 = vand.u32 4294901760, %v2860_v28 }
 0x1ea   :  { %v6391_v44 = vsel %vm6261_vm0, %v8339_v47, %v8338_v0  ;;  %v6393_v57 = vsub.f32 %v3239_v30, %v3239_v30  ;;  %v8342_v50 = vand.u32 2147483647, %v8341_v21  ;;  %vm1706_vm2 = vcmp.gt.s32.totalorder %v3205_v60, 0 }
 0x1eb   :  { %v3385_v49 = vcvt.f32.s32 %v1588_v46  ;;  %v1587_v58 = vceil.f32 %v1555_v19  ;;  %v8345_v22 = vand.u32 4294901760, %v6356_v59  ;;  %v1554_v62 = vmul.f32 15.0, %v6391_v44  ;;  %2862 = vmatpush.msrb.mxu3 %v2861_v15 }
 0x1ec   :  { %8340 = vst [vmem:[#allocation31_spill] sm:$0xff] %v6393_v57  ;;  %vm6397_vm14 = vcmp.eq.f32.partialorder %v8342_v50, 8.507059e+37  ;;  %v3238_v47 = vsel %vm7669_vm1, 1.0, %v8028_v12  ;;  %v1707_v28 = vsel %vm1706_vm2, %v3205_v60, 0  ;;  %v7670_v50 = vand.u32 4294901760, %v6393_v57 }
 0x1ed   :  { %v2866_v29 = vsub.f32 %v6356_v59, %v8345_v22  ;;  %v3204_v46 = vadd.s32 4294967295, %v3385_v49  ;;  %v3383_v19 = vcvt.f32.s32 %v1587_v58  ;;  %vm1770_vm0 = vcmp.lt.s32.totalorder %v1707_v28, 14 }
 0x1ee   :  { %v1586_v30 = vceil.f32 %v1554_v62  ;;  %v6410_v13 = vsub.f32 %v3238_v47, %v3238_v47  ;;  %v6412_v0 = vsel %vm1770_vm0, %v1707_v28, 14  ;;  %v2872_v26 = vsub.f32 %v6393_v57, %v7670_v50  ;;  %v8350_v62 = vld [vmem:[#allocation93_spill] sm:$0xff] }
 0x1ef   :  { %v2867_v21 = vand.u32 4294901760, %v2866_v29  ;;  %8347 = vst [vmem:[#allocation34_spill] sm:$0xff] %v6412_v0  ;;  %vm1704_vm15 = vcmp.gt.s32.totalorder %v3204_v46, 0  ;;  %v3203_v22 = vadd.s32 4294967295, %v3383_v19  ;;  %vm1813_vm10 = vcmp.eq.s32.totalorder %v4053_v42, %v6412_v0  ;;  %v8348_v29 = vld [vmem:[#allocation107_spill] sm:$0xff]  ;;  %v8351_v47 = vld [vmem:[#allocation105_spill] sm:$0xff] }
 0x1f0   :  { %8346 = vst [vmem:[#allocation30_spill] sm:$0xff] %v6410_v13  ;;  %v1705_v49 = vsel %vm1704_vm15, %v3204_v46, 0  ;;  %v3381_v15 = vcvt.f32.s32 %v1586_v30  ;;  %v7674_v60 = vand.u32 4294901760, %v6410_v13  ;;  %3306 = vmatpush.msk.msrb.mxu2 %vm1813_vm10, %v7977_v32  ;;  %v2873_v58 = vand.u32 4294901760, %v2872_v26  ;;  %v8353_v19 = vld [vmem:[#allocation100_spill] sm:$0xff] }
 0x1f1   :  { %2868 = vmatpush.msrb.mxu3 %v2867_v21  ;;  %vm1768_vm2 = vcmp.lt.s32.totalorder %v1705_v49, 14  ;;  %vm1702_vm0 = vcmp.gt.s32.totalorder %v3203_v22, 0  ;;  %vm8349_vm1 = vnez %v8348_v29  ;;  %v3237_v1 = vsel %vm1813_vm10, 1.0, %v8028_v12 }
 0x1f2   :  { %v8352_v28 = vsel %vm8349_vm1, %v8350_v62, %v8351_v47  ;;  %v6434_v21 = vsel %vm1768_vm2, %v1705_v49, 14  ;;  %v1703_v30 = vsel %vm1702_vm0, %v3203_v22, 0  ;;  %v3202_v50 = vadd.s32 4294967295, %v3381_v15  ;;  %v8357_v62 = vld [vmem:[#allocation123_spill] sm:$0xff] }
 0x1f3   :  { %v6432_v46 = vsel %vm6327_vm6, %v8353_v19, %v8352_v28  ;;  %8354 = vst [vmem:[#allocation35_spill] sm:$0xff] %v6434_v21  ;;  %v2878_v57 = vsub.f32 %v6410_v13, %v7674_v60  ;;  %vm1812_vm15 = vcmp.eq.s32.totalorder %v4053_v42, %v6434_v21  ;;  %vm1766_vm9 = vcmp.lt.s32.totalorder %v1703_v30, 14  ;;  %2874 = vmatpush.msrb.mxu3 %v2873_v58  ;;  %v8359_v47 = vld [vmem:[#allocation103_spill] sm:$0xff]  ;;  %v8360_v28 = vld [vmem:[#allocation121_spill] sm:$0xff] }
 0x1f4   :  { %v1553_v26 = vmul.f32 15.0, %v6432_v46  ;;  %3307 = vmatpush.msk.msrb.mxu2 %vm1812_vm15, %v7977_v32  ;;  %v6450_v22 = vsel %vm1766_vm9, %v1703_v30, 14  ;;  %vm1700_vm6 = vcmp.gt.s32.totalorder %v3202_v50, 0  ;;  %v6452_v15 = vsub.f32 %v3237_v1, %v3237_v1  ;;  %v8362_v60 = vld [vmem:[#allocation113_spill] sm:$0xff] }
 0x1f5   :  { %8355 = vst [vmem:[#allocation38_spill] sm:$0xff] %v6450_v22  ;;  %v2879_v49 = vand.u32 4294901760, %v2878_v57  ;;  %vm1811_vm1 = vcmp.eq.s32.totalorder %v4053_v42, %v6450_v22  ;;  %v1701_v58 = vsel %vm1700_vm6, %v3202_v50, 0  ;;  %vm8358_vm2 = vnez %v8357_v62 }
 0x1f6   :  { %8356 = vst [vmem:[#allocation33_spill] sm:$0xff] %v6452_v15  ;;  %v1585_v29 = vceil.f32 %v1553_v26  ;;  %v8361_v19 = vsel %vm8358_vm2, %v8359_v47, %v8360_v28  ;;  %3308 = vmatpush.msk.msrb.mxu2 %vm1811_vm1, %v7977_v32  ;;  %vm1764_vm9 = vcmp.lt.s32.totalorder %v1701_v58, 14  ;;  %v7681_v57 = vand.u32 4294901760, %v6452_v15  ;;  %v970_v26 = vpop.xlane.xlu2 %969 }
 0x1f7   :  { %v6464_v13 = vsel %vm6397_vm14, %v8362_v60, %v8361_v19  ;;  %2880 = vmatpush.msrb.mxu3 %v2879_v49  ;;  %v3236_v30 = vsel %vm1812_vm15, 1.0, %v8028_v12  ;;  %v6476_v23 = vsel %vm1764_vm9, %v1701_v58, 14  ;;  %v3235_v49 = vsel %vm1811_vm1, 1.0, %v8028_v12 }
 0x1f8   :  { %v1552_v50 = vmul.f32 15.0, %v6464_v13  ;;  %8363 = vst [vmem:[#allocation37_spill] sm:$0xff] %v6476_v23  ;;  %v3379_v60 = vcvt.f32.s32 %v1585_v29  ;;  %v6478_v1 = vsub.f32 %v3236_v30, %v3236_v30  ;;  %vm7747_vm14 = vcmp.eq.s32.totalorder %v4053_v42, %v6476_v23 }
 0x1f9   :  { %v2884_v62 = vsub.f32 %v6452_v15, %v7681_v57  ;;  %v6489_v28 = vsub.f32 %v3235_v49, %v3235_v49  ;;  %3309 = vmatpush.msk.msrb.mxu2 %vm7747_vm14, %v7977_v32  ;;  %v3234_v19 = vsel %vm7747_vm14, 1.0, %v8028_v12  ;;  %v971_v30 = vcvt.f32.s32 %v970_v26 }
 0x1fa   :  { %8364 = vst [vmem:[#allocation36_spill] sm:$0xff] %v6478_v1  ;;  %v1584_v47 = vceil.f32 %v1552_v50  ;;  %v3201_v58 = vadd.s32 4294967295, %v3379_v60  ;;  %v7686_v29 = vand.u32 4294901760, %v6478_v1  ;;  %v6501_v49 = vsub.f32 %v3234_v19, %v3234_v19 }
 0x1fb   :  { %8365 = vst [vmem:[#allocation40_spill] sm:$0xff] %v6489_v28  ;;  %v2885_v22 = vand.u32 4294901760, %v2884_v62  ;;  %v7688_v50 = vand.u32 4294901760, %v6489_v28  ;;  %v6507_v60 = vadd.s32 %v5923_v38, %v971_v30 }
 0x1fc   :  { %v3377_v21 = vcvt.f32.s32 %v1584_v47  ;;  %8366 = vst [vmem:[#allocation39_spill] sm:$0xff] %v6501_v49  ;;  %vm1698_vm0 = vcmp.gt.s32.totalorder %v3201_v58, 0  ;;  %v2890_v57 = vsub.f32 %v6478_v1, %v7686_v29  ;;  %v7687_v62 = vand.u32 4294901760, %v6501_v49 }
 0x1fd   :  { %v1699_v15 = vsel %vm1698_vm0, %v3201_v58, 0  ;;  %2886 = vmatpush.msrb.mxu3 %v2885_v22  ;;  %v2896_v26 = vsub.f32 %v6489_v28, %v7688_v50 }
 0x1fe   :  { %v3200_v0 = vadd.s32 4294967295, %v3377_v21  ;;  %vm1762_vm6 = vcmp.lt.s32.totalorder %v1699_v15, 14  ;;  %v2891_v47 = vand.u32 4294901760, %v2890_v57  ;;  %v2902_v29 = vsub.f32 %v6501_v49, %v7687_v62  ;;  %v1015_v49 = vpop.xlane.xlu2 %1014 }
 0x1ff   :  { %v6513_v19 = vsel %vm1762_vm6, %v1699_v15, 14  ;;  %v2897_v21 = vand.u32 4294901760, %v2896_v26  ;;  %v1016_v23 = vcvt.f32.s32 %v1015_v49 }
 0x200   :  { %8367 = vst [vmem:[#allocation41_spill] sm:$0xff] %v6513_v19  ;;  %vm1696_vm2 = vcmp.gt.s32.totalorder %v3200_v0, 0  ;;  %vm7720_vm9 = vcmp.eq.s32.totalorder %v4053_v42, %v6513_v19  ;;  %2892 = vmatpush.msrb.mxu3 %v2891_v47  ;;  %v2903_v57 = vand.u32 4294901760, %v2902_v29 }
 0x201   :  { %v1697_v38 = vsel %vm1696_vm2, %v3200_v0, 0  ;;  %3310 = vmatpush.msk.msrb.mxu2 %vm7720_vm9, %v7977_v32  ;;  %v3233_v22 = vsel %vm7720_vm9, 1.0, %v8028_v12 }
 0x202   :  { %vm1760_vm0 = vcmp.lt.s32.totalorder %v1697_v38, 14  ;;  %2898 = vmatpush.msrb.mxu3 %v2897_v21  ;;  %v6530_v58 = vsub.f32 %v3233_v22, %v3233_v22  ;;  %v8372_v22 = vld [vmem:[#allocation51_spill] sm:$0xff] }
 0x203   :  { %v6528_v15 = vsel %vm1760_vm0, %v1697_v38, 14  ;;  %v8371_v38 = vld [vmem:[#allocation91_spill] sm:$0xff]  ;;  %v1002_v62 = vcvt.f32.s32 %v8372_v22 }
 0x204   :  { %8368 = vst [vmem:[#allocation44_spill] sm:$0xff] %v6528_v15  ;;  %vm7719_vm6 = vcmp.eq.s32.totalorder %v4053_v42, %v6528_v15  ;;  %2904 = vmatpush.msrb.mxu3 %v2903_v57  ;;  %v7701_v0 = vand.u32 4294901760, %v6530_v58  ;;  %v1017_v21 = vcvt.f32.s32 %v8371_v38  ;;  %v8373_v38 = vld [vmem:[#allocation75_spill] sm:$0xff] }
 0x205   :  { %8369 = vst [vmem:[#allocation45_spill] sm:$0xff] %v6530_v58  ;;  %3311 = vmatpush.msk.msrb.mxu2 %vm7719_vm6, %v7977_v32  ;;  %v3232_v30 = vsel %vm7719_vm6, 1.0, %v8028_v12  ;;  %v1003_v28 = vshll.u32 %v1002_v62, 16  ;;  %v1062_v22 = vcvt.f32.s32 %v8373_v38  ;;  %vm8379_vm6 = vcmask 80896  }
 0x206   :  { %v6543_v26 = vsub.f32 %v3232_v30, %v3232_v30  ;;  %v2908_v29 = vsub.f32 %v6530_v58, %v7701_v0  ;;  %v1000_v30 = vpop.xlane.xlu0 %999  ;;  %v1018_v19 = vshll.u32 %v1017_v21, 16  ;;  %v1060_v40 = vpop.xlane.xlu2 %1059 }
 0x207   :  { %v1001_v1 = vcvt.f32.s32 %v1000_v30  ;;  %v1063_v56 = vshll.u32 %v1062_v22, 16 }
 0x208   :  { %8370 = vst [vmem:[#allocation140_spill] sm:$0xff] %v6543_v26  ;;  %v7710_v47 = vand.u32 4294901760, %v6543_v26  ;;  %v2909_v57 = vand.u32 4294901760, %v2908_v29  ;;  %v6554_v0 = vadd.s32 %v1018_v19, %v1016_v23  ;;  %v8374_v29 = vld [vmem:[#allocation60_spill] sm:$0xff] }
 0x209   :  { %v6556_v58 = vadd.s32 %v1003_v28, %v1001_v1  ;;  %v1047_v59 = vcvt.f32.s32 %v8374_v29  ;;  %v8376_v28 = vld [vmem:[#allocation83_spill] sm:$0xff]  ;;  %v8377_v29 = vld [vmem:[#allocation89_spill] sm:$0xff] }
 0x20a   :  { %v2914_v50 = vsub.f32 %v6543_v26, %v7710_v47  ;;  %2910 = vmatpush.msrb.mxu3 %v2909_v57  ;;  %v1061_v47 = vcvt.f32.s32 %v1060_v40  ;;  %v8375_v57 = vld [vmem:[#allocation55_spill] sm:$0xff]  ;;  %v1107_v38 = vcvt.f32.s32 %v8376_v28  ;;  %v1092_v43 = vcvt.f32.s32 %v8377_v29 }
 0x20b   :  { %v1048_v62 = vshll.u32 %v1047_v59, 16  ;;  %v1077_v28 = vcvt.f32.s32 %v5789_v34 }
 0x20c   :  { %v2915_v15 = vand.u32 4294901760, %v2914_v50  ;;  %v987_v50 = vcvt.f32.s32 %v8375_v57  ;;  %v6561_v26 = vadd.s32 %v1063_v56, %v1061_v47  ;;  %v985_v30 = vpop.xlane.xlu1 %984  ;;  %v1108_v40 = vshll.u32 %v1107_v38, 16 }
 0x20d   :  { %v986_v23 = vcvt.f32.s32 %v985_v30  ;;  %v1032_v56 = vcvt.f32.s32 %v5701_v35  ;;  %v1093_v57 = vshll.u32 %v1092_v43, 16  ;;  %v1182_v43 = vcvt.f32.s32 %v5904_v48 }
 0x20e   :  { %2916 = vmatpush.msrb.mxu3 %v2915_v15  ;;  %v1045_v21 = vpop.xlane.xlu0 %1044  ;;  %v988_v15 = vshll.u32 %v987_v50, 16  ;;  %v1201_v48 = vand.u32 65535, %v6005_v17  ;;  %v3624_v17 = vld [vmem:[%s7443_s0 + $0x88] sm:$0xff] }
 0x20f   :  { %v1046_v49 = vcvt.f32.s32 %v1045_v21  ;;  %v1033_v30 = vshll.u32 %v1032_v56, 16 }
 0x210   :  { %v6565_v1 = vadd.s32 %v988_v15, %v986_v23  ;;  %v1137_v15 = vcvt.f32.s32 %v5778_v4  ;;  %v1183_v4 = vshll.u32 %v1182_v43, 16 }
 0x211   :  { %v6563_v19 = vadd.s32 %v1048_v62, %v1046_v49 }
 0x212   :  { %v1138_v29 = vshll.u32 %v1137_v15, 16 }
 0x214   :  { %v1105_v22 = vpop.xlane.xlu2 %1104 }
 0x215   :  { %v1106_v3 = vcvt.f32.s32 %v1105_v22 }
 0x217   :  { %v6570_v47 = vadd.s32 %v1108_v40, %v1106_v3  ;;  %v1090_v59 = vpop.xlane.xlu0 %1089  ;;  %v1078_v3 = vshll.u32 %v1077_v28, 16  ;;  %v3623_v28 = vld [vmem:[%s7443_s0 + $0x90] sm:$0xff] }
 0x218   :  { %v1091_v21 = vcvt.f32.s32 %v1090_v59  ;;  %v1122_v59 = vcvt.f32.s32 %v5927_v37 }
 0x21a   :  { %v6572_v49 = vadd.s32 %v1093_v57, %v1091_v21 }
 0x21b   :  { %v1030_v50 = vpop.xlane.xlu1 %1029 }
 0x21c   :  { %v1031_v62 = vcvt.f32.s32 %v1030_v50 }
 0x21e   :  { %v6575_v23 = vadd.s32 %v1033_v30, %v1031_v62  ;;  %v1123_v30 = vshll.u32 %v1122_v59, 16 }
 0x223   :  { %v1135_v38 = vpop.xlane.xlu0 %1134 }
 0x224   :  { %v1136_v22 = vcvt.f32.s32 %v1135_v38  ;;  %v8378_v38 = vld [vmem:[#allocation8_spill] sm:$0xff] }
 0x225   :  { %v1075_v35 = vpop.xlane.xlu1 %1074  ;;  %vm914_vm2 = vcmp.eq.f32.partialorder %v3623_v28, %v8378_v38 }
 0x226   :  { %v1076_v40 = vcvt.f32.s32 %v1075_v35  ;;  %v6578_v25 = vadd.s32 %v1138_v29, %v1136_v22  ;;  %v946_v37 = vsel %vm914_vm2, %v4053_v42, 10  ;;  %v1203_v22 = vcvt.s32.f32 %v1201_v48 }
 0x228   :  { %v6581_v56 = vadd.s32 %v1078_v3, %v1076_v40  ;;  %v1230_v3 = vsel %vm8379_vm6, %v946_v37, 2147483647  ;;  %v8382_v37 = vld [vmem:[#allocation6_spill] sm:$0xff] }
 0x229   :  { %v1232_v43 = vshra.s32 %v1230_v3, 16 }
 0x22b   :  { %v1234_v59 = vcvt.s32.f32 %v1232_v43  ;;  %v6619_v43 = vpop.xlane.xlu2 %1149 }
 0x22c   :  { %v1180_v57 = vpop.xlane.xlu0 %1179 }
 0x22d   :  { %v1181_v21 = vcvt.f32.s32 %v1180_v57  ;;  %v1120_v50 = vpop.xlane.xlu1 %1119  ;;  %v8380_v57 = vld [vmem:[#allocation5_spill] sm:$0xff] }
 0x22e   :  { %v1121_v34 = vcvt.f32.s32 %v1120_v50  ;;  %vm913_vm2 = vcmp.eq.f32.partialorder %v3624_v17, %v8380_v57 }
 0x22f   :  { %v6584_v62 = vadd.s32 %v1183_v4, %v1181_v21  ;;  %v1186_v4 = vand.u32 65535, %v6286_v7  ;;  %v945_v21 = vsel %vm913_vm2, %v4053_v42, 10  ;;  %v3625_v7 = vld [vmem:[%s7443_s0 + $0xa0] sm:$0xff] }
 0x230   :  { %v6586_v15 = vadd.s32 %v1123_v30, %v1121_v34  ;;  %vm916_vm2 = vcmp.eq.f32.partialorder %v3625_v7, %v8382_v37 }
 0x231   :  { %v1188_v50 = vcvt.s32.f32 %v1186_v4 }
 0x240   :  { %v6594_v29 = vpop.xlane.xlu0 %1205 }
 0x241   :  { %vm1207_vm0 = vcmp.eq.f32.partialorder %v6132_v27, %v6594_v29  ;;  %v1212_v5 = vcvt.f32.s32 %v6594_v29 }
 0x242   :  { %v1208_v35 = vsel %vm1207_vm0, %v1203_v22, inf  ;;  %vm8381_vm0 = vcmask 80896   ;;  %v1231_v22 = vand.u32 65535, %v1230_v3  ;;  %v3626_v3 = vld [vmem:[%s7443_s0 + $0x98] sm:$0xff] }
 0x243   :  { %1209 = vmin.xlane.f32.xlu1 %v1208_v35  ;;  %v6599_v40 = vpop.xlane.xlu1 %1164  ;;  %v1215_v34 = vsel %vm8381_vm0, %v945_v21, 2147483647  ;;  %v948_v35 = vsel %vm916_vm2, %v4053_v42, 10 }
 0x244   :  { %v1217_v28 = vshra.s32 %v1215_v34, 16  ;;  %v1233_v17 = vcvt.s32.f32 %v1231_v22  ;;  %v1260_v4 = vsel %vm8381_vm0, %v948_v35, 2147483647  ;;  %v1216_v7 = vand.u32 65535, %v1215_v34  ;;  %v95_v34 = vld [vmem:[%s7444_s1 + $0x10] sm:$0xff] }
 0x245   :  { %v1262_v21 = vshra.s32 %v1260_v4, 16  ;;  %vm1442_vm9 = vcmp.eq.s32.totalorder %v6556_v58, %v95_v34  ;;  %v3627_v34 = vld [vmem:[%s7443_s0 + $0xb0] sm:$0xff] }
 0x246   :  { %v1219_v38 = vcvt.s32.f32 %v1217_v28  ;;  %v8383_v28 = vld [vmem:[#allocation7_spill] sm:$0xff] }
 0x247   :  { %vm915_vm2 = vcmp.eq.f32.partialorder %v3626_v3, %v8383_v28  ;;  %v96_v3 = vld [vmem:[%s7444_s1 + $0x18] sm:$0xff] }
 0x248   :  { %v947_v37 = vsel %vm915_vm2, %v4053_v42, 10  ;;  %vm1443_vm2 = vcmp.eq.s32.totalorder %v6554_v0, %v96_v3  ;;  %v97_v3 = vld [vmem:[%s7444_s1 + $0x20] sm:$0xff] }
 0x249   :  { %v6648_v28 = vsel %vm1443_vm2, 1.0, %v8028_v12  ;;  %vm1444_vm2 = vcmp.eq.s32.totalorder %v6575_v23, %v97_v3 }
 0x24b   :  { %1235 = vmin.xlane.f32.xlu1 %v1234_v59 }
 0x256   :  { %v6607_v27 = vpop.xlane.xlu1 %1190 }
 0x257   :  { %vm1192_vm6 = vcmp.eq.f32.partialorder %v6314_v33, %v6607_v27 }
 0x258   :  { %v1193_v30 = vsel %vm1192_vm6, %v1188_v50, inf }
 0x259   :  { %1194 = vmin.xlane.f32.xlu2 %v1193_v30  ;;  %v1264_v30 = vcvt.s32.f32 %v1262_v21 }
 0x261   :  { %1220 = vmin.xlane.f32.xlu2 %v1219_v38 }
 0x2b6   :  { %v6612_v48 = vpop.xlane.xlu1 %1209 }
 0x2be   :  { %v6621_v33 = vpop.xlane.xlu1 %1235 }
 0x2bf   :  { %vm1237_vm6 = vcmp.eq.f32.partialorder %v1234_v59, %v6621_v33  ;;  %v1218_v59 = vcvt.s32.f32 %v1216_v7  ;;  %v8384_v7 = vld [vmem:[#allocation10_spill] sm:$0xff]  ;;  %v1242_v24 = vcvt.f32.s32 %v6621_v33 }
 0x2c0   :  { %v1238_v57 = vsel %vm1237_vm6, %v1233_v17, inf  ;;  %v1245_v17 = vsel %vm8381_vm0, %v947_v37, 2147483647  ;;  %v93_v37 = vld [vmem:[%s7444_s1] sm:$0xff] }
 0x2c1   :  { %1239 = vmin.xlane.f32.xlu2 %v1238_v57  ;;  %v1247_v57 = vshra.s32 %v1245_v17, 16 }
 0x2c3   :  { %v1249_v21 = vcvt.s32.f32 %v1247_v57  ;;  %v98_v57 = vld [vmem:[%s7444_s1 + $0x28] sm:$0xff] }
 0x2c9   :  { %1265 = vmin.xlane.f32.xlu2 %v1264_v30 }
 0x2cc   :  { %v6625_v50 = vpop.xlane.xlu2 %1194 }
 0x2d4   :  { %v6632_v22 = vpop.xlane.xlu2 %1220 }
 0x2d5   :  { %vm1222_vm6 = vcmp.eq.f32.partialorder %v1219_v38, %v6632_v22  ;;  %v6645_v38 = vsel %vm1442_vm9, 1.0, %v8028_v12  ;;  %vm1445_vm9 = vcmp.eq.s32.totalorder %v6563_v19, %v98_v57 }
 0x2d6   :  { %v1223_v35 = vsel %vm1222_vm6, %v1218_v59, inf  ;;  %v94_v59 = vld [vmem:[%s7444_s1 + $0x8] sm:$0xff]  ;;  %vm1440_vm6 = vcmp.eq.s32.totalorder %v6507_v60, %v93_v37  ;;  %v6677_v60 = vsel %vm1444_vm2, 1.0, %v8028_v12  ;;  %v99_v37 = vld [vmem:[%s7444_s1 + $0x30] sm:$0xff] }
 0x2d7   :  { %1224 = vmin.xlane.f32.xlu0 %v1223_v35  ;;  %vm1441_vm0 = vcmp.eq.s32.totalorder %v6565_v1, %v94_v59  ;;  %v6661_v58 = vsel %vm1440_vm6, 1.0, %v8028_v12  ;;  %v6680_v1 = vsel %vm1445_vm9, 1.0, %v8028_v12  ;;  %v100_v59 = vld [vmem:[%s7444_s1 + $0x38] sm:$0xff]  ;;  %vm1446_vm6 = vcmp.eq.s32.totalorder %v6561_v26, %v99_v37 }
 0x2d8   :  { %v6664_v0 = vsel %vm1441_vm0, 1.0, %v8028_v12  ;;  %vm1447_vm0 = vcmp.eq.s32.totalorder %v6581_v56, %v100_v59  ;;  %v6693_v19 = vsel %vm1446_vm6, 1.0, %v8028_v12  ;;  %vm918_vm9 = vcmp.eq.f32.partialorder %v3627_v34, %v8384_v7  ;;  %v3628_v7 = vld [vmem:[%s7443_s0 + $0xa8] sm:$0xff] }
 0x2d9   :  { %v6696_v23 = vsel %vm1447_vm0, 1.0, %v8028_v12  ;;  %v1261_v26 = vand.u32 65535, %v1260_v4  ;;  %v950_v56 = vsel %vm918_vm9, %v4053_v42, 10  ;;  %vm8385_vm6 = vcmask 80896   ;;  %v8386_v4 = vld [vmem:[#allocation11_spill] sm:$0xff] }
 0x2da   :  { %v1290_v55 = vsel %vm8385_vm6, %v950_v56, 2147483647  ;;  %vm917_vm0 = vcmp.eq.f32.partialorder %v3628_v7, %v8386_v4  ;;  %v1246_v34 = vand.u32 65535, %v1245_v17  ;;  %v1211_v7 = vcvt.f32.s32 %v6612_v48 }
 0x2db   :  { %v1263_v59 = vcvt.s32.f32 %v1261_v26  ;;  %v1292_v57 = vshra.s32 %v1290_v55, 16  ;;  %v949_v26 = vsel %vm917_vm0, %v4053_v42, 10  ;;  %v1213_v4 = vshll.u32 %v1212_v5, 16 }
 0x2dd   :  { %v1294_v2 = vcvt.s32.f32 %v1292_v57  ;;  %v1214_v17 = vadd.s32 %v1213_v4, %v1211_v7 }
 0x2df   :  { %1250 = vmin.xlane.f32.xlu0 %v1249_v21 }
 0x334   :  { %v6700_v3 = vpop.xlane.xlu2 %1239 }
 0x33c   :  { %v6707_v37 = vpop.xlane.xlu2 %1265 }
 0x33d   :  { %vm1267_vm2 = vcmp.eq.f32.partialorder %v1264_v30, %v6707_v37  ;;  %v1248_v30 = vcvt.s32.f32 %v1246_v34 }
 0x33e   :  { %v1268_v35 = vsel %vm1267_vm2, %v1263_v59, inf  ;;  %vm8387_vm2 = vmmov %vm8385_vm6  ;;  %vm1448_vm6 = vcmp.eq.s32.totalorder %v6572_v49, %v101_v11 }
 0x33f   :  { %1269 = vmin.xlane.f32.xlu0 %v1268_v35  ;;  %v1275_v56 = vsel %vm8387_vm2, %v949_v26, 2147483647  ;;  %v6732_v34 = vsel %vm1448_vm6, 1.0, %v8028_v12  ;;  %v3629_v26 = vld [vmem:[%s7443_s0 + $0xc0] sm:$0xff]  ;;  %vm8389_vm6 = vcmask 80896  }
 0x340   :  { %v1277_v57 = vshra.s32 %v1275_v56, 16 }
 0x342   :  { %v1279_v59 = vcvt.s32.f32 %v1277_v57 }
 0x347   :  { %1295 = vmin.xlane.f32.xlu0 %v1294_v2 }
 0x34a   :  { %v6711_v51 = vpop.xlane.xlu0 %1224 }
 0x352   :  { %v6718_v52 = vpop.xlane.xlu0 %1250 }
 0x353   :  { %vm1252_vm9 = vcmp.eq.f32.partialorder %v1249_v21, %v6718_v52  ;;  %v109_v21 = vld [vmem:[%s7444_s1 + $0x80] sm:$0xff]  ;;  %v1257_v32 = vcvt.f32.s32 %v6718_v52 }
 0x354   :  { %v1253_v35 = vsel %vm1252_vm9, %v1248_v30, inf  ;;  %vm1456_vm0 = vcmp.eq.s32.totalorder %v1214_v17, %v109_v21  ;;  %v8388_v30 = vld [vmem:[#allocation14_spill] sm:$0xff] }
 0x355   :  { %1254 = vmin.xlane.f32.xlu1 %v1253_v35  ;;  %v6735_v29 = vsel %vm1456_vm0, 1.0, %v8028_v12  ;;  %vm920_vm9 = vcmp.eq.f32.partialorder %v3629_v26, %v8388_v30  ;;  %v1291_v35 = vand.u32 65535, %v1290_v55  ;;  %v3630_v26 = vld [vmem:[%s7443_s0 + $0xb8] sm:$0xff]  ;;  %v8390_v55 = vld [vmem:[#allocation9_spill] sm:$0xff]  ;;  %v1276_v30 = vand.u32 65535, %v1275_v56 }
 0x356   :  { %v952_v11 = vsel %vm920_vm9, %v4053_v42, 10  ;;  %vm919_vm0 = vcmp.eq.f32.partialorder %v3630_v26, %v8390_v55  ;;  %v1241_v26 = vcvt.f32.s32 %v6700_v3  ;;  %v1243_v56 = vshll.u32 %v1242_v24, 16 }
 0x357   :  { %v1293_v57 = vcvt.s32.f32 %v1291_v35  ;;  %v1320_v4 = vsel %vm8389_vm6, %v952_v11, 2147483647  ;;  %v951_v35 = vsel %vm919_vm0, %v4053_v42, 10 }
 0x358   :  { %v1322_v17 = vshra.s32 %v1320_v4, 16  ;;  %v1244_v55 = vadd.s32 %v1243_v56, %v1241_v26  ;;  %v3631_v56 = vld [vmem:[%s7443_s0 + $0xd0] sm:$0xff] }
 0x35a   :  { %v1324_v5 = vcvt.s32.f32 %v1322_v17 }
 0x35d   :  { %1280 = vmin.xlane.f32.xlu1 %v1279_v59 }
 0x3b2   :  { %v6739_v48 = vpop.xlane.xlu0 %1269 }
 0x3ba   :  { %v6746_v49 = vpop.xlane.xlu0 %1295 }
 0x3bb   :  { %vm1297_vm2 = vcmp.eq.f32.partialorder %v1294_v2, %v6746_v49  ;;  %v1278_v2 = vcvt.s32.f32 %v1276_v30  ;;  %v1227_v30 = vcvt.f32.s32 %v6632_v22  ;;  %v102_v22 = vld [vmem:[%s7444_s1 + $0x48] sm:$0xff]  ;;  %v1302_v54 = vcvt.f32.s32 %v6746_v49 }
 0x3bc   :  { %v1298_v7 = vsel %vm1297_vm2, %v1293_v57, inf  ;;  %vm8391_vm2 = vmmov %vm8389_vm6  ;;  %vm1450_vm6 = vcmp.eq.s32.totalorder %v6586_v15, %v103_v6  ;;  %v110_v6 = vld [vmem:[%s7444_s1 + $0x88] sm:$0xff]  ;;  %v1166_v49 = vcvt.f32.s32 %v6599_v40 }
 0x3bd   :  { %1299 = vmin.xlane.f32.xlu1 %v1298_v7  ;;  %v1305_v57 = vsel %vm8391_vm2, %v951_v35, 2147483647  ;;  %v1226_v35 = vcvt.f32.s32 %v6711_v51  ;;  %v1228_v33 = vshll.u32 %v1227_v30, 16  ;;  %v6773_v3 = vsel %vm1450_vm6, 1.0, %v8028_v12 }
 0x3be   :  { %v1307_v7 = vshra.s32 %v1305_v57, 16 }
 0x3c0   :  { %v1309_v17 = vcvt.s32.f32 %v1307_v7 }
 0x3c5   :  { %1325 = vmin.xlane.f32.xlu1 %v1324_v5 }
 0x3c8   :  { %v6750_v21 = vpop.xlane.xlu1 %1254 }
 0x3d0   :  { %v6757_v9 = vpop.xlane.xlu1 %1280 }
 0x3d1   :  { %vm1282_vm9 = vcmp.eq.f32.partialorder %v1279_v59, %v6757_v9  ;;  %v111_v59 = vld [vmem:[%s7444_s1 + $0x90] sm:$0xff] }
 0x3d2   :  { %v1283_v11 = vsel %vm1282_vm9, %v1278_v2, inf  ;;  %vm1458_vm0 = vcmp.eq.s32.totalorder %v1244_v55, %v111_v59  ;;  %v1229_v2 = vadd.s32 %v1228_v33, %v1226_v35  ;;  %vm1449_vm9 = vcmp.eq.s32.totalorder %v6570_v47, %v102_v22  ;;  %v8392_v55 = vld [vmem:[#allocation12_spill] sm:$0xff] }
 0x3d3   :  { %1284 = vmin.xlane.f32.xlu2 %v1283_v11  ;;  %v6776_v24 = vsel %vm1458_vm0, 1.0, %v8028_v12  ;;  %v6788_v51 = vsel %vm1449_vm9, 1.0, %v8028_v12  ;;  %vm922_vm6 = vcmp.eq.f32.partialorder %v3631_v56, %v8392_v55  ;;  %v1321_v59 = vand.u32 65535, %v1320_v4  ;;  %v3632_v56 = vld [vmem:[%s7443_s0 + $0xc8] sm:$0xff] }
 0x3d4   :  { %vm1457_vm2 = vcmp.eq.s32.totalorder %v1229_v2, %v110_v6  ;;  %v954_v47 = vsel %vm922_vm6, %v4053_v42, 10  ;;  %vm8393_vm9 = vcmask 80896   ;;  %v8394_v4 = vld [vmem:[#allocation13_spill] sm:$0xff]  ;;  %v1306_v55 = vand.u32 65535, %v1305_v57 }
 0x3d5   :  { %v6791_v15 = vsel %vm1457_vm2, 1.0, %v8028_v12  ;;  %v1323_v35 = vcvt.s32.f32 %v1321_v59  ;;  %v1350_v2 = vsel %vm8393_vm9, %v954_v47, 2147483647  ;;  %vm921_vm2 = vcmp.eq.f32.partialorder %v3632_v56, %v8394_v4 }
 0x3d6   :  { %v1352_v22 = vshra.s32 %v1350_v2, 16  ;;  %v953_v59 = vsel %vm921_vm2, %v4053_v42, 10  ;;  %v1256_v56 = vcvt.f32.s32 %v6750_v21  ;;  %v1258_v57 = vshll.u32 %v1257_v32, 16 }
 0x3d8   :  { %v1354_v7 = vcvt.s32.f32 %v1352_v22  ;;  %v1259_v4 = vadd.s32 %v1258_v57, %v1256_v56 }
 0x3db   :  { %1310 = vmin.xlane.f32.xlu2 %v1309_v17 }
 0x430   :  { %v6795_v26 = vpop.xlane.xlu1 %1299 }
 0x438   :  { %v6802_v30 = vpop.xlane.xlu1 %1325 }
 0x439   :  { %vm1327_vm0 = vcmp.eq.f32.partialorder %v1324_v5, %v6802_v30  ;;  %v1308_v5 = vcvt.s32.f32 %v1306_v55 }
 0x43a   :  { %v1328_v33 = vsel %vm1327_vm0, %v1323_v35, inf  ;;  %vm8395_vm0 = vmmov %vm8393_vm9  ;;  %vm1451_vm9 = vcmp.eq.s32.totalorder %v6578_v25, %v104_v18 }
 0x43b   :  { %1329 = vmin.xlane.f32.xlu2 %v1328_v33  ;;  %v1335_v35 = vsel %vm8395_vm0, %v953_v59, 2147483647  ;;  %v6827_v55 = vsel %vm1451_vm9, 1.0, %v8028_v12  ;;  %v3633_v59 = vld [vmem:[%s7443_s0 + $0xe0] sm:$0xff]  ;;  %vm8397_vm9 = vcmask 80896  }
 0x43c   :  { %v1337_v33 = vshra.s32 %v1335_v35, 16 }
 0x43e   :  { %v1339_v22 = vcvt.s32.f32 %v1337_v33 }
 0x443   :  { %1355 = vmin.xlane.f32.xlu2 %v1354_v7 }
 0x446   :  { %v6806_v6 = vpop.xlane.xlu2 %1284 }
 0x44e   :  { %v6813_v11 = vpop.xlane.xlu2 %1310 }
 0x44f   :  { %vm1312_vm6 = vcmp.eq.f32.partialorder %v1309_v17, %v6813_v11  ;;  %v112_v17 = vld [vmem:[%s7444_s1 + $0x98] sm:$0xff] }
 0x450   :  { %v1313_v47 = vsel %vm1312_vm6, %v1308_v5, inf  ;;  %vm1459_vm2 = vcmp.eq.s32.totalorder %v1259_v4, %v112_v17  ;;  %v8396_v5 = vld [vmem:[#allocation16_spill] sm:$0xff] }
 0x451   :  { %1314 = vmin.xlane.f32.xlu0 %v1313_v47  ;;  %v6830_v52 = vsel %vm1459_vm2, 1.0, %v8028_v12  ;;  %vm924_vm6 = vcmp.eq.f32.partialorder %v3633_v59, %v8396_v5  ;;  %v1351_v47 = vand.u32 65535, %v1350_v2  ;;  %v3634_v59 = vld [vmem:[%s7443_s0 + $0xd8] sm:$0xff]  ;;  %v8398_v2 = vld [vmem:[#allocation17_spill] sm:$0xff]  ;;  %v1336_v5 = vand.u32 65535, %v1335_v35 }
 0x452   :  { %v956_v18 = vsel %vm924_vm6, %v4053_v42, 10  ;;  %vm923_vm2 = vcmp.eq.f32.partialorder %v3634_v59, %v8398_v2  ;;  %v1301_v59 = vcvt.f32.s32 %v6795_v26  ;;  %v1303_v2 = vshll.u32 %v1302_v54, 16 }
 0x453   :  { %v1353_v33 = vcvt.s32.f32 %v1351_v47  ;;  %v1380_v57 = vsel %vm8397_vm9, %v956_v18, 2147483647  ;;  %v955_v47 = vsel %vm923_vm2, %v4053_v42, 10  ;;  %v1286_v54 = vcvt.f32.s32 %v6806_v6 }
 0x454   :  { %v1382_v4 = vshra.s32 %v1380_v57, 16  ;;  %v1304_v35 = vadd.s32 %v1303_v2, %v1301_v59  ;;  %v1197_v6 = vcvt.f32.s32 %v6607_v27 }
 0x456   :  { %v1384_v32 = vcvt.s32.f32 %v1382_v4  ;;  %v1198_v63 = vshll.u32 %v1197_v6, 16 }
 0x459   :  { %1340 = vmin.xlane.f32.xlu0 %v1339_v22 }
 0x4ae   :  { %v6834_v21 = vpop.xlane.xlu2 %1329 }
 0x4b6   :  { %v6841_v25 = vpop.xlane.xlu2 %1355 }
 0x4b7   :  { %vm1357_vm0 = vcmp.eq.f32.partialorder %v1354_v7, %v6841_v25  ;;  %v1338_v7 = vcvt.s32.f32 %v1336_v5  ;;  %v1167_v5 = vcvt.f32.s32 %v6074_v10  ;;  %v114_v10 = vld [vmem:[%s7444_s1 + $0xa8] sm:$0xff] }
 0x4b8   :  { %v1358_v56 = vsel %vm1357_vm0, %v1353_v33, inf  ;;  %vm8399_vm0 = vmmov %vm8397_vm9  ;;  %vm1454_vm9 = vcmp.eq.s32.totalorder %v6584_v62, %v107_v31  ;;  %v106_v31 = vld [vmem:[%s7444_s1 + $0x68] sm:$0xff] }
 0x4b9   :  { %1359 = vmin.xlane.f32.xlu0 %v1358_v56  ;;  %v1365_v33 = vsel %vm8399_vm0, %v955_v47, 2147483647  ;;  %v1287_v47 = vcvt.f32.s32 %v6757_v9  ;;  %v1168_v26 = vshll.u32 %v1167_v5, 16  ;;  %v8400_v5 = vld [vmem:[#allocation19_spill] sm:$0xff]  ;;  %v3636_v9 = vld [vmem:[%s7443_s0 + $0xe8] sm:$0xff] }
 0x4ba   :  { %v1367_v56 = vshra.s32 %v1365_v33, 16 }
 0x4bb   :  { %v1169_v59 = vadd.s32 %v1168_v26, %v1166_v49 }
 0x4bc   :  { %v1369_v4 = vcvt.s32.f32 %v1367_v56 }
 0x4c1   :  { %1385 = vmin.xlane.f32.xlu0 %v1384_v32 }
 0x4c4   :  { %v6845_v17 = vpop.xlane.xlu0 %1314 }
 0x4cc   :  { %v6852_v53 = vpop.xlane.xlu0 %1340 }
 0x4cd   :  { %vm1342_vm6 = vcmp.eq.f32.partialorder %v1339_v22, %v6852_v53  ;;  %v115_v22 = vld [vmem:[%s7444_s1 + $0xb0] sm:$0xff] }
 0x4ce   :  { %v1343_v18 = vsel %vm1342_vm6, %v1338_v7, inf  ;;  %vm1462_vm2 = vcmp.eq.s32.totalorder %v1304_v35, %v115_v22  ;;  %v1288_v7 = vshll.u32 %v1287_v47, 16  ;;  %vm1453_vm6 = vcmp.eq.s32.totalorder %v1169_v59, %v106_v31  ;;  %v3635_v22 = vld [vmem:[%s7443_s0 + $0xf0] sm:$0xff] }
 0x4cf   :  { %1344 = vmin.xlane.f32.xlu1 %v1343_v18  ;;  %v6870_v18 = vsel %vm1454_vm9, 1.0, %v8028_v12  ;;  %v6873_v56 = vsel %vm1462_vm2, 1.0, %v8028_v12  ;;  %v6884_v62 = vsel %vm1453_vm6, 1.0, %v8028_v12  ;;  %vm926_vm9 = vcmp.eq.f32.partialorder %v3635_v22, %v8400_v5  ;;  %v8402_v22 = vld [vmem:[#allocation15_spill] sm:$0xff] }
 0x4d0   :  { %v1289_v2 = vadd.s32 %v1288_v7, %v1286_v54  ;;  %v1381_v47 = vand.u32 65535, %v1380_v57  ;;  %v958_v49 = vsel %vm926_vm9, %v4053_v42, 10  ;;  %vm8401_vm6 = vcmask 80896  }
 0x4d1   :  { %v1410_v59 = vsel %vm8401_vm6, %v958_v49, 2147483647  ;;  %v1366_v57 = vand.u32 65535, %v1365_v33  ;;  %v1196_v33 = vcvt.f32.s32 %v6625_v50 }
 0x4d2   :  { %vm1461_vm0 = vcmp.eq.s32.totalorder %v1289_v2, %v114_v10  ;;  %v1383_v26 = vcvt.s32.f32 %v1381_v47  ;;  %v1412_v2 = vshra.s32 %v1410_v59, 16 }
 0x4d3   :  { %v6887_v40 = vsel %vm1461_vm0, 1.0, %v8028_v12  ;;  %vm925_vm0 = vcmp.eq.f32.partialorder %v3636_v9, %v8402_v22  ;;  %v1317_v9 = vcvt.f32.s32 %v6813_v11  ;;  %v1316_v22 = vcvt.f32.s32 %v6845_v17 }
 0x4d4   :  { %v1414_v10 = vcvt.s32.f32 %v1412_v2  ;;  %v957_v5 = vsel %vm925_vm0, %v4053_v42, 10  ;;  %v3666_v11 = vmov 0   ;;  %v1411_v17 = vand.u32 65535, %v1410_v59 }
 0x4d5   :  { %v1318_v8 = vshll.u32 %v1317_v9, 16  ;;  %3412 = vset.pattern.permute.xlu2 %v3666_v11  ;;  %3418 = vset.pattern.permute.xlu0 %v3666_v11  ;;  %v8404_v9 = vld [vmem:[#allocation18_spill] sm:$0xff] }
 0x4d6   :  { %3424 = vset.pattern.permute.xlu1 %v3666_v11 }
 0x4d7   :  { %1370 = vmin.xlane.f32.xlu1 %v1369_v4  ;;  %v1319_v39 = vadd.s32 %v1318_v8, %v1316_v22 }
 0x52c   :  { %v6891_v35 = vpop.xlane.xlu0 %1359 }
 0x534   :  { %v6898_v54 = vpop.xlane.xlu0 %1385 }
 0x535   :  { %vm1387_vm2 = vcmp.eq.f32.partialorder %v1384_v32, %v6898_v54  ;;  %v1368_v32 = vcvt.s32.f32 %v1366_v57  ;;  %v1199_v57 = vadd.s32 %v1198_v63, %v1196_v33 }
 0x536   :  { %v1388_v7 = vsel %vm1387_vm2, %v1383_v26, inf  ;;  %vm8403_vm2 = vmmov %vm8401_vm6 }
 0x537   :  { %1389 = vmin.xlane.f32.xlu1 %v1388_v7  ;;  %v1395_v26 = vsel %vm8403_vm2, %v957_v5, 2147483647  ;;  %v116_v5 = vld [vmem:[%s7444_s1 + $0xb8] sm:$0xff] }
 0x538   :  { %v1397_v7 = vshra.s32 %v1395_v26, 16  ;;  %vm1463_vm0 = vcmp.eq.s32.totalorder %v1319_v39, %v116_v5  ;;  %v1396_v33 = vand.u32 65535, %v1395_v26 }
 0x539   :  { %v6925_v50 = vsel %vm1463_vm0, 1.0, %v8028_v12  ;;  %vm8405_vm0 = vcmask 80896  }
 0x53a   :  { %v1399_v2 = vcvt.s32.f32 %v1397_v7  ;;  %v3637_v7 = vld [vmem:[%s7443_s0 + $0xf8] sm:$0xff] }
 0x53b   :  { %vm927_vm2 = vcmp.eq.f32.partialorder %v3637_v7, %v8404_v9 }
 0x53c   :  { %v959_v22 = vsel %vm927_vm2, %v4053_v42, 10 }
 0x53f   :  { %1415 = vmin.xlane.f32.xlu1 %v1414_v10 }
 0x542   :  { %v1345_v31 = vpop.xlane.xlu1 %1344 }
 0x543   :  { %v1346_v11 = vcvt.f32.s32 %v1345_v31 }
 0x54a   :  { %v6907_v47 = vpop.xlane.xlu1 %1370 }
 0x54b   :  { %vm1372_vm9 = vcmp.eq.f32.partialorder %v1369_v4, %v6907_v47  ;;  %v108_v4 = vld [vmem:[%s7444_s1 + $0x78] sm:$0xff] }
 0x54c   :  { %v1373_v49 = vsel %vm1372_vm9, %v1368_v32, inf  ;;  %vm1455_vm6 = vcmp.eq.s32.totalorder %v1199_v57, %v108_v4  ;;  %v1413_v32 = vcvt.s32.f32 %v1411_v17  ;;  %v1398_v57 = vcvt.s32.f32 %v1396_v33 }
 0x54d   :  { %1374 = vmin.xlane.f32.xlu2 %v1373_v49  ;;  %v6922_v27 = vsel %vm1455_vm6, 1.0, %v8028_v12  ;;  %v1332_v4 = vcvt.f32.s32 %v6802_v30 }
 0x54e   :  { %v3470_v63 = vpack.i.bf16 %v6922_v27, %v6925_v50  ;;  %v1425_v27 = vsel %vm8405_vm0, %v959_v22, 2147483647  ;;  %v1331_v50 = vcvt.f32.s32 %v6834_v21  ;;  %v8406_v21 = vpack.i.bf16 %v6664_v0, %v6661_v58 }
 0x54f   :  { %v1427_v17 = vshra.s32 %v1425_v27, 16  ;;  %v8407_v22 = vpack.i.bf16 %v6696_v23, %v6693_v19 }
 0x551   :  { %v1429_v30 = vcvt.s32.f32 %v1427_v17  ;;  %v8408_v17 = vpack.i.bf16 %v6732_v34, %v6735_v29  ;;  %v8411_v29 = vpack.i.bf16 %v6884_v62, %v6887_v40  ;;  %v122_v62 = vld [vmem:[%s7444_s1 + $0xe8] sm:$0xff] }
 0x555   :  { %1400 = vmin.xlane.f32.xlu2 %v1399_v2 }
 0x5aa   :  { %v6929_v8 = vpop.xlane.xlu1 %1389 }
 0x5b2   :  { %v6931_v6 = vpop.xlane.xlu1 %1415 }
 0x5b3   :  { %vm1417_vm9 = vcmp.eq.f32.partialorder %v1414_v10, %v6931_v6  ;;  %v1347_v10 = vcvt.f32.s32 %v6852_v53  ;;  %v118_v53 = vld [vmem:[%s7444_s1 + $0xc8] sm:$0xff] }
 0x5b4   :  { %v1418_v39 = vsel %vm1417_vm9, %v1413_v32, inf  ;;  %v1333_v32 = vshll.u32 %v1332_v4, 16  ;;  %v1152_v4 = vcvt.f32.s32 %v5802_v36  ;;  %v105_v36 = vld [vmem:[%s7444_s1 + $0x60] sm:$0xff] }
 0x5b5   :  { %1419 = vmin.xlane.f32.xlu2 %v1418_v39  ;;  %v1348_v39 = vshll.u32 %v1347_v10, 16  ;;  %v1271_v10 = vcvt.f32.s32 %v6739_v48  ;;  %v8410_v48 = vpack.i.bf16 %v6773_v3, %v6776_v24  ;;  %v121_v3 = vld [vmem:[%s7444_s1 + $0xe0] sm:$0xff] }
 0x5b6   :  { %v1334_v26 = vadd.s32 %v1333_v32, %v1331_v50  ;;  %v1153_v58 = vshll.u32 %v1152_v4, 16  ;;  %v1361_v4 = vcvt.f32.s32 %v6891_v35 }
 0x5b7   :  { %v1349_v7 = vadd.s32 %v1348_v39, %v1346_v11  ;;  %v113_v11 = vld [vmem:[%s7444_s1 + $0xa0] sm:$0xff] }
 0x5b9   :  { %vm1465_vm2 = vcmp.eq.s32.totalorder %v1349_v7, %v118_v53 }
 0x5ba   :  { %v3177_v9 = vsel %vm1465_vm2, 1.0, %v8028_v12 }
 0x5c0   :  { %v6934_v49 = vpop.xlane.xlu2 %1374 }
 0x5c8   :  { %v1401_v59 = vpop.xlane.xlu2 %1400 }
 0x5c9   :  { %vm1402_vm6 = vcmp.eq.f32.partialorder %v1399_v2, %v1401_v59  ;;  %v117_v2 = vld [vmem:[%s7444_s1 + $0xc0] sm:$0xff]  ;;  %v1407_v39 = vcvt.f32.s32 %v1401_v59 }
 0x5ca   :  { %v1403_v5 = vsel %vm1402_vm6, %v1398_v57, inf  ;;  %vm1464_vm9 = vcmp.eq.s32.totalorder %v1334_v26, %v117_v2  ;;  %v1272_v57 = vcvt.f32.s32 %v6707_v37 }
 0x5cb   :  { %1404 = vmin.xlane.f32.xlu0 %v1403_v5  ;;  %v3176_v31 = vsel %vm1464_vm9, 1.0, %v8028_v12  ;;  %v1151_v5 = vcvt.f32.s32 %v6619_v43  ;;  %v8409_v43 = vpack.i.bf16 %v6648_v28, %v6645_v38  ;;  %v1392_v38 = vcvt.f32.s32 %v6898_v54 }
 0x5cc   :  { %v3475_v33 = vpack.i.bf16 %v3177_v9, %v3176_v31  ;;  %v1273_v50 = vshll.u32 %v1272_v57, 16  ;;  %v1391_v28 = vcvt.f32.s32 %v6929_v8  ;;  %v1408_v2 = vshll.u32 %v1407_v39, 16  ;;  %v8417_v39 = vld [vmem:[#allocation42_spill] sm:$0xff] }
 0x5cd   :  { %3414 = vperm.xlu2 %3412, %v8406_v21   ;;  %v1154_v19 = vadd.s32 %v1153_v58, %v1151_v5  ;;  %v1393_v32 = vshll.u32 %v1392_v38, 16  ;;  %v1426_v54 = vand.u32 65535, %v1425_v27  ;;  %v1377_v57 = vcvt.f32.s32 %v6907_v47 }
 0x5ce   :  { %v1274_v0 = vadd.s32 %v1273_v50, %v1271_v10  ;;  %v1376_v27 = vcvt.f32.s32 %v6934_v49 }
 0x5cf   :  { %vm1452_vm0 = vcmp.eq.s32.totalorder %v1154_v19, %v105_v36  ;;  %v1394_v26 = vadd.s32 %v1393_v32, %v1391_v28  ;;  %v1428_v31 = vcvt.s32.f32 %v1426_v54  ;;  %v1378_v50 = vshll.u32 %v1377_v57, 16  ;;  %v8419_v57 = vld [vmem:[#allocation87_spill] sm:$0xff] }
 0x5d0   :  { %vm1460_vm6 = vcmp.eq.s32.totalorder %v1274_v0, %v113_v11  ;;  %v3164_v37 = vsel %vm1452_vm0, 1.0, %v8028_v12  ;;  %v8412_v36 = vpack.i.bf16 %v6680_v1, %v6677_v60  ;;  %v8414_v60 = vpack.i.bf16 %v6827_v55, %v6830_v52 }
 0x5d1   :  { %v3172_v23 = vsel %vm1460_vm6, 1.0, %v8028_v12  ;;  %vm1468_vm9 = vcmp.eq.s32.totalorder %v1394_v26, %v121_v3  ;;  %v1379_v0 = vadd.s32 %v1378_v50, %v1376_v27  ;;  %v8415_v1 = vpack.i.bf16 %v6870_v18, %v6873_v56 }
 0x5d2   :  { %v3455_v34 = vpack.i.bf16 %v3164_v37, %v3172_v23  ;;  %v8413_v37 = vpack.i.bf16 %v6788_v51, %v6791_v15  ;;  %v1422_v51 = vcvt.f32.s32 %v6931_v6  ;;  %v123_v6 = vld [vmem:[%s7444_s1 + $0xf0] sm:$0xff] }
 0x5d3   :  { %1430 = vmin.xlane.f32.xlu0 %v1429_v30 }
 0x5d4   :  { %v1423_v18 = vshll.u32 %v1422_v51, 16 }
 0x5d5   :  { %3431 = vperm.xlu2 %3412, %v8407_v22   ;;  %v1362_v22 = vcvt.f32.s32 %v6841_v25  ;;  %v120_v25 = vld [vmem:[%s7444_s1 + $0xd8] sm:$0xff] }
 0x5d7   :  { %v1363_v5 = vshll.u32 %v1362_v22, 16 }
 0x5d9   :  { %v1364_v58 = vadd.s32 %v1363_v5, %v1361_v4 }
 0x5dd   :  { %3436 = vperm.xlu2 %3412, %v8408_v17  }
 0x5e5   :  { %3446 = vperm.xlu2 %3412, %v8410_v48  }
 0x5e7   :  { %3420 = vperm.xlu0 %3418, %v8409_v43  }
 0x5ed   :  { %3461 = vperm.xlu2 %3412, %v8411_v29  }
 0x5ef   :  { %3456 = vperm.xlu0 %3418, %v3455_v34   ;;  %v8416_v34 = vld [vmem:[#allocation90_spill] sm:$0xff] }
 0x5f5   :  { %3476 = vperm.xlu2 %3412, %v3475_v33  }
 0x5f7   :  { %3471 = vperm.xlu0 %3418, %v3470_v63   ;;  %v3180_v63 = vsel %vm1468_vm9, 1.0, %v8028_v12  ;;  %vm1467_vm9 = vcmp.eq.s32.totalorder %v1379_v0, %v120_v25  ;;  %v8420_v0 = vld [vmem:[#allocation67_spill] sm:$0xff] }
 0x5f8   :  { %v3179_v49 = vsel %vm1467_vm9, 1.0, %v8028_v12 }
 0x628   :  { %v6985_v7 = vpop.xlane.xlu2 %1419 }
 0x629   :  { %v1421_v55 = vcvt.f32.s32 %v6985_v7 }
 0x62b   :  { %v1424_v32 = vadd.s32 %v1423_v18, %v1421_v55 }
 0x62d   :  { %vm1470_vm9 = vcmp.eq.s32.totalorder %v1424_v32, %v123_v6  ;;  %v8423_v32 = vld [vmem:[#allocation65_spill] sm:$0xff] }
 0x630   :  { %v3415_v9 = vpop.permute.xlu2 %3414 }
 0x631   :  { %v3417_v38 = vunpack.i.h.bf16 %v3415_v9 }
 0x638   :  { %v6999_v10 = vpop.permute.xlu2 %3431 }
 0x63e   :  { %v1405_v24 = vpop.xlane.xlu0 %1404 }
 0x63f   :  { %v1406_v53 = vcvt.f32.s32 %v1405_v24 }
 0x640   :  { %v7007_v47 = vpop.permute.xlu2 %3436 }
 0x641   :  { %v1409_v40 = vadd.s32 %v1408_v2, %v1406_v53  ;;  %v3438_v17 = vunpack.i.l.bf16 %v7007_v47  ;;  %v124_v53 = vld [vmem:[%s7444_s1 + $0xf8] sm:$0xff] }
 0x643   :  { %vm1469_vm2 = vcmp.eq.s32.totalorder %v1409_v40, %v122_v62 }
 0x644   :  { %v3181_v8 = vsel %vm1469_vm2, 1.0, %v8028_v12  ;;  %vm2086_vm2 = vcmp.eq.s32.totalorder %v4053_v42, 2 }
 0x645   :  { %v3485_v59 = vpack.i.bf16 %v3181_v8, %v3180_v63  ;;  %v2295_v19 = vsel %vm2086_vm2, %v3438_v17, 0.0  ;;  %v2280_v52 = vsel %vm2086_vm2, %v3417_v38, 0.0  ;;  %v3182_v63 = vsel %vm1470_vm9, 1.0, %v8028_v12 }
 0x646   :  { %v1431_v21 = vpop.xlane.xlu0 %1430 }
 0x647   :  { %3486 = vperm.xlu0 %3418, %v3485_v59   ;;  %vm1432_vm6 = vcmp.eq.f32.partialorder %v1429_v30, %v1431_v21  ;;  %v119_v30 = vld [vmem:[%s7444_s1 + $0xd0] sm:$0xff]  ;;  %v1437_v56 = vcvt.f32.s32 %v1431_v21  ;;  %s3667_s1 = smov [#allocation2]  }
 0x648   :  { %v1433_v33 = vsel %vm1432_vm6, %v1428_v31, inf  ;;  %vm1466_vm0 = vcmp.eq.s32.totalorder %v1364_v58, %v119_v30  ;;  %vm2053_vm6 = vcmp.eq.s32.totalorder %v4053_v42, 1  ;;  %v8418_v21 = vld [vmem:[#allocation22_spill] sm:$0xff]  ;;  %s3129_s26 = sshll.u32 %s3667_s1, 4  ;;  %s3130_s26 = int_to_ptr.vmem [resolvable:$true] %s3129_s26 }
 0x649   :  { %1434 = vmin.xlane.f32.xlu1 %v1433_v33  ;;  %v3178_v35 = vsel %vm1466_vm0, 1.0, %v8028_v12  ;;  %v2327_v43 = vsel %vm2053_vm6, %v6464_v13, %v2295_v19  ;;  %vm2052_vm0 = vcmp.eq.s32.totalorder %v4053_v42, 0  ;;  %v3416_v13 = vunpack.i.l.bf16 %v3415_v9  ;;  %v8421_v19 = vld [vmem:[#allocation88_spill] sm:$0xff] }
 0x64a   :  { %v3480_v11 = vpack.i.bf16 %v3179_v49, %v3178_v35  ;;  %v2359_v23 = vsel %vm2052_vm0, 1.0, %v2327_v43  ;;  %v2312_v26 = vsel %vm2053_vm6, %v8417_v39, %v2280_v52  ;;  %v1438_v2 = vshll.u32 %v1437_v56, 16  ;;  %v3447_v49 = vpop.permute.xlu2 %3446 }
 0x64b   :  { %v2279_v48 = vsel %vm2086_vm2, %v3416_v13, 0.0  ;;  %v2344_v62 = vsel %vm2052_vm0, 1.0, %v2312_v26  ;;  %v3433_v43 = vunpack.i.l.bf16 %v6999_v10  ;;  %v3439_v26 = vunpack.i.h.bf16 %v7007_v47 }
 0x64c   :  { %v2311_v29 = vsel %vm2053_vm6, %v8416_v34, %v2279_v48 }
 0x64d   :  { %v2343_v15 = vsel %vm2052_vm0, 1.0, %v2311_v29  ;;  %v2285_v48 = vsel %vm2086_vm2, %v3433_v43, 0.0 }
 0x659   :  { %v3421_v28 = vpop.permute.xlu0 %3420 }
 0x65a   :  { %v3422_v3 = vunpack.i.l.bf16 %v3421_v28  ;;  %v3423_v9 = vunpack.i.h.bf16 %v3421_v28 }
 0x65c   :  { %v2281_v54 = vsel %vm2086_vm2, %v3422_v3, 0.0  ;;  %v2282_v22 = vsel %vm2086_vm2, %v3423_v9, 0.0  ;;  %v8425_v9 = vld [vmem:[#allocation148_spill] sm:$0xff] }
 0x65d   :  { %v2313_v31 = vsel %vm2053_vm6, %v8418_v21, %v2281_v54  ;;  %v2314_v4 = vsel %vm2053_vm6, %v8419_v57, %v2282_v22  ;;  %v3449_v22 = vunpack.i.h.bf16 %v3447_v49 }
 0x65e   :  { %v2345_v33 = vsel %vm2052_vm0, 1.0, %v2313_v31 }
 0x661   :  { %v3457_v28 = vpop.permute.xlu0 %3456 }
 0x662   :  { %3426 = vperm.xlu1 %3424, %v8412_v36   ;;  %v3458_v6 = vunpack.i.l.bf16 %v3457_v28 }
 0x669   :  { %2407 = vxpose.xlu0.b32.start [1/16] (narrow) %v2359_v23, 8  ;;  %v3448_v23 = vunpack.i.l.bf16 %v3447_v49 }
 0x66a   :  { %3441 = vperm.xlu1 %3424, %v8413_v37  }
 0x66b   :  { %v2297_v34 = vsel %vm2086_vm2, %v3448_v23, 0.0  ;;  %v3459_v23 = vunpack.i.h.bf16 %v3457_v28 }
 0x66c   :  { %v2329_v38 = vsel %vm2053_vm6, %v6391_v44, %v2297_v34  ;;  %v8428_v34 = vld [vmem:[#allocation137_spill] sm:$0xff] }
 0x66d   :  { %v2361_v52 = vsel %vm2052_vm0, 1.0, %v2329_v38 }
 0x672   :  { %3451 = vperm.xlu1 %3424, %v8414_v60  }
 0x67a   :  { %3466 = vperm.xlu1 %3424, %v8415_v1  }
 0x682   :  { %3481 = vperm.xlu1 %3424, %v3480_v11  }
 0x6b7   :  { %2375 = vxpose.xlu1.b32.start [1/16] (narrow) %v2343_v15, 8  ;;  %v3434_v15 = vunpack.i.h.bf16 %v6999_v10 }
 0x6b9   :  { %v2286_v56 = vsel %vm2086_vm2, %v3434_v15, 0.0 }
 0x6ba   :  { %v2318_v39 = vsel %vm2053_vm6, %v8423_v32, %v2286_v56 }
 0x6bc   :  { %v1435_v24 = vpop.xlane.xlu1 %1434 }
 0x6bd   :  { %v1436_v7 = vcvt.f32.s32 %v1435_v24  ;;  %v2350_v24 = vsel %vm2052_vm0, 1.0, %v2318_v39 }
 0x6bf   :  { %v1439_v40 = vadd.s32 %v1438_v2, %v1436_v7  ;;  %2376 = vxpose.xlu1.b32.cont [2/16] (narrow) %v2344_v62, 8  ;;  %v2287_v2 = vsel %vm2086_vm2, %v3439_v26, 0.0  ;;  %v3462_v7 = vpop.permute.xlu2 %3461 }
 0x6c0   :  { %v3464_v38 = vunpack.i.h.bf16 %v3462_v7 }
 0x6c1   :  { %vm1471_vm14 = vcmp.eq.s32.totalorder %v1439_v40, %v124_v53  ;;  %v8424_v53 = vld [vmem:[#allocation86_spill] sm:$0xff]  ;;  %v3463_v40 = vunpack.i.l.bf16 %v3462_v7 }
 0x6c2   :  { %v3183_v8 = vsel %vm1471_vm14, 1.0, %v8028_v12  ;;  %v2346_v12 = vsel %vm2052_vm0, 1.0, %v2314_v4  ;;  %v2319_v62 = vsel %vm2053_vm6, %v8424_v53, %v2287_v2 }
 0x6c3   :  { %v3490_v59 = vpack.i.bf16 %v3183_v8, %v3182_v63  ;;  %v2351_v8 = vsel %vm2052_vm0, 1.0, %v2319_v62 }
 0x6c5   :  { %3491 = vperm.xlu2 %3412, %v3490_v59   ;;  %v2300_v59 = vsel %vm2086_vm2, %v3463_v40, 0.0 }
 0x6c6   :  { %v2332_v31 = vsel %vm2053_vm6, %v6299_v61, %v2300_v59  ;;  %v8433_v59 = vld [vmem:[#allocation52_spill] sm:$0xff] }
 0x6c7   :  { %2377 = vxpose.xlu1.b32.cont [3/16] (narrow) %v2345_v33, 8  ;;  %v2364_v4 = vsel %vm2052_vm0, 1.0, %v2332_v31 }
 0x6cf   :  { %2378 = vxpose.xlu1.b32.cont [4/16] (narrow) %v2346_v12, 8 }
 0x6d4   :  { %v3427_v27 = vpop.permute.xlu1 %3426 }
 0x6d5   :  { %v3428_v5 = vunpack.i.l.bf16 %v3427_v27  ;;  %v3429_v50 = vunpack.i.h.bf16 %v3427_v27  ;;  %v2289_v27 = vsel %vm2086_vm2, %v3449_v22, 0.0 }
 0x6d7   :  { %v2283_v58 = vsel %vm2086_vm2, %v3428_v5, 0.0  ;;  %v2284_v35 = vsel %vm2086_vm2, %v3429_v50, 0.0  ;;  %v3472_v5 = vpop.permute.xlu0 %3471 }
 0x6d8   :  { %v2315_v30 = vsel %vm2053_vm6, %v8420_v0, %v2283_v58  ;;  %v2316_v36 = vsel %vm2053_vm6, %v8421_v19, %v2284_v35  ;;  %v8426_v58 = vld [vmem:[#allocation146_spill] sm:$0xff] }
 0x6d9   :  { %v2347_v25 = vsel %vm2052_vm0, 1.0, %v2315_v30  ;;  %v2348_v13 = vsel %vm2052_vm0, 1.0, %v2316_v36  ;;  %v2321_v0 = vsel %vm2053_vm6, %v8426_v58, %v2289_v27  ;;  %v3473_v30 = vunpack.i.l.bf16 %v3472_v5  ;;  %v8427_v36 = vld [vmem:[#allocation138_spill] sm:$0xff]  ;;  %v8436_v58 = vld [vmem:[#allocation49_spill] sm:$0xff] }
 0x6da   :  { %2379 = vxpose.xlu1.b32.cont [5/16] (narrow) %v2347_v25, 8  ;;  %v2353_v49 = vsel %vm2052_vm0, 1.0, %v2321_v0 }
 0x6dc   :  { %v3442_v11 = vpop.permute.xlu1 %3441 }
 0x6dd   :  { %v3443_v17 = vunpack.i.l.bf16 %v3442_v11  ;;  %v3444_v54 = vunpack.i.h.bf16 %v3442_v11  ;;  %v2302_v11 = vsel %vm2086_vm2, %v3473_v30, 0.0 }
 0x6de   :  { %v2334_v19 = vsel %vm2053_vm6, %v6204_v20, %v2302_v11 }
 0x6df   :  { %v2296_v37 = vsel %vm2086_vm2, %v3443_v17, 0.0  ;;  %v3477_v17 = vpop.permute.xlu2 %3476 }
 0x6e0   :  { %v2328_v60 = vsel %vm2053_vm6, %v6432_v46, %v2296_v37  ;;  %v8422_v46 = vld [vmem:[#allocation48_spill] sm:$0xff]  ;;  %v3478_v37 = vunpack.i.l.bf16 %v3477_v17 }
 0x6e1   :  { %v2360_v1 = vsel %vm2052_vm0, 1.0, %v2328_v60  ;;  %v2317_v51 = vsel %vm2053_vm6, %v8422_v46, %v2285_v48  ;;  %v2366_v60 = vsel %vm2052_vm0, 1.0, %v2334_v19  ;;  %v3479_v46 = vunpack.i.h.bf16 %v3477_v17 }
 0x6e2   :  { %2408 = vxpose.xlu0.b32.cont [2/16] (narrow) %v2360_v1, 8  ;;  %2380 = vxpose.xlu1.b32.cont [6/16] (narrow) %v2348_v13, 8  ;;  %v2349_v18 = vsel %vm2052_vm0, 1.0, %v2317_v51  ;;  %v2291_v13 = vsel %vm2086_vm2, %v3459_v23, 0.0  ;;  %v2303_v20 = vsel %vm2086_vm2, %v3478_v37, 0.0 }
 0x6e3   :  { %v2335_v48 = vsel %vm2053_vm6, %v6151_v41, %v2303_v20  ;;  %v2304_v41 = vsel %vm2086_vm2, %v3479_v46, 0.0 }
 0x6e4   :  { %v3452_v29 = vpop.permute.xlu1 %3451  ;;  %v2367_v51 = vsel %vm2052_vm0, 1.0, %v2335_v48 }
 0x6e5   :  { %v3453_v55 = vunpack.i.l.bf16 %v3452_v29  ;;  %v3454_v25 = vunpack.i.h.bf16 %v3452_v29  ;;  %v2323_v29 = vsel %vm2053_vm6, %v8428_v34, %v2291_v13  ;;  %v8439_v13 = vmov 1.0  }
 0x6e6   :  { %v2355_v15 = vsel %vm2052_vm0, 1.0, %v2323_v29  ;;  %v8442_v29 = vld [vmem:[#allocation23_spill] sm:$0xff] }
 0x6e7   :  { %v2298_v44 = vsel %vm2086_vm2, %v3453_v55, 0.0  ;;  %v2292_v55 = vsel %vm2086_vm2, %v3464_v38, 0.0  ;;  %v8443_v38 = vand.u32 4294901760, %v8442_v29 }
 0x6e8   :  { %v2330_v10 = vsel %vm2053_vm6, %v6366_v14, %v2298_v44  ;;  %v2299_v14 = vsel %vm2086_vm2, %v3458_v6, 0.0  ;;  %v8430_v44 = vld [vmem:[#allocation135_spill] sm:$0xff] }
 0x6e9   :  { %v2362_v3 = vsel %vm2052_vm0, 1.0, %v2330_v10  ;;  %v2331_v47 = vsel %vm2053_vm6, %v6342_v45, %v2299_v14  ;;  %v2288_v45 = vsel %vm2086_vm2, %v3444_v54, 0.0  ;;  %v2324_v28 = vsel %vm2053_vm6, %v8430_v44, %v2292_v55  ;;  %v8432_v14 = vld [vmem:[#allocation133_spill] sm:$0xff] }
 0x6ea   :  { %2409 = vxpose.xlu0.b32.cont [3/16] (narrow) %v2361_v52, 8  ;;  %2381 = vxpose.xlu1.b32.cont [7/16] (narrow) %v2349_v18, 8  ;;  %v2363_v63 = vsel %vm2052_vm0, 1.0, %v2331_v47  ;;  %v2320_v33 = vsel %vm2053_vm6, %v8425_v9, %v2288_v45  ;;  %v8429_v18 = vld [vmem:[#allocation59_spill] sm:$0xff]  ;;  %v2356_v26 = vsel %vm2052_vm0, 1.0, %v2324_v28  ;;  %v3474_v47 = vunpack.i.h.bf16 %v3472_v5  ;;  %v8451_v28 = vld [vmem:[#allocation24_spill] sm:$0xff] }
 0x6eb   :  { %v2352_v12 = vsel %vm2052_vm0, 1.0, %v2320_v33  ;;  %v2336_v56 = vsel %vm2053_vm6, %v8429_v18, %v2304_v41  ;;  %v8448_v18 = vld [vmem:[#allocation77_spill] sm:$0xff] }
 0x6ec   :  { %v3467_v21 = vpop.permute.xlu1 %3466  ;;  %v2368_v39 = vsel %vm2052_vm0, 1.0, %v2336_v56  ;;  %v2294_v54 = vsel %vm2086_vm2, %v3474_v47, 0.0  ;;  %v8449_v56 = vand.u32 4294901760, %v8448_v18  ;;  %v8462_v47 = vld [vmem:[#allocation63_spill] sm:$0xff] }
 0x6ed   :  { %v3468_v57 = vunpack.i.l.bf16 %v3467_v21  ;;  %v3469_v10 = vunpack.i.h.bf16 %v3467_v21  ;;  %v8434_v21 = vld [vmem:[#allocation111_spill] sm:$0xff] }
 0x6ee   :  { %v2326_v31 = vsel %vm2053_vm6, %v8434_v21, %v2294_v54  ;;  %v8468_v54 = vld [vmem:[#allocation31_spill] sm:$0xff] }
 0x6ef   :  { %v2301_v61 = vsel %vm2086_vm2, %v3468_v57, 0.0  ;;  %v2293_v6 = vsel %vm2086_vm2, %v3469_v10, 0.0  ;;  %v2358_v22 = vsel %vm2052_vm0, 1.0, %v2326_v31  ;;  %v8452_v10 = vand.u32 4294901760, %v8451_v28  ;;  %v8475_v31 = vld [vmem:[#allocation33_spill] sm:$0xff] }
 0x6f0   :  { %v2333_v50 = vsel %vm2053_vm6, %v6235_v16, %v2301_v61  ;;  %v2290_v16 = vsel %vm2086_vm2, %v3454_v25, 0.0  ;;  %v2325_v7 = vsel %vm2053_vm6, %v8432_v14, %v2293_v6  ;;  %v8460_v14 = vld [vmem:[#allocation29_spill] sm:$0xff] }
 0x6f1   :  { %v2365_v35 = vsel %vm2052_vm0, 1.0, %v2333_v50  ;;  %v2322_v43 = vsel %vm2053_vm6, %v8427_v36, %v2290_v16  ;;  %v2357_v40 = vsel %vm2052_vm0, 1.0, %v2325_v7  ;;  %v8438_v36 = vld [vmem:[#allocation76_spill] sm:$0xff]  ;;  %v8461_v7 = vand.u32 4294901760, %v8460_v14 }
 0x6f2   :  { %2410 = vxpose.xlu0.b32.cont [4/16] (narrow) %v2362_v3, 8  ;;  %2382 = vxpose.xlu1.b32.cont [8/16] (narrow) %v2350_v24, 8  ;;  %v2354_v1 = vsel %vm2052_vm0, 1.0, %v2322_v43  ;;  %v8431_v24 = vld [vmem:[#allocation64_spill] sm:$0xff] }
 0x6f4   :  { %v3482_v52 = vpop.permute.xlu1 %3481 }
 0x6f5   :  { %v3483_v32 = vunpack.i.l.bf16 %v3482_v52  ;;  %v3484_v53 = vunpack.i.h.bf16 %v3482_v52 }
 0x6f7   :  { %v2305_v3 = vsel %vm2086_vm2, %v3483_v32, 0.0 }
 0x6f8   :  { %v2337_v2 = vsel %vm2053_vm6, %v8431_v24, %v2305_v3  ;;  %v8457_v3 = vld [vmem:[#allocation72_spill] sm:$0xff] }
 0x6f9   :  { %v2369_v62 = vsel %vm2052_vm0, 1.0, %v2337_v2  ;;  %v8458_v24 = vand.u32 4294901760, %v8457_v3 }
 0x6fa   :  { %2411 = vxpose.xlu0.b32.cont [5/16] (narrow) %v2363_v63, 8  ;;  %2383 = vxpose.xlu1.b32.cont [9/16] (narrow) %v2351_v8, 8  ;;  %v2306_v63 = vsel %vm2086_vm2, %v3484_v53, 0.0  ;;  %v3487_v8 = vpop.permute.xlu0 %3486  ;;  %v8464_v53 = vld [vmem:[#allocation27_spill] sm:$0xff] }
 0x6fb   :  { %v2338_v45 = vsel %vm2053_vm6, %v8433_v59, %v2306_v63  ;;  %v3488_v9 = vunpack.i.l.bf16 %v3487_v8  ;;  %v3489_v27 = vunpack.i.h.bf16 %v3487_v8  ;;  %v8469_v63 = vand.u32 4294901760, %v8468_v54  ;;  %v8471_v59 = vld [vmem:[#allocation30_spill] sm:$0xff] }
 0x6fc   :  { %v2370_v33 = vsel %vm2052_vm0, 1.0, %v2338_v45  ;;  %v8472_v45 = vand.u32 4294901760, %v8471_v59 }
 0x6fd   :  { %v2307_v57 = vsel %vm2086_vm2, %v3488_v9, 0.0  ;;  %v2308_v5 = vsel %vm2086_vm2, %v3489_v27, 0.0  ;;  %v8476_v9 = vand.u32 4294901760, %v8475_v31 }
 0x6fe   :  { %v2340_v0 = vsel %vm2053_vm6, %v8436_v58, %v2308_v5  ;;  %v8485_v5 = vld [vmem:[#allocation41_spill] sm:$0xff]  ;;  %v8487_v58 = vld [vmem:[#allocation39_spill] sm:$0xff] }
 0x6ff   :  { %v2372_v25 = vsel %vm2052_vm0, 1.0, %v2340_v0  ;;  %v8488_v0 = vand.u32 4294901760, %v8487_v58 }
 0x702   :  { %2412 = vxpose.xlu0.b32.cont [6/16] (narrow) %v2364_v4, 8  ;;  %2384 = vxpose.xlu1.b32.cont [10/16] (narrow) %v2352_v12, 8  ;;  %v8435_v4 = vld [vmem:[#allocation68_spill] sm:$0xff] }
 0x703   :  { %v2339_v12 = vsel %vm2053_vm6, %v8435_v4, %v2307_v57  ;;  %v8481_v4 = vld [vmem:[#allocation37_spill] sm:$0xff] }
 0x704   :  { %v2371_v61 = vsel %vm2052_vm0, 1.0, %v2339_v12  ;;  %v8483_v12 = vld [vmem:[#allocation40_spill] sm:$0xff] }
 0x705   :  { %v8484_v27 = vand.u32 4294901760, %v8483_v12 }
 0x70a   :  { %2413 = vxpose.xlu0.b32.cont [7/16] (narrow) %v2365_v35, 8  ;;  %2385 = vxpose.xlu1.b32.cont [11/16] (narrow) %v2353_v49, 8  ;;  %v8437_v49 = vld [vmem:[#allocation70_spill] sm:$0xff] }
 0x712   :  { %2414 = vxpose.xlu0.b32.cont [8/16] (narrow) %v2366_v60, 8  ;;  %2386 = vxpose.xlu1.b32.cont [12/16] (narrow) %v2354_v1, 8 }
 0x71a   :  { %2415 = vxpose.xlu0.b32.cont [9/16] (narrow) %v2367_v51, 8  ;;  %2387 = vxpose.xlu1.b32.cont [13/16] (narrow) %v2355_v15, 8  ;;  %v8445_v15 = vld [vmem:[#allocation82_spill] sm:$0xff] }
 0x71b   :  { %v8446_v55 = vand.u32 4294901760, %v8445_v15 }
 0x71f   :  { %v3492_v50 = vpop.permute.xlu2 %3491 }
 0x720   :  { %v3493_v30 = vunpack.i.l.bf16 %v3492_v50  ;;  %v3494_v16 = vunpack.i.h.bf16 %v3492_v50 }
 0x722   :  { %2416 = vxpose.xlu0.b32.cont [10/16] (narrow) %v2368_v39, 8  ;;  %2388 = vxpose.xlu1.b32.cont [14/16] (narrow) %v2356_v26, 8  ;;  %v2309_v35 = vsel %vm2086_vm2, %v3493_v30, 0.0  ;;  %v2310_v19 = vsel %vm2086_vm2, %v3494_v16, 0.0  ;;  %v8454_v39 = vld [vmem:[#allocation28_spill] sm:$0xff] }
 0x723   :  { %v2341_v11 = vsel %vm2053_vm6, %v8437_v49, %v2309_v35  ;;  %v2342_v43 = vsel %vm2053_vm6, %v8438_v36, %v2310_v19  ;;  %v8455_v26 = vand.u32 4294901760, %v8454_v39  ;;  %v8491_v35 = vld [vmem:[#allocation45_spill] sm:$0xff]  ;;  %v8494_v16 = vld [vmem:[#allocation140_spill] sm:$0xff] }
 0x724   :  { %v2373_v17 = vsel %vm2052_vm0, 1.0, %v2341_v11  ;;  %v2374_v23 = vsel %vm2052_vm0, 1.0, %v2342_v43  ;;  %v8492_v49 = vand.u32 4294901760, %v8491_v35 }
 0x72a   :  { %2417 = vxpose.xlu0.b32.cont [11/16] (narrow) %v2369_v62, 8  ;;  %2389 = vxpose.xlu1.b32.cont [15/16] (narrow) %v2357_v40, 8  ;;  %v8465_v62 = vand.u32 4294901760, %v8464_v53  ;;  %v8466_v40 = vld [vmem:[#allocation32_spill] sm:$0xff] }
 0x732   :  { %2418 = vxpose.xlu0.b32.cont [12/16] (narrow) %v2370_v33, 8  ;;  %2390 = vxpose.xlu1.b32.end [16/16] (narrow) %v2358_v22, 8  ;;  %v8479_v22 = vld [vmem:[#allocation36_spill] sm:$0xff] }
 0x733   :  { %v8480_v57 = vand.u32 4294901760, %v8479_v22 }
 0x73a   :  { %2419 = vxpose.xlu0.b32.cont [13/16] (narrow) %v2371_v61, 8 }
 0x742   :  { %2420 = vxpose.xlu0.b32.cont [14/16] (narrow) %v2372_v25, 8  ;;  %v8489_v25 = vld [vmem:[#allocation44_spill] sm:$0xff] }
 0x74a   :  { %2421 = vxpose.xlu0.b32.cont [15/16] (narrow) %v2373_v17, 8  ;;  %v8495_v17 = vand.u32 4294901760, %v8494_v16 }
 0x752   :  { %2422 = vxpose.xlu0.b32.end [16/16] (narrow) %v2374_v23, 8 }
 0x75e   :  { %v2391_v37 = vpop.trf.xlu1 }
 0x75f   :  { %v2471_v60 = vand.u32 4294901760, %v2391_v37 }
 0x761   :  { %v2472_v1 = vsub.f32 %v2391_v37, %v2471_v60  ;;  %2577 = vmatmul.f32.vlgmr.msra.gmra.mxu1 %v2471_v60 }
 0x762   :  { %3312 = vmatpush.msk.msra.mxu1 %vm1823_vm13, %v8439_v13 }
 0x763   :  { %2631 = vmatmul.f32.vlgmr.msra.gmra.mxu2 %v2472_v1  ;;  %v2473_v48 = vand.u32 4294901760, %v2472_v1 }
 0x764   :  { %3313 = vmatpush.msk.msra.mxu1 %vm1822_vm3, %v8439_v13  ;;  %3018 = vmatpush.msra.mxu2 %v8443_v38 }
 0x765   :  { %2670 = vmatmul.f32.vlgmr.msra.gmra.mxu3 %v2473_v48  ;;  %v2474_v46 = vsub.f32 %v2472_v1, %v2473_v48 }
 0x766   :  { %3314 = vmatpush.msk.msra.mxu1 %vm1821_vm7, %v8439_v13  ;;  %3022 = vmatpush.msra.mxu2 %v8446_v55 }
 0x767   :  { %3328 = vmatpush.msk.msra.mxu3 %vm1823_vm13, %v8439_v13  ;;  %v2475_v41 = vand.u32 4294901760, %v2474_v46  ;;  %vm8463_vm13 = vcmp.eq.s32.totalorder %v4053_v42, %v8462_v47 }
 0x768   :  { %3315 = vmatpush.msk.msra.mxu1 %vm1820_vm12, %v8439_v13  ;;  %3026 = vmatpush.msra.mxu2 %v8449_v56 }
 0x769   :  { %3329 = vmatpush.msk.msra.mxu3 %vm1822_vm3, %v8439_v13  ;;  %2476 = vmatmul.f32.vlgmr.msra.gmra.mxu0 %v2475_v41  ;;  %vm8467_vm3 = vcmp.eq.s32.totalorder %v4053_v42, %v8466_v40 }
 0x76a   :  { %2924 = vmatpush.msra.mxu0 %v8442_v29  ;;  %3316 = vmatpush.msk.msra.mxu1 %vm1819_vm11, %v8439_v13 }
 0x76b   :  { %3030 = vmatpush.msra.mxu2 %v8452_v10  ;;  %3330 = vmatpush.msk.msra.mxu3 %vm1821_vm7, %v8439_v13  ;;  %vm8473_vm7 = vmmov %vm8463_vm13 }
 0x76c   :  { %2927 = vmatpush.msra.mxu0 %v8445_v15  ;;  %3317 = vmatpush.msk.msra.mxu1 %vm1818_vm5, %v8439_v13 }
 0x76d   :  { %3034 = vmatpush.msra.mxu2 %v8455_v26  ;;  %3331 = vmatpush.msk.msra.mxu3 %vm1820_vm12, %v8439_v13  ;;  %vm8477_vm12 = vmmov %vm8467_vm3 }
 0x76e   :  { %2776 = vmatmul.f32.vlgmr.msrb.gmra.mxu1 %v2471_v60  ;;  %2930 = vmatpush.msra.mxu0 %v8448_v18 }
 0x76f   :  { %3318 = vmatpush.msk.msra.mxu1 %vm1817_vm8, %v8439_v13  ;;  %3038 = vmatpush.msra.mxu2 %v8458_v24 }
 0x770   :  { %3332 = vmatpush.msk.msra.mxu3 %vm1819_vm11, %v8439_v13  ;;  %2933 = vmatpush.msra.mxu0 %v8451_v28  ;;  %vm8482_vm11 = vcmp.eq.s32.totalorder %v4053_v42, %v8481_v4 }
 0x771   :  { %3319 = vmatpush.msk.msra.mxu1 %vm1816_vm4, %v8439_v13  ;;  %3042 = vmatpush.msra.mxu2 %v8461_v7 }
 0x772   :  { %3333 = vmatpush.msk.msra.mxu3 %vm1818_vm5, %v8439_v13  ;;  %2739 = vmatmul.f32.vlgmr.msrb.gmra.mxu0 %v2471_v60  ;;  %vm8486_vm5 = vcmp.eq.s32.totalorder %v4053_v42, %v8485_v5 }
 0x773   :  { %2936 = vmatpush.msra.mxu0 %v8454_v39  ;;  %3320 = vmatpush.msk.msra.mxu1 %vm8463_vm13, %v8439_v13 }
 0x774   :  { %3046 = vmatpush.msra.mxu2 %v8465_v62  ;;  %3334 = vmatpush.msk.msra.mxu3 %vm1817_vm8, %v8439_v13  ;;  %vm8490_vm8 = vcmp.eq.s32.totalorder %v4053_v42, %v8489_v25 }
 0x775   :  { %2939 = vmatpush.msra.mxu0 %v8457_v3  ;;  %3321 = vmatpush.msk.msra.mxu1 %vm8467_vm3, %v8439_v13 }
 0x776   :  { %3050 = vmatpush.msra.mxu2 %v8469_v63  ;;  %3335 = vmatpush.msk.msra.mxu3 %vm1816_vm4, %v8439_v13  ;;  %vm8493_vm4 = vmmov %vm8482_vm11 }
 0x777   :  { %2942 = vmatpush.msra.mxu0 %v8460_v14  ;;  %3322 = vmatpush.msk.msra.mxu1 %vm1813_vm10, %v8439_v13 }
 0x778   :  { %3054 = vmatpush.msra.mxu2 %v8472_v45  ;;  %3336 = vmatpush.msk.msra.mxu3 %vm8473_vm7, %v8439_v13 }
 0x779   :  { %2945 = vmatpush.msra.mxu0 %v8464_v53  ;;  %3323 = vmatpush.msk.msra.mxu1 %vm1812_vm15, %v8439_v13 }
 0x77a   :  { %3058 = vmatpush.msra.mxu2 %v8476_v9  ;;  %3337 = vmatpush.msk.msra.mxu3 %vm8477_vm12, %v8439_v13 }
 0x77b   :  { %2948 = vmatpush.msra.mxu0 %v8468_v54  ;;  %3324 = vmatpush.msk.msra.mxu1 %vm1811_vm1, %v8439_v13 }
 0x77c   :  { %3062 = vmatpush.msra.mxu2 %v8480_v57  ;;  %3338 = vmatpush.msk.msra.mxu3 %vm1813_vm10, %v8439_v13  ;;  %vm8496_vm10 = vmmov %vm8486_vm5 }
 0x77d   :  { %2951 = vmatpush.msra.mxu0 %v8471_v59  ;;  %3325 = vmatpush.msk.msra.mxu1 %vm8482_vm11, %v8439_v13 }
 0x77e   :  { %3066 = vmatpush.msra.mxu2 %v8484_v27  ;;  %3339 = vmatpush.msk.msra.mxu3 %vm1812_vm15, %v8439_v13  ;;  %v2423_v61 = vpop.trf.xlu0  ;;  %vm8497_vm15 = vmmov %vm8490_vm8 }
 0x77f   :  { %2954 = vmatpush.msra.mxu0 %v8475_v31  ;;  %3326 = vmatpush.msk.msra.mxu1 %vm8486_vm5, %v8439_v13  ;;  %v2812_v50 = vand.u32 4294901760, %v2423_v61 }
 0x780   :  { %3070 = vmatpush.msra.mxu2 %v8488_v0  ;;  %3340 = vmatpush.msk.msra.mxu3 %vm1811_vm1, %v8439_v13 }
 0x781   :  { %v2813_v30 = vsub.f32 %v2423_v61, %v2812_v50  ;;  %2957 = vmatpush.msra.mxu0 %v8479_v22  ;;  %3327 = vmatpush.msk.msra.mxu1 %vm8490_vm8, %v8439_v13 }
 0x782   :  { %3074 = vmatpush.msra.mxu2 %v8492_v49  ;;  %3341 = vmatpush.msk.msra.mxu3 %vm8493_vm4, %v8439_v13 }
 0x783   :  { %v2814_v11 = vand.u32 4294901760, %v2813_v30  ;;  %2918 = vmatmul.f32.vlgmr.msrb.gmra.mxu3 %v2812_v50  ;;  %2960 = vmatpush.msra.mxu0 %v8483_v12 }
 0x784   :  { %3078 = vmatpush.msra.mxu2 %v8495_v17  ;;  %3342 = vmatpush.msk.msra.mxu3 %vm8496_vm10, %v8439_v13 }
 0x785   :  { %2963 = vmatpush.msra.mxu0 %v8487_v58  ;;  %3011 = vmatmul.f32.vlgmr.msra.gmra.mxu1 %v2814_v11  ;;  %v2815_v19 = vsub.f32 %v2813_v30, %v2814_v11 }
 0x786   :  { %3343 = vmatpush.msk.msra.mxu3 %vm8497_vm15, %v8439_v13 }
 0x787   :  { %2966 = vmatpush.msra.mxu0 %v8491_v35  ;;  %v2816_v36 = vand.u32 4294901760, %v2815_v19 }
 0x789   :  { %2969 = vmatpush.msra.mxu0 %v8494_v16  ;;  %2817 = vmatmul.f32.vlgmr.msrb.gmra.mxu2 %v2816_v36 }
 0x78a   :  { %2972 = vmatmul.f32.vlgmr.msra.gmra.mxu0 %v2813_v30 }
 0x78b   :  { %3117 = vmatmul.f32.vlgmr.msra.gmra.mxu3 %v2812_v50 }
 0x791   :  { %3080 = vmatmul.f32.vlgmr.msra.gmra.mxu2 %v2812_v50 }
 0x7de   :  { %v2578_v43 = vpop.f32.mrf.mxu1 }
 0x7e6   :  { %v2477_v23 = vpop.f32.mrf.mxu0  ;;  %v2632_v60 = vpop.f32.mrf.mxu2 }
 0x7e7   :  { %v2579_v37 = vadd.f32 %v2578_v43, %v2477_v23 }
 0x7e8   :  { %v2671_v20 = vpop.f32.mrf.mxu3 }
 0x7e9   :  { %v2633_v1 = vadd.f32 %v2632_v60, %v2579_v37 }
 0x7eb   :  { %v2672_v48 = vadd.f32 %v2671_v20, %v2633_v1  ;;  %v2777_v42 = vpop.f32.mrf.mxu1 }
 0x7ef   :  { %v2740_v34 = vpop.f32.mrf.mxu0 }
 0x7f0   :  { %v2741_v29 = vadd.f32 %v2740_v34, %v2672_v48 }
 0x7f2   :  { %v2778_v13 = vadd.f32 %v2777_v42, %v2741_v29 }
 0x802   :  { %v3012_v52 = vpop.f32.mrf.mxu1 }
 0x806   :  { %v2919_v38 = vpop.f32.mrf.mxu3 }
 0x807   :  { %v2973_v55 = vpop.f32.mrf.mxu0 }
 0x80c   :  { %v2818_v46 = vpop.f32.mrf.mxu2 }
 0x80d   :  { %v2819_v51 = vadd.f32 %v2818_v46, %v2778_v13 }
 0x80e   :  { %v3118_v28 = vpop.f32.mrf.mxu3 }
 0x80f   :  { %v2920_v15 = vadd.f32 %v2919_v38, %v2819_v51 }
 0x811   :  { %v2974_v41 = vadd.f32 %v2973_v55, %v2920_v15 }
 0x813   :  { %v3013_v18 = vadd.f32 %v3012_v52, %v2974_v41 }
 0x814   :  { %v3081_v56 = vpop.f32.mrf.mxu2 }
 0x815   :  { %v3082_v44 = vadd.f32 %v3081_v56, %v3013_v18 }
 0x817   :  { %v3119_v10 = vadd.f32 %v3118_v28, %v3082_v44 }
 0x819   :  { %3123 = vst [vmem:[#allocation2] sm:$0xff] %v3119_v10 }
 0x81a   :  { %3134 = dma.vmem_to_hbm [thread:$0]  %s3130_s26, 128, %s3132_s29, [#allocation3]  }
 0x81b   :  { %3662 = dma.done.wait [#allocation3], 128  }
 0x81c   :  { %3663 = vsyncadd [#allocation3], 4294967168 }
 0x81d   :  { %3139 = vsyncpa [#allocation3], 1 }

</bundles_post_ra>
